<compile_context>
chip_gen: v6e
topology: v6e:2x2x1
jax: 0.10.0
libtpu: 0.0.40
codegen_flags: <defaults>
</compile_context>

<pallas_src>
import jax
import jax.numpy as jnp
from jax.experimental import pallas as pl
from jax.experimental.pallas import tpu as pltpu


def _round_up(x, m):
    return (x + m - 1) // m * m


def _row_tiles(m, max_tm=256):
    """Pick (tm, padded_M, num_blocks) for a row-tiled 1-D grid."""
    mp8 = _round_up(m, 8)
    nb = max(2, pl.cdiv(mp8, max_tm)) if mp8 >= 16 else 1
    tm = _round_up(pl.cdiv(mp8, nb), 8)
    return tm, tm * nb, nb


# -------------------- Pallas kernels --------------------

def _conv_pool_relu_kernel(cols_ref, w_ref, b_ref, o_ref):
    """Fused conv (as 4 corner im2col matmuls) + 2x2 max-pool + bias + ReLU.

    cols_ref: (4, tm, K) bf16 -- im2col rows for the 4 positions of each 2x2
              pooling window.  max(conv+b) == max(conv)+b and relu commutes with
              max, so pool/bias/relu all fold into the epilogue.
    """
    w = w_ref[...]
    y = jnp.dot(cols_ref[0], w, preferred_element_type=jnp.float32)
    y = jnp.maximum(y, jnp.dot(cols_ref[1], w, preferred_element_type=jnp.float32))
    y = jnp.maximum(y, jnp.dot(cols_ref[2], w, preferred_element_type=jnp.float32))
    y = jnp.maximum(y, jnp.dot(cols_ref[3], w, preferred_element_type=jnp.float32))
    o_ref[...] = jnp.maximum(y + b_ref[...], 0.0).astype(o_ref.dtype)


def _mlp_head_kernel(x_ref, w1_ref, b1_ref, w2_ref, b2_ref, o_ref):
    """softmax(relu(x @ W1 + b1) @ W2 + b2) for one row tile (f32 epilogue)."""
    h = jnp.dot(x_ref[...], w1_ref[...], preferred_element_type=jnp.float32)
    h = jnp.maximum(h + b1_ref[...], 0.0)                       # fc1 + ReLU
    logits = jnp.dot(h.astype(w2_ref.dtype), w2_ref[...],
                     preferred_element_type=jnp.float32) + b2_ref[...]
    m = jnp.max(logits, axis=-1, keepdims=True)
    e = jnp.exp(logits - m)
    s = jnp.sum(e, axis=-1, keepdims=True)
    o_ref[...] = (e * pl.reciprocal(s, approx=False)).astype(o_ref.dtype)


# -------------------- wrappers --------------------

def _pool_corner_cols(x, k, p, q, hop, wop):
    """im2col rows for pool-window corner (p, q): (N*hop*wop, k*k*C), order (dh, dw, cin)."""
    n, _, _, c = x.shape
    patches = []
    for dh in range(k):
        for dw in range(k):
            patches.append(x[:, p + dh: p + dh + 2 * hop: 2,
                             q + dw: q + dw + 2 * wop: 2, :])   # (N, hop, wop, C)
    cols = jnp.stack(patches, axis=3)                            # (N, hop, wop, k*k, C)
    return cols.reshape(n * hop * wop, k * k * c)


def conv_pool_relu(x_nhwc, w, b, k=3):
    """relu(max_pool2d(conv2d_valid(x) + b, 2)). x: (N,H,W,Cin) bf16 -> (N,Hop,Wop,Cout) bf16."""
    n, h, w_in, _ = x_nhwc.shape
    kk_cin, cout = w.shape
    hop, wop = (h - k + 1) // 2, (w_in - k + 1) // 2
    m = n * hop * wop

    corners = jnp.stack(
        [_pool_corner_cols(x_nhwc, k, p, q, hop, wop) for p in (0, 1) for q in (0, 1)],
        axis=0)                                                  # (4, M, K)

    tm, mp, nb = _row_tiles(m)
    corners = jnp.pad(corners, ((0, 0), (0, mp - m), (0, 0)))

    out = pl.pallas_call(
        _conv_pool_relu_kernel,
        out_shape=jax.ShapeDtypeStruct((mp, cout), jnp.bfloat16),
        grid=(nb,),
        in_specs=[
            pl.BlockSpec((4, tm, kk_cin), lambda i: (0, i, 0)),  # corner im2cols (K full-extent)
            pl.BlockSpec((kk_cin, cout), lambda i: (0, 0)),      # weights, resident
            pl.BlockSpec((1, cout), lambda i: (0, 0)),           # bias row
        ],
        out_specs=pl.BlockSpec((tm, cout), lambda i: (i, 0)),
        compiler_params=pltpu.CompilerParams(dimension_semantics=("parallel",)),
    )(corners, w, b)
    return out[:m].reshape(n, hop, wop, cout)


def mlp_head(x, w1, b1, w2, b2):
    """softmax(relu(x @ W1 + b1) @ W2 + b2) in one pallas_call. x: (M, K) bf16."""
    m, kin = x.shape
    hidden = w1.shape[1]
    nout = w2.shape[1]
    tm, mp, nb = _row_tiles(m)
    xp = jnp.pad(x, ((0, mp - m), (0, 0)))

    out = pl.pallas_call(
        _mlp_head_kernel,
        out_shape=jax.ShapeDtypeStruct((mp, nout), jnp.float32),
        grid=(nb,),
        in_specs=[
            pl.BlockSpec((tm, kin), lambda i: (i, 0)),
            pl.BlockSpec((kin, hidden), lambda i: (0, 0)),       # fc1 W, resident (~0.46 MB bf16)
            pl.BlockSpec((1, hidden), lambda i: (0, 0)),
            pl.BlockSpec((hidden, nout), lambda i: (0, 0)),      # fc2 W, resident
            pl.BlockSpec((1, nout), lambda i: (0, 0)),
        ],
        out_specs=pl.BlockSpec((tm, nout), lambda i: (i, 0)),
        compiler_params=pltpu.CompilerParams(dimension_semantics=("parallel",)),
    )(xp, w1, b1, w2, b2)
    return out[:m]


# -------------------- parameter prep (one-time, hoisted out of forward) --------------------

def prepare_params(conv1_w, conv1_b, conv2_w, conv2_b, fc1_w, fc1_b, fc2_w, fc2_b):
    # conv weights (Cout, Cin, kh, kw) -> im2col layout (kh*kw*Cin, Cout), bf16
    w1 = jnp.transpose(conv1_w, (2, 3, 1, 0)).reshape(-1, conv1_w.shape[0]).astype(jnp.bfloat16)
    w2 = jnp.transpose(conv2_w, (2, 3, 1, 0)).reshape(-1, conv2_w.shape[0]).astype(jnp.bfloat16)
    b1 = conv1_b.reshape(1, -1).astype(jnp.float32)
    b2 = conv2_b.reshape(1, -1).astype(jnp.float32)

    # torch flattens NCHW -> feature order (c, h, w); our activations are flattened
    # (h, w, c).  Permute fc1's weight rows once so no runtime transpose is needed.
    c, hh, ww = 64, 6, 6
    perm = jnp.transpose(jnp.arange(c * hh * ww).reshape(c, hh, ww), (1, 2, 0)).reshape(-1)
    fw1 = fc1_w.T[perm].astype(jnp.bfloat16)            # (2304, 100)
    fb1 = fc1_b.reshape(1, -1).astype(jnp.float32)
    fw2 = fc2_w.T.astype(jnp.bfloat16)                   # (100, 10)
    fb2 = fc2_b.reshape(1, -1).astype(jnp.float32)
    return (w1, b1, w2, b2, fw1, fb1, fw2, fb2)


# -------------------- forward --------------------

def simple_cnn_forward(x_nchw, params):
    w1, b1, w2, b2, fw1, fb1, fw2, fb2 = params
    n = x_nchw.shape[0]
    x = jnp.transpose(x_nchw, (0, 2, 3, 1)).astype(jnp.bfloat16)   # NCHW -> NHWC, bf16

    x = conv_pool_relu(x, w1, b1)          # conv1 + pool + relu        -> (N, 15, 15, 32)
    # TODO(synk): conv2_drop / fc1_drop are inference identities (no train-mode dropout)
    x = conv_pool_relu(x, w2, b2)          # conv2 + pool + relu        -> (N, 6, 6, 64)
    x = x.reshape(n, -1)                   # (h, w, c) flatten          -> (N, 2304)
    return mlp_head(x, fw1, fb1, fw2, fb2)  # fc1+relu+fc2+softmax      -> (N, 10) f32


if __name__ == "__main__":
    key = jax.random.PRNGKey(0)
    keys = jax.random.split(key, 9)

    # Deterministic synthetic parameters (PyTorch shapes).
    conv1_w = jax.random.normal(keys[0], (32, 1, 3, 3), jnp.float32) * 0.1
    conv1_b = jax.random.normal(keys[1], (32,), jnp.float32) * 0.1
    conv2_w = jax.random.normal(keys[2], (64, 32, 3, 3), jnp.float32) * 0.05
    conv2_b = jax.random.normal(keys[3], (64,), jnp.float32) * 0.05
    fc1_w = jax.random.normal(keys[4], (100, 2304), jnp.float32) * 0.02
    fc1_b = jax.random.normal(keys[5], (100,), jnp.float32) * 0.02
    fc2_w = jax.random.normal(keys[6], (10, 100), jnp.float32) * 0.1
    fc2_b = jax.random.normal(keys[7], (10,), jnp.float32) * 0.1

    # Input: NCHW, 32x32 so the flattened size is 64*6*6 = 2304 (matches fc1).
    x = jax.random.normal(keys[8], (2, 1, 32, 32), jnp.float32)

    params = prepare_params(conv1_w, conv1_b, conv2_w, conv2_b,
                            fc1_w, fc1_b, fc2_w, fc2_b)
    params = jax.block_until_ready(params)         # one-time weight prep

    forward = jax.jit(simple_cnn_forward)
    out = jax.block_until_ready(forward(x, params))

    assert out.shape == (2, 10)
    assert bool(jnp.all(jnp.isfinite(out)))
    assert bool(jnp.allclose(jnp.sum(out, axis=-1), 1.0, atol=1e-5))
    print("KERNEL_OK")
</pallas_src>

<mosaic_0001>
module attributes {stable_mosaic.version = 11 : i64} {
  func.func @_conv_pool_relu_kernel(%arg0: i32, %arg1: memref<4x232x9xbf16, #tpu.memory_space<vmem>>, %arg2: memref<9x32xbf16, #tpu.memory_space<vmem>>, %arg3: memref<1x32xf32, #tpu.memory_space<vmem>>, %arg4: memref<232x32xbf16, #tpu.memory_space<vmem>>) attributes {dimension_semantics = [#tpu.dimension_semantics<parallel>], iteration_bounds = array<i64: 2>, scalar_prefetch = 0 : i64, scratch_operands = 0 : i64, tpu.core_type = #tpu.core_type<tc>, window_params = [{transform_indices = @transform_0, window_bounds = array<i64: 4, 232, 9>}, {pipeline_mode = #tpu.pipeline_mode<synchronous>, transform_indices = @transform_1, window_bounds = array<i64: 9, 32>}, {pipeline_mode = #tpu.pipeline_mode<synchronous>, transform_indices = @transform_2, window_bounds = array<i64: 1, 32>}, {transform_indices = @transform_3, window_bounds = array<i64: 232, 32>}]} {
    %c0 = arith.constant 0 : index
    %c0_0 = arith.constant 0 : index
    %0 = vector.load %arg2[%c0, %c0_0] : memref<9x32xbf16, #tpu.memory_space<vmem>>, vector<9x32xbf16>
    %c0_1 = arith.constant 0 : index
    %c0_2 = arith.constant 0 : index
    %c0_3 = arith.constant 0 : index
    %1 = vector.load %arg1[%c0_1, %c0_2, %c0_3] : memref<4x232x9xbf16, #tpu.memory_space<vmem>>, vector<1x232x9xbf16>
    %2 = vector.shape_cast %1 : vector<1x232x9xbf16> to vector<232x9xbf16>
    %cst = arith.constant dense<0.000000e+00> : vector<232x32xf32>
    %3 = tpu.matmul %2, %0, %cst {dimension_numbers = #tpu.dot_dimension_numbers<[1], [0], [0], [1], [0, 0, 1, 1], [], []>} : vector<232x9xbf16>, vector<9x32xbf16>, vector<232x32xf32> -> vector<232x32xf32>
    %c1 = arith.constant 1 : index
    %c0_4 = arith.constant 0 : index
    %c0_5 = arith.constant 0 : index
    %4 = vector.load %arg1[%c1, %c0_4, %c0_5] : memref<4x232x9xbf16, #tpu.memory_space<vmem>>, vector<1x232x9xbf16>
    %5 = vector.shape_cast %4 : vector<1x232x9xbf16> to vector<232x9xbf16>
    %cst_6 = arith.constant dense<0.000000e+00> : vector<232x32xf32>
    %6 = tpu.matmul %5, %0, %cst_6 {dimension_numbers = #tpu.dot_dimension_numbers<[1], [0], [0], [1], [0, 0, 1, 1], [], []>} : vector<232x9xbf16>, vector<9x32xbf16>, vector<232x32xf32> -> vector<232x32xf32>
    %7 = arith.maximumf %3, %6 : vector<232x32xf32>
    %c2 = arith.constant 2 : index
    %c0_7 = arith.constant 0 : index
    %c0_8 = arith.constant 0 : index
    %8 = vector.load %arg1[%c2, %c0_7, %c0_8] : memref<4x232x9xbf16, #tpu.memory_space<vmem>>, vector<1x232x9xbf16>
    %9 = vector.shape_cast %8 : vector<1x232x9xbf16> to vector<232x9xbf16>
    %cst_9 = arith.constant dense<0.000000e+00> : vector<232x32xf32>
    %10 = tpu.matmul %9, %0, %cst_9 {dimension_numbers = #tpu.dot_dimension_numbers<[1], [0], [0], [1], [0, 0, 1, 1], [], []>} : vector<232x9xbf16>, vector<9x32xbf16>, vector<232x32xf32> -> vector<232x32xf32>
    %11 = arith.maximumf %7, %10 : vector<232x32xf32>
    %c3 = arith.constant 3 : index
    %c0_10 = arith.constant 0 : index
    %c0_11 = arith.constant 0 : index
    %12 = vector.load %arg1[%c3, %c0_10, %c0_11] : memref<4x232x9xbf16, #tpu.memory_space<vmem>>, vector<1x232x9xbf16>
    %13 = vector.shape_cast %12 : vector<1x232x9xbf16> to vector<232x9xbf16>
    %cst_12 = arith.constant dense<0.000000e+00> : vector<232x32xf32>
    %14 = tpu.matmul %13, %0, %cst_12 {dimension_numbers = #tpu.dot_dimension_numbers<[1], [0], [0], [1], [0, 0, 1, 1], [], []>} : vector<232x9xbf16>, vector<9x32xbf16>, vector<232x32xf32> -> vector<232x32xf32>
    %15 = arith.maximumf %11, %14 : vector<232x32xf32>
    %c0_13 = arith.constant 0 : index
    %c0_14 = arith.constant 0 : index
    %16 = vector.load %arg3[%c0_13, %c0_14] : memref<1x32xf32, #tpu.memory_space<vmem>>, vector<1x32xf32>
    %17 = vector.broadcast %16 : vector<1x32xf32> to vector<232x32xf32>
    %18 = arith.addf %15, %17 : vector<232x32xf32>
    %cst_15 = arith.constant 0.000000e+00 : f32
    %19 = vector.broadcast %cst_15 : f32 to vector<232x32xf32>
    %20 = arith.maximumf %18, %19 : vector<232x32xf32>
    %21 = arith.truncf %20 : vector<232x32xf32> to vector<232x32xbf16>
    %c0_16 = arith.constant 0 : index
    %c0_17 = arith.constant 0 : index
    %22 = vector.load %arg4[%c0_16, %c0_17] : memref<232x32xbf16, #tpu.memory_space<vmem>>, vector<232x32xbf16>
    tpu.vector_store %arg4[%c0_16, %c0_17], %21 {strides = array<i32>} : memref<232x32xbf16, #tpu.memory_space<vmem>>, vector<232x32xbf16>,
    return
  }
  func.func @transform_0(%arg0: i32) -> (i32, i32, i32) {
    %c0_i32 = arith.constant 0 : i32
    %c0_i32_0 = arith.constant 0 : i32
    %c0_i32_1 = arith.constant 0 : i32
    return %c0_i32, %arg0, %c0_i32_0 : i32, i32, i32
  }
  func.func @transform_1(%arg0: i32) -> (i32, i32) {
    %c0_i32 = arith.constant 0 : i32
    %c0_i32_0 = arith.constant 0 : i32
    %c0_i32_1 = arith.constant 0 : i32
    return %c0_i32, %c0_i32_0 : i32, i32
  }
  func.func @transform_2(%arg0: i32) -> (i32, i32) {
    %c0_i32 = arith.constant 0 : i32
    %c0_i32_0 = arith.constant 0 : i32
    %c0_i32_1 = arith.constant 0 : i32
    return %c0_i32, %c0_i32_0 : i32, i32
  }
  func.func @transform_3(%arg0: i32) -> (i32, i32) {
    %c0_i32 = arith.constant 0 : i32
    %c0_i32_0 = arith.constant 0 : i32
    return %arg0, %c0_i32 : i32, i32
  }
}

module attributes {stable_mosaic.version = 11 : i64} {
  func.func @_conv_pool_relu_kernel(%arg0: i32, %arg1: memref<4x40x288xbf16, #tpu.memory_space<vmem>>, %arg2: memref<288x64xbf16, #tpu.memory_space<vmem>>, %arg3: memref<1x64xf32, #tpu.memory_space<vmem>>, %arg4: memref<40x64xbf16, #tpu.memory_space<vmem>>) attributes {dimension_semantics = [#tpu.dimension_semantics<parallel>], iteration_bounds = array<i64: 2>, scalar_prefetch = 0 : i64, scratch_operands = 0 : i64, tpu.core_type = #tpu.core_type<tc>, window_params = [{transform_indices = @transform_0, window_bounds = array<i64: 4, 40, 288>}, {pipeline_mode = #tpu.pipeline_mode<synchronous>, transform_indices = @transform_1, window_bounds = array<i64: 288, 64>}, {pipeline_mode = #tpu.pipeline_mode<synchronous>, transform_indices = @transform_2, window_bounds = array<i64: 1, 64>}, {transform_indices = @transform_3, window_bounds = array<i64: 40, 64>}]} {
    %c0 = arith.constant 0 : index
    %c0_0 = arith.constant 0 : index
    %0 = vector.load %arg2[%c0, %c0_0] : memref<288x64xbf16, #tpu.memory_space<vmem>>, vector<288x64xbf16>
    %c0_1 = arith.constant 0 : index
    %c0_2 = arith.constant 0 : index
    %c0_3 = arith.constant 0 : index
    %1 = vector.load %arg1[%c0_1, %c0_2, %c0_3] : memref<4x40x288xbf16, #tpu.memory_space<vmem>>, vector<1x40x288xbf16>
    %2 = vector.shape_cast %1 : vector<1x40x288xbf16> to vector<40x288xbf16>
    %cst = arith.constant dense<0.000000e+00> : vector<40x64xf32>
    %3 = tpu.matmul %2, %0, %cst {dimension_numbers = #tpu.dot_dimension_numbers<[1], [0], [0], [1], [0, 0, 1, 1], [], []>} : vector<40x288xbf16>, vector<288x64xbf16>, vector<40x64xf32> -> vector<40x64xf32>
    %c1 = arith.constant 1 : index
    %c0_4 = arith.constant 0 : index
    %c0_5 = arith.constant 0 : index
    %4 = vector.load %arg1[%c1, %c0_4, %c0_5] : memref<4x40x288xbf16, #tpu.memory_space<vmem>>, vector<1x40x288xbf16>
    %5 = vector.shape_cast %4 : vector<1x40x288xbf16> to vector<40x288xbf16>
    %cst_6 = arith.constant dense<0.000000e+00> : vector<40x64xf32>
    %6 = tpu.matmul %5, %0, %cst_6 {dimension_numbers = #tpu.dot_dimension_numbers<[1], [0], [0], [1], [0, 0, 1, 1], [], []>} : vector<40x288xbf16>, vector<288x64xbf16>, vector<40x64xf32> -> vector<40x64xf32>
    %7 = arith.maximumf %3, %6 : vector<40x64xf32>
    %c2 = arith.constant 2 : index
    %c0_7 = arith.constant 0 : index
    %c0_8 = arith.constant 0 : index
    %8 = vector.load %arg1[%c2, %c0_7, %c0_8] : memref<4x40x288xbf16, #tpu.memory_space<vmem>>, vector<1x40x288xbf16>
    %9 = vector.shape_cast %8 : vector<1x40x288xbf16> to vector<40x288xbf16>
    %cst_9 = arith.constant dense<0.000000e+00> : vector<40x64xf32>
    %10 = tpu.matmul %9, %0, %cst_9 {dimension_numbers = #tpu.dot_dimension_numbers<[1], [0], [0], [1], [0, 0, 1, 1], [], []>} : vector<40x288xbf16>, vector<288x64xbf16>, vector<40x64xf32> -> vector<40x64xf32>
    %11 = arith.maximumf %7, %10 : vector<40x64xf32>
    %c3 = arith.constant 3 : index
    %c0_10 = arith.constant 0 : index
    %c0_11 = arith.constant 0 : index
    %12 = vector.load %arg1[%c3, %c0_10, %c0_11] : memref<4x40x288xbf16, #tpu.memory_space<vmem>>, vector<1x40x288xbf16>
    %13 = vector.shape_cast %12 : vector<1x40x288xbf16> to vector<40x288xbf16>
    %cst_12 = arith.constant dense<0.000000e+00> : vector<40x64xf32>
    %14 = tpu.matmul %13, %0, %cst_12 {dimension_numbers = #tpu.dot_dimension_numbers<[1], [0], [0], [1], [0, 0, 1, 1], [], []>} : vector<40x288xbf16>, vector<288x64xbf16>, vector<40x64xf32> -> vector<40x64xf32>
    %15 = arith.maximumf %11, %14 : vector<40x64xf32>
    %c0_13 = arith.constant 0 : index
    %c0_14 = arith.constant 0 : index
    %16 = vector.load %arg3[%c0_13, %c0_14] : memref<1x64xf32, #tpu.memory_space<vmem>>, vector<1x64xf32>
    %17 = vector.broadcast %16 : vector<1x64xf32> to vector<40x64xf32>
    %18 = arith.addf %15, %17 : vector<40x64xf32>
    %cst_15 = arith.constant 0.000000e+00 : f32
    %19 = vector.broadcast %cst_15 : f32 to vector<40x64xf32>
    %20 = arith.maximumf %18, %19 : vector<40x64xf32>
    %21 = arith.truncf %20 : vector<40x64xf32> to vector<40x64xbf16>
    %c0_16 = arith.constant 0 : index
    %c0_17 = arith.constant 0 : index
    %22 = vector.load %arg4[%c0_16, %c0_17] : memref<40x64xbf16, #tpu.memory_space<vmem>>, vector<40x64xbf16>
    tpu.vector_store %arg4[%c0_16, %c0_17], %21 {strides = array<i32>} : memref<40x64xbf16, #tpu.memory_space<vmem>>, vector<40x64xbf16>,
    return
  }
  func.func @transform_0(%arg0: i32) -> (i32, i32, i32) {
    %c0_i32 = arith.constant 0 : i32
    %c0_i32_0 = arith.constant 0 : i32
    %c0_i32_1 = arith.constant 0 : i32
    return %c0_i32, %arg0, %c0_i32_0 : i32, i32, i32
  }
  func.func @transform_1(%arg0: i32) -> (i32, i32) {
    %c0_i32 = arith.constant 0 : i32
    %c0_i32_0 = arith.constant 0 : i32
    %c0_i32_1 = arith.constant 0 : i32
    return %c0_i32, %c0_i32_0 : i32, i32
  }
  func.func @transform_2(%arg0: i32) -> (i32, i32) {
    %c0_i32 = arith.constant 0 : i32
    %c0_i32_0 = arith.constant 0 : i32
    %c0_i32_1 = arith.constant 0 : i32
    return %c0_i32, %c0_i32_0 : i32, i32
  }
  func.func @transform_3(%arg0: i32) -> (i32, i32) {
    %c0_i32 = arith.constant 0 : i32
    %c0_i32_0 = arith.constant 0 : i32
    return %arg0, %c0_i32 : i32, i32
  }
}

module attributes {stable_mosaic.version = 11 : i64} {
  func.func @_mlp_head_kernel(%arg0: i32, %arg1: memref<8x2304xbf16, #tpu.memory_space<vmem>>, %arg2: memref<2304x100xbf16, #tpu.memory_space<vmem>>, %arg3: memref<1x100xf32, #tpu.memory_space<vmem>>, %arg4: memref<100x10xbf16, #tpu.memory_space<vmem>>, %arg5: memref<1x10xf32, #tpu.memory_space<vmem>>, %arg6: memref<8x10xf32, #tpu.memory_space<vmem>>) attributes {dimension_semantics = [#tpu.dimension_semantics<parallel>], iteration_bounds = array<i64: 1>, scalar_prefetch = 0 : i64, scratch_operands = 0 : i64, tpu.core_type = #tpu.core_type<tc>, window_params = [{transform_indices = @transform_0, window_bounds = array<i64: 8, 2304>}, {pipeline_mode = #tpu.pipeline_mode<synchronous>, transform_indices = @transform_1, window_bounds = array<i64: 2304, 100>}, {pipeline_mode = #tpu.pipeline_mode<synchronous>, transform_indices = @transform_2, window_bounds = array<i64: 1, 100>}, {pipeline_mode = #tpu.pipeline_mode<synchronous>, transform_indices = @transform_3, window_bounds = array<i64: 100, 10>}, {pipeline_mode = #tpu.pipeline_mode<synchronous>, transform_indices = @transform_4, window_bounds = array<i64: 1, 10>}, {transform_indices = @transform_5, window_bounds = array<i64: 8, 10>}]} {
    %c0 = arith.constant 0 : index
    %c0_0 = arith.constant 0 : index
    %0 = vector.load %arg1[%c0, %c0_0] : memref<8x2304xbf16, #tpu.memory_space<vmem>>, vector<8x2304xbf16>
    %c0_1 = arith.constant 0 : index
    %c0_2 = arith.constant 0 : index
    %1 = vector.load %arg2[%c0_1, %c0_2] : memref<2304x100xbf16, #tpu.memory_space<vmem>>, vector<2304x100xbf16>
    %cst = arith.constant dense<0.000000e+00> : vector<8x100xf32>
    %2 = tpu.matmul %0, %1, %cst {dimension_numbers = #tpu.dot_dimension_numbers<[1], [0], [0], [1], [0, 0, 1, 1], [], []>} : vector<8x2304xbf16>, vector<2304x100xbf16>, vector<8x100xf32> -> vector<8x100xf32>
    %c0_3 = arith.constant 0 : index
    %c0_4 = arith.constant 0 : index
    %3 = vector.load %arg3[%c0_3, %c0_4] : memref<1x100xf32, #tpu.memory_space<vmem>>, vector<1x100xf32>
    %4 = vector.broadcast %3 : vector<1x100xf32> to vector<8x100xf32>
    %5 = arith.addf %2, %4 : vector<8x100xf32>
    %cst_5 = arith.constant 0.000000e+00 : f32
    %6 = vector.broadcast %cst_5 : f32 to vector<8x100xf32>
    %7 = arith.maximumf %5, %6 : vector<8x100xf32>
    %8 = arith.truncf %7 : vector<8x100xf32> to vector<8x100xbf16>
    %c0_6 = arith.constant 0 : index
    %c0_7 = arith.constant 0 : index
    %9 = vector.load %arg4[%c0_6, %c0_7] : memref<100x10xbf16, #tpu.memory_space<vmem>>, vector<100x10xbf16>
    %cst_8 = arith.constant dense<0.000000e+00> : vector<8x10xf32>
    %10 = tpu.matmul %8, %9, %cst_8 {dimension_numbers = #tpu.dot_dimension_numbers<[1], [0], [0], [1], [0, 0, 1, 1], [], []>} : vector<8x100xbf16>, vector<100x10xbf16>, vector<8x10xf32> -> vector<8x10xf32>
    %c0_9 = arith.constant 0 : index
    %c0_10 = arith.constant 0 : index
    %11 = vector.load %arg5[%c0_9, %c0_10] : memref<1x10xf32, #tpu.memory_space<vmem>>, vector<1x10xf32>
    %12 = vector.broadcast %11 : vector<1x10xf32> to vector<8x10xf32>
    %13 = arith.addf %10, %12 : vector<8x10xf32>
    %cst_11 = arith.constant dense<0xFF800000> : vector<8xf32>
    %14 = vector.multi_reduction <maximumf>, %13, %cst_11 [1] : vector<8x10xf32> to vector<8xf32>
    %15 = vector.shape_cast %14 : vector<8xf32> to vector<8x1xf32>
    %16 = vector.broadcast %15 : vector<8x1xf32> to vector<8x10xf32>
    %17 = arith.subf %13, %16 : vector<8x10xf32>
    %18 = math.exp %17 : vector<8x10xf32>
    %cst_12 = arith.constant dense<0.000000e+00> : vector<8xf32>
    %19 = vector.multi_reduction <add>, %18, %cst_12 [1] : vector<8x10xf32> to vector<8xf32>
    %20 = vector.shape_cast %19 : vector<8xf32> to vector<8x1xf32>
    %21 = tpu.reciprocal %20 : vector<8x1xf32> -> vector<8x1xf32>
    %22 = vector.broadcast %21 : vector<8x1xf32> to vector<8x10xf32>
    %23 = arith.mulf %18, %22 : vector<8x10xf32>
    %c0_13 = arith.constant 0 : index
    %c0_14 = arith.constant 0 : index
    %24 = vector.load %arg6[%c0_13, %c0_14] : memref<8x10xf32, #tpu.memory_space<vmem>>, vector<8x10xf32>
    tpu.vector_store %arg6[%c0_13, %c0_14], %23 {strides = array<i32>} : memref<8x10xf32, #tpu.memory_space<vmem>>, vector<8x10xf32>,
    return
  }
  func.func @transform_0(%arg0: i32) -> (i32, i32) {
    %c0_i32 = arith.constant 0 : i32
    %c0_i32_0 = arith.constant 0 : i32
    return %arg0, %c0_i32 : i32, i32
  }
  func.func @transform_1(%arg0: i32) -> (i32, i32) {
    %c0_i32 = arith.constant 0 : i32
    %c0_i32_0 = arith.constant 0 : i32
    %c0_i32_1 = arith.constant 0 : i32
    return %c0_i32, %c0_i32_0 : i32, i32
  }
  func.func @transform_2(%arg0: i32) -> (i32, i32) {
    %c0_i32 = arith.constant 0 : i32
    %c0_i32_0 = arith.constant 0 : i32
    %c0_i32_1 = arith.constant 0 : i32
    return %c0_i32, %c0_i32_0 : i32, i32
  }
  func.func @transform_3(%arg0: i32) -> (i32, i32) {
    %c0_i32 = arith.constant 0 : i32
    %c0_i32_0 = arith.constant 0 : i32
    %c0_i32_1 = arith.constant 0 : i32
    return %c0_i32, %c0_i32_0 : i32, i32
  }
  func.func @transform_4(%arg0: i32) -> (i32, i32) {
    %c0_i32 = arith.constant 0 : i32
    %c0_i32_0 = arith.constant 0 : i32
    %c0_i32_1 = arith.constant 0 : i32
    return %c0_i32, %c0_i32_0 : i32, i32
  }
  func.func @transform_5(%arg0: i32) -> (i32, i32) {
    %c0_i32 = arith.constant 0 : i32
    %c0_i32_0 = arith.constant 0 : i32
    return %arg0, %c0_i32 : i32, i32
  }
}

</mosaic_0001>

<bundles_post_ra>
// kernel: simple_cnn_forward.3
= control target key start
LH: loop header
LB: loop body
LE: loop exit
PB: predicated region body
PF: predicated region fallthrough
CT: control target
= control target key end

     0   :  { %s2979_s12 = smov 0   ;;  %s2981_s13 = smov 0   ;;  %s3759_s0 = inlined_call_operand.vmem [shape: bf16[4,464,9], index: 0, kind: input, shape index: {}]   ;;  %s3760_s1 = inlined_call_operand.vmem [shape: bf16[9,32], index: 1, kind: input, shape index: {}]   ;;  %s3761_s2 = inlined_call_operand.vmem [shape: f32[1,32], index: 2, kind: input, shape index: {}]   ;;  %s3762_s3 = inlined_call_operand.vmem [shape: bf16[464,32], index: 3, kind: output, shape index: {}]  }
   0x1   :  { %s2983_s14 = smov 0  }
   0x2 LB: > { %s2253_s15 = sadd.s32 4294967295, %s2954_s14   ;;  %s2996_s16 = sadd.s32 1, %s2954_s14   ;;  %s2954_s14 = sphi %s2983_s14, %s3821_s14   ;;  %s2950_s13 = sphi %s2981_s13, %s3820_s13   ;;  %s2946_s12 = sphi %s2979_s12, %s3819_s12  }
   0x3   : > { %s17_s17 = ssub.s32 %s2954_s14, %s2996_s16  ;;  %s20_s18 = sadd.s32 1, %s2950_s13 }
   0x4   : > { %p18_p0 = scmp.eq.s32.totalorder %s17_s17, 0  ;;  %p27_p1 = scmp.ne.s32.totalorder %s2950_s13, %s2946_s12 }
   0x5   : > { %p28_p2 = scmp.eq.s32.totalorder %s2954_s14, 0  ;;  %p2256_p4 = scmp.ge.s32.totalorder %s2954_s14, 2 }
   0x6   : > { %s3005_s19 = scalar_select %p18_p0, %s2950_s13, %s20_s18  }
   0x7   : > { %p29_p3 = por %p28_p2, %p27_p1  ;;  %127 = sbr.rel (%p2256_p4) target bundleno = 47 (0x2f), region = 24 }
   0xc   : > { %130 = sbr.rel (!%p29_p3) target bundleno = 47 (0x2f), region = 28  ;;  %s132_s20 = sand.u32 (%p29_p3), 1, %s2950_s13  }
   0xd   : > { %s2500_s21 = smul.u32 (%p29_p3), 116, %s2954_s14 }
   0xe   : > { %s2842_s22 = smul.u32 (%p29_p3), 464, %s132_s20 }
   0xf   : > { %s3013_s25 = scalar_lea.vmem (%p29_p3), %s3759_s0, %s2500_s21 }
  0x10   : > { %v154_v0 = vld [vmem:[%s3013_s25] sm:$0xff] (%p29_p3)   ;;  %v158_v1 = vld [vmem:[%s3013_s25 + $0x8] sm:$0xff] (%p29_p3)   ;;  %v162_v2 = vld [vmem:[%s3013_s25 + $0x10] sm:$0xff] (%p29_p3)   ;;  %s3018_s26 = scalar_lea.vmem (%p29_p3), [#allocation2], %s2842_s22 }
  0x11   : > { %155 = vst [vmem:[%s3018_s26] sm:$0xff] %v154_v0   ;;  %159 = vst [vmem:[%s3018_s26 + $0x8] sm:$0xff] %v158_v1   ;;  %v166_v3 = vld [vmem:[%s3013_s25 + $0x18] sm:$0xff]   ;;  %v170_v4 = vld [vmem:[%s3013_s25 + $0x20] sm:$0xff]  }
  0x12   : > { %163 = vst [vmem:[%s3018_s26 + $0x10] sm:$0xff] %v162_v2   ;;  %v174_v5 = vld [vmem:[%s3013_s25 + $0x28] sm:$0xff]   ;;  %167 = vst [vmem:[%s3018_s26 + $0x18] sm:$0xff] %v166_v3   ;;  %v178_v6 = vld [vmem:[%s3013_s25 + $0x30] sm:$0xff]  }
  0x13   : > { %171 = vst [vmem:[%s3018_s26 + $0x20] sm:$0xff] %v170_v4   ;;  %175 = vst [vmem:[%s3018_s26 + $0x28] sm:$0xff] %v174_v5   ;;  %v182_v7 = vld [vmem:[%s3013_s25 + $0x38] sm:$0xff]   ;;  %v186_v8 = vld [vmem:[%s3013_s25 + $0x40] sm:$0xff]  }
  0x14   : > { %179 = vst [vmem:[%s3018_s26 + $0x30] sm:$0xff] %v178_v6   ;;  %183 = vst [vmem:[%s3018_s26 + $0x38] sm:$0xff] %v182_v7   ;;  %v190_v9 = vld [vmem:[%s3013_s25 + $0x48] sm:$0xff]   ;;  %v194_v10 = vld [vmem:[%s3013_s25 + $0x50] sm:$0xff]  }
  0x15   : > { %187 = vst [vmem:[%s3018_s26 + $0x40] sm:$0xff] %v186_v8   ;;  %v198_v11 = vld [vmem:[%s3013_s25 + $0x58] sm:$0xff]   ;;  %191 = vst [vmem:[%s3018_s26 + $0x48] sm:$0xff] %v190_v9   ;;  %v202_v12 = vld [vmem:[%s3013_s25 + $0x60] sm:$0xff]  }
  0x16   : > { %195 = vst [vmem:[%s3018_s26 + $0x50] sm:$0xff] %v194_v10   ;;  %199 = vst [vmem:[%s3018_s26 + $0x58] sm:$0xff] %v198_v11   ;;  %v206_v13 = vld [vmem:[%s3013_s25 + $0x68] sm:$0xff]   ;;  %v210_v14 = vld [vmem:[%s3013_s25 + $0x70] sm:$0xf] }
  0x17   : > { %203 = vst [vmem:[%s3018_s26 + $0x60] sm:$0xff] %v202_v12   ;;  %207 = vst [vmem:[%s3018_s26 + $0x68] sm:$0xff] %v206_v13   ;;  %v212_v15 = vld [vmem:[%s3013_s25 + $0xe8] sm:$0xff]   ;;  %v216_v16 = vld [vmem:[%s3013_s25 + $0xf0] sm:$0xff]  }
  0x18   : > { %211 = vst [vmem:[%s3018_s26 + $0x70] sm:$0xf] %v210_v14  ;;  %v220_v17 = vld [vmem:[%s3013_s25 + $0xf8] sm:$0xff]   ;;  %213 = vst [vmem:[%s3018_s26 + $0x74] sm:$0xff] %v212_v15   ;;  %v224_v18 = vld [vmem:[%s3013_s25 + $0x100] sm:$0xff]  }
  0x19   : > { %217 = vst [vmem:[%s3018_s26 + $0x7c] sm:$0xff] %v216_v16   ;;  %221 = vst [vmem:[%s3018_s26 + $0x84] sm:$0xff] %v220_v17   ;;  %v228_v19 = vld [vmem:[%s3013_s25 + $0x108] sm:$0xff]   ;;  %v232_v20 = vld [vmem:[%s3013_s25 + $0x110] sm:$0xff]  }
  0x1a   : > { %225 = vst [vmem:[%s3018_s26 + $0x8c] sm:$0xff] %v224_v18   ;;  %229 = vst [vmem:[%s3018_s26 + $0x94] sm:$0xff] %v228_v19   ;;  %v236_v21 = vld [vmem:[%s3013_s25 + $0x118] sm:$0xff]   ;;  %v240_v22 = vld [vmem:[%s3013_s25 + $0x120] sm:$0xff]  }
  0x1b   : > { %233 = vst [vmem:[%s3018_s26 + $0x9c] sm:$0xff] %v232_v20   ;;  %v244_v23 = vld [vmem:[%s3013_s25 + $0x128] sm:$0xff]   ;;  %237 = vst [vmem:[%s3018_s26 + $0xa4] sm:$0xff] %v236_v21   ;;  %v248_v24 = vld [vmem:[%s3013_s25 + $0x130] sm:$0xff]  }
  0x1c   : > { %241 = vst [vmem:[%s3018_s26 + $0xac] sm:$0xff] %v240_v22   ;;  %245 = vst [vmem:[%s3018_s26 + $0xb4] sm:$0xff] %v244_v23   ;;  %v252_v25 = vld [vmem:[%s3013_s25 + $0x138] sm:$0xff]   ;;  %v256_v26 = vld [vmem:[%s3013_s25 + $0x140] sm:$0xff]  }
  0x1d   : > { %249 = vst [vmem:[%s3018_s26 + $0xbc] sm:$0xff] %v248_v24   ;;  %253 = vst [vmem:[%s3018_s26 + $0xc4] sm:$0xff] %v252_v25   ;;  %v260_v27 = vld [vmem:[%s3013_s25 + $0x148] sm:$0xff]   ;;  %v264_v28 = vld [vmem:[%s3013_s25 + $0x150] sm:$0xff]  }
  0x1e   : > { %257 = vst [vmem:[%s3018_s26 + $0xcc] sm:$0xff] %v256_v26   ;;  %v268_v29 = vld [vmem:[%s3013_s25 + $0x158] sm:$0xf]  ;;  %261 = vst [vmem:[%s3018_s26 + $0xd4] sm:$0xff] %v260_v27   ;;  %v270_v30 = vld [vmem:[%s3013_s25 + $0x1d0] sm:$0xff]  }
  0x1f   : > { %265 = vst [vmem:[%s3018_s26 + $0xdc] sm:$0xff] %v264_v28   ;;  %269 = vst [vmem:[%s3018_s26 + $0xe4] sm:$0xf] %v268_v29  ;;  %v274_v31 = vld [vmem:[%s3013_s25 + $0x1d8] sm:$0xff]   ;;  %v278_v32 = vld [vmem:[%s3013_s25 + $0x1e0] sm:$0xff]  }
  0x20   : > { %271 = vst [vmem:[%s3018_s26 + $0xe8] sm:$0xff] %v270_v30   ;;  %275 = vst [vmem:[%s3018_s26 + $0xf0] sm:$0xff] %v274_v31   ;;  %v282_v33 = vld [vmem:[%s3013_s25 + $0x1e8] sm:$0xff]   ;;  %v286_v34 = vld [vmem:[%s3013_s25 + $0x1f0] sm:$0xff]  }
  0x21   : > { %279 = vst [vmem:[%s3018_s26 + $0xf8] sm:$0xff] %v278_v32   ;;  %v290_v35 = vld [vmem:[%s3013_s25 + $0x1f8] sm:$0xff]   ;;  %283 = vst [vmem:[%s3018_s26 + $0x100] sm:$0xff] %v282_v33   ;;  %v294_v36 = vld [vmem:[%s3013_s25 + $0x200] sm:$0xff]  }
  0x22   : > { %287 = vst [vmem:[%s3018_s26 + $0x108] sm:$0xff] %v286_v34   ;;  %291 = vst [vmem:[%s3018_s26 + $0x110] sm:$0xff] %v290_v35   ;;  %v298_v37 = vld [vmem:[%s3013_s25 + $0x208] sm:$0xff]   ;;  %v302_v38 = vld [vmem:[%s3013_s25 + $0x210] sm:$0xff]  }
  0x23   : > { %295 = vst [vmem:[%s3018_s26 + $0x118] sm:$0xff] %v294_v36   ;;  %299 = vst [vmem:[%s3018_s26 + $0x120] sm:$0xff] %v298_v37   ;;  %v306_v39 = vld [vmem:[%s3013_s25 + $0x218] sm:$0xff]   ;;  %v310_v40 = vld [vmem:[%s3013_s25 + $0x220] sm:$0xff]  }
  0x24   : > { %303 = vst [vmem:[%s3018_s26 + $0x128] sm:$0xff] %v302_v38   ;;  %v314_v41 = vld [vmem:[%s3013_s25 + $0x228] sm:$0xff]   ;;  %307 = vst [vmem:[%s3018_s26 + $0x130] sm:$0xff] %v306_v39   ;;  %v318_v42 = vld [vmem:[%s3013_s25 + $0x230] sm:$0xff]  }
  0x25   : > { %311 = vst [vmem:[%s3018_s26 + $0x138] sm:$0xff] %v310_v40   ;;  %315 = vst [vmem:[%s3018_s26 + $0x140] sm:$0xff] %v314_v41   ;;  %v322_v43 = vld [vmem:[%s3013_s25 + $0x238] sm:$0xff]   ;;  %v326_v44 = vld [vmem:[%s3013_s25 + $0x240] sm:$0xf] }
  0x26   : > { %319 = vst [vmem:[%s3018_s26 + $0x148] sm:$0xff] %v318_v42   ;;  %323 = vst [vmem:[%s3018_s26 + $0x150] sm:$0xff] %v322_v43   ;;  %v328_v45 = vld [vmem:[%s3013_s25 + $0x2b8] sm:$0xff]   ;;  %v332_v46 = vld [vmem:[%s3013_s25 + $0x2c0] sm:$0xff]  }
  0x27   : > { %327 = vst [vmem:[%s3018_s26 + $0x158] sm:$0xf] %v326_v44  ;;  %v336_v47 = vld [vmem:[%s3013_s25 + $0x2c8] sm:$0xff]   ;;  %329 = vst [vmem:[%s3018_s26 + $0x15c] sm:$0xff] %v328_v45   ;;  %v340_v48 = vld [vmem:[%s3013_s25 + $0x2d0] sm:$0xff]  }
  0x28   : > { %333 = vst [vmem:[%s3018_s26 + $0x164] sm:$0xff] %v332_v46   ;;  %337 = vst [vmem:[%s3018_s26 + $0x16c] sm:$0xff] %v336_v47   ;;  %v344_v49 = vld [vmem:[%s3013_s25 + $0x2d8] sm:$0xff]   ;;  %v348_v50 = vld [vmem:[%s3013_s25 + $0x2e0] sm:$0xff]  }
  0x29   : > { %341 = vst [vmem:[%s3018_s26 + $0x174] sm:$0xff] %v340_v48   ;;  %345 = vst [vmem:[%s3018_s26 + $0x17c] sm:$0xff] %v344_v49   ;;  %v352_v51 = vld [vmem:[%s3013_s25 + $0x2e8] sm:$0xff]   ;;  %v356_v52 = vld [vmem:[%s3013_s25 + $0x2f0] sm:$0xff]  }
  0x2a   : > { %349 = vst [vmem:[%s3018_s26 + $0x184] sm:$0xff] %v348_v50   ;;  %v360_v53 = vld [vmem:[%s3013_s25 + $0x2f8] sm:$0xff]   ;;  %353 = vst [vmem:[%s3018_s26 + $0x18c] sm:$0xff] %v352_v51   ;;  %v364_v54 = vld [vmem:[%s3013_s25 + $0x300] sm:$0xff]  }
  0x2b   : > { %357 = vst [vmem:[%s3018_s26 + $0x194] sm:$0xff] %v356_v52   ;;  %361 = vst [vmem:[%s3018_s26 + $0x19c] sm:$0xff] %v360_v53   ;;  %v368_v55 = vld [vmem:[%s3013_s25 + $0x308] sm:$0xff]   ;;  %v372_v56 = vld [vmem:[%s3013_s25 + $0x310] sm:$0xff]  }
  0x2c   : > { %365 = vst [vmem:[%s3018_s26 + $0x1a4] sm:$0xff] %v364_v54   ;;  %369 = vst [vmem:[%s3018_s26 + $0x1ac] sm:$0xff] %v368_v55   ;;  %v376_v57 = vld [vmem:[%s3013_s25 + $0x318] sm:$0xff]   ;;  %v380_v58 = vld [vmem:[%s3013_s25 + $0x320] sm:$0xff]  }
  0x2d   : > { %373 = vst [vmem:[%s3018_s26 + $0x1b4] sm:$0xff] %v372_v56   ;;  %v384_v59 = vld [vmem:[%s3013_s25 + $0x328] sm:$0xf]  ;;  %377 = vst [vmem:[%s3018_s26 + $0x1bc] sm:$0xff] %v376_v57  }
  0x2e   : > { %381 = vst [vmem:[%s3018_s26 + $0x1c4] sm:$0xff] %v380_v58   ;;  %385 = vst [vmem:[%s3018_s26 + $0x1cc] sm:$0xf] %v384_v59 }
  0x2f PF: > { %p2258_p5 = scmp.ge.s32.totalorder %s2954_s14, 1  ;;  %p640_p6 = scmp.lt.s32.totalorder %s2954_s14, 3 }
  0x31   : > { %p641_p7 = pnand %p2258_p5, %p640_p6 }
  0x33   : > { %644 = sbr.rel (%p641_p7) target bundleno = 501 (0x1f5), region = 69 }
  0x38   : > { %vm833_vm0 = vcmask 1043456   ;;  %v2956_v60 = vmov 0.0   ;;  %v2871_v61 = vld [vmem:[%s3760_s1] sm:$0x1f]   ;;  %vm834_vm1 = vcmask 1044480   ;;  %s647_s29 = sand.u32 1, %s2946_s12  }
  0x39   : > { %2594 = vmatprep.subr.bf16.mxu0 %v2956_v60  ;;  %2656 = vmatprep.subr.bf16.mxu1 %v2956_v60  ;;  %v2957_v62 = vmov 65535   ;;  %vm2958_vm2 = vmmov 0   ;;  %s2843_s30 = smul.u32 464, %s647_s29  ;;  %vm787_vm3 = vcmask 72704   ;;  %vm2161_vm4 = vcmask 257024  }
  0x3a   : > { %v835_v63 = vsel %vm833_vm0, 4294967295, %v2957_v62  ;;  %2596 = vmatprep.mubr.msk.bf16.mxu0 %vm2958_vm2, %v2956_v60  ;;  %2658 = vmatprep.mubr.msk.bf16.mxu1 %vm2958_vm2, %v2956_v60  ;;  %s671_s5 = smul.u32 29, %s2253_s15 }
  0x3b   : > { %v836_v0 = vsel %vm834_vm1, %v835_v63, 0  ;;  %s3149_s4 = scalar_lea.vmem [#allocation2], %s2843_s30 }
  0x3c   : > { %v838_v1 = vand.u32 %v2871_v61, %v836_v0  ;;  %v2872_v2 = vld [vmem:[%s3149_s4] sm:$0xff]   ;;  %v2873_v3 = vld [vmem:[%s3149_s4 + $0x74] sm:$0xff]   ;;  %v2874_v4 = vld [vmem:[%s3149_s4 + $0x8] sm:$0xff]   ;;  %p672_p8 = scmp.lt.s32.totalorder %s671_s5, 57 }
  0x3d   : > { %v2875_v5 = vld [vmem:[%s3149_s4 + $0x7c] sm:$0xff]   ;;  %v2876_v6 = vld [vmem:[%s3149_s4 + $0x10] sm:$0xff]   ;;  %v2877_v7 = vld [vmem:[%s3149_s4 + $0x84] sm:$0xff]  }
  0x3e   : > { %2595 = vmatpush3.bf16.msra.mxu0 %v838_v1  ;;  %2657 = vmatpush3.bf16.msra.mxu1 %v838_v1  ;;  %v2878_v8 = vld [vmem:[%s3149_s4 + $0x18] sm:$0xff]   ;;  %v2879_v9 = vld [vmem:[%s3149_s4 + $0x8c] sm:$0xff]   ;;  %v2880_v10 = vld [vmem:[%s3149_s4 + $0x20] sm:$0xff]   ;;  %s3823_s5 = smov (!%p672_p8, %s671_s5), 57 }
  0x3f   : > { %2718 = vmatprep.subr.bf16.mxu0 %v2956_v60  ;;  %2780 = vmatprep.subr.bf16.mxu1 %v2956_v60  ;;  %v2881_v11 = vld [vmem:[%s3149_s4 + $0x94] sm:$0xff]   ;;  %v2882_v12 = vld [vmem:[%s3149_s4 + $0x28] sm:$0xff]   ;;  %v2883_v13 = vld [vmem:[%s3149_s4 + $0x9c] sm:$0xff]   ;;  %s2259_s8 = sshll.u32 %s3823_s5, 2 }
  0x40   : > { %v2884_v14 = vld [vmem:[%s3149_s4 + $0x30] sm:$0xff]   ;;  %v2885_v15 = vld [vmem:[%s3149_s4 + $0xa4] sm:$0xff]   ;;  %v2886_v16 = vld [vmem:[%s3149_s4 + $0x38] sm:$0xff]   ;;  %s3580_s11 = scalar_lea.vmem %s3762_s3, %s2259_s8 }
  0x41   : > { %2597 = vmatmul.mubr.msk.bf16.vlgmr.msra.gmra.mxu0 %vm787_vm3, %v2872_v2  ;;  %2659 = vmatmul.mubr.msk.bf16.vlgmr.msra.gmra.mxu1 %vm787_vm3, %v2873_v3  ;;  %v2887_v17 = vld [vmem:[%s3149_s4 + $0xac] sm:$0xff]   ;;  %v2888_v18 = vld [vmem:[%s3149_s4 + $0x40] sm:$0xff]   ;;  %v2889_v19 = vld [vmem:[%s3149_s4 + $0xb4] sm:$0xff]  }
  0x42   : > { %2719 = vmatpush3.bf16.msra.mxu0 %v838_v1  ;;  %2781 = vmatpush3.bf16.msra.mxu1 %v838_v1  ;;  %v2890_v20 = vld [vmem:[%s3149_s4 + $0x48] sm:$0xff]   ;;  %v2891_v21 = vld [vmem:[%s3149_s4 + $0xbc] sm:$0xff]   ;;  %v2892_v22 = vld [vmem:[%s3149_s4 + $0x50] sm:$0xff]  }
  0x43   : > { %2600 = vmatprep.mubr.msk.bf16.mxu0 %vm2958_vm2, %v2956_v60  ;;  %2662 = vmatprep.mubr.msk.bf16.mxu1 %vm2958_vm2, %v2956_v60  ;;  %v2893_v23 = vld [vmem:[%s3149_s4 + $0xc4] sm:$0xff]   ;;  %v2894_v24 = vld [vmem:[%s3149_s4 + $0x58] sm:$0xff]   ;;  %v2895_v25 = vld [vmem:[%s3149_s4 + $0xcc] sm:$0xff]  }
  0x44   : > { %v2896_v26 = vld [vmem:[%s3149_s4 + $0x60] sm:$0xff]   ;;  %v2897_v27 = vld [vmem:[%s3149_s4 + $0xd4] sm:$0xff]   ;;  %v2898_v28 = vld [vmem:[%s3149_s4 + $0x68] sm:$0xff]  }
  0x45   : > { %v2899_v29 = vld [vmem:[%s3149_s4 + $0xdc] sm:$0xff]   ;;  %v2900_v30 = vld [vmem:[%s3149_s4 + $0x70] ss:$0 sps:$4 sm:$0xff]   ;;  %v2901_v31 = vld [vmem:[%s3149_s4 + $0xe4] ss:$0 sps:$4 sm:$0xff]  }
  0x46   : > { %v2902_v32 = vld [vmem:[%s3149_s4 + $0xe8] sm:$0xff]   ;;  %v2903_v33 = vld [vmem:[%s3149_s4 + $0x15c] sm:$0xff]   ;;  %v2904_v34 = vld [vmem:[%s3149_s4 + $0xf0] sm:$0xff]  }
  0x47   : > { %v2905_v35 = vld [vmem:[%s3149_s4 + $0x164] sm:$0xff]   ;;  %v2906_v36 = vld [vmem:[%s3149_s4 + $0xf8] sm:$0xff]   ;;  %v2907_v37 = vld [vmem:[%s3149_s4 + $0x16c] sm:$0xff]  }
  0x48   : > { %v2908_v38 = vld [vmem:[%s3149_s4 + $0x100] sm:$0xff]   ;;  %v2909_v39 = vld [vmem:[%s3149_s4 + $0x174] sm:$0xff]   ;;  %v2910_v40 = vld [vmem:[%s3149_s4 + $0x108] sm:$0xff]  }
  0x49   : > { %2601 = vmatmul.mubr.msk.bf16.gmra.mxu0 %vm787_vm3, %v2874_v4  ;;  %2663 = vmatmul.mubr.msk.bf16.gmra.mxu1 %vm787_vm3, %v2875_v5  ;;  %v2911_v41 = vld [vmem:[%s3149_s4 + $0x17c] sm:$0xff]   ;;  %v2912_v42 = vld [vmem:[%s3149_s4 + $0x110] sm:$0xff]   ;;  %v2913_v43 = vld [vmem:[%s3149_s4 + $0x184] sm:$0xff]  }
  0x4a   : > { %2604 = vmatprep.mubr.msk.bf16.mxu0 %vm2958_vm2, %v2956_v60  ;;  %2666 = vmatprep.mubr.msk.bf16.mxu1 %vm2958_vm2, %v2956_v60  ;;  %v2914_v44 = vld [vmem:[%s3149_s4 + $0x118] sm:$0xff]   ;;  %v2915_v45 = vld [vmem:[%s3149_s4 + $0x18c] sm:$0xff]   ;;  %v2916_v46 = vld [vmem:[%s3149_s4 + $0x120] sm:$0xff]  }
  0x4b   : > { %v2917_v47 = vld [vmem:[%s3149_s4 + $0x194] sm:$0xff]   ;;  %v2918_v48 = vld [vmem:[%s3149_s4 + $0x128] sm:$0xff]   ;;  %v2919_v49 = vld [vmem:[%s3149_s4 + $0x19c] sm:$0xff]  }
  0x4c   : > { %v2920_v50 = vld [vmem:[%s3149_s4 + $0x130] sm:$0xff]   ;;  %v2921_v51 = vld [vmem:[%s3149_s4 + $0x1a4] sm:$0xff]   ;;  %v2922_v59 = vld [vmem:[%s3149_s4 + $0x138] sm:$0xff]  }
  0x4d   : > { %v2923_v61 = vld [vmem:[%s3149_s4 + $0x1ac] sm:$0xff]  }
  0x51   : > { %2605 = vmatmul.mubr.msk.bf16.gmra.mxu0 %vm787_vm3, %v2876_v6  ;;  %2667 = vmatmul.mubr.msk.bf16.gmra.mxu1 %vm787_vm3, %v2877_v7 }
  0x52   : > { %2608 = vmatprep.mubr.msk.bf16.mxu0 %vm2958_vm2, %v2956_v60  ;;  %2670 = vmatprep.mubr.msk.bf16.mxu1 %vm2958_vm2, %v2956_v60 }
  0x59   : > { %2609 = vmatmul.mubr.msk.bf16.gmra.mxu0 %vm787_vm3, %v2878_v8  ;;  %2671 = vmatmul.mubr.msk.bf16.gmra.mxu1 %vm787_vm3, %v2879_v9  ;;  %v2924_v8 = vld [vmem:[%s3149_s4 + $0x140] sm:$0xff]   ;;  %v2925_v9 = vld [vmem:[%s3149_s4 + $0x1b4] sm:$0xff]  }
  0x5a   : > { %2612 = vmatprep.mubr.msk.bf16.mxu0 %vm2958_vm2, %v2956_v60  ;;  %2674 = vmatprep.mubr.msk.bf16.mxu1 %vm2958_vm2, %v2956_v60 }
  0x61   : > { %2613 = vmatmul.mubr.msk.bf16.gmra.mxu0 %vm787_vm3, %v2880_v10  ;;  %2675 = vmatmul.mubr.msk.bf16.gmra.mxu1 %vm787_vm3, %v2881_v11 }
  0x62   : > { %2616 = vmatprep.mubr.msk.bf16.mxu0 %vm2958_vm2, %v2956_v60  ;;  %2678 = vmatprep.mubr.msk.bf16.mxu1 %vm2958_vm2, %v2956_v60 }
  0x69   : > { %2617 = vmatmul.mubr.msk.bf16.gmra.mxu0 %vm787_vm3, %v2882_v12  ;;  %2679 = vmatmul.mubr.msk.bf16.gmra.mxu1 %vm787_vm3, %v2883_v13 }
  0x6a   : > { %2620 = vmatprep.mubr.msk.bf16.mxu0 %vm2958_vm2, %v2956_v60  ;;  %2682 = vmatprep.mubr.msk.bf16.mxu1 %vm2958_vm2, %v2956_v60 }
  0x71   : > { %2621 = vmatmul.mubr.msk.bf16.gmra.mxu0 %vm787_vm3, %v2884_v14  ;;  %2683 = vmatmul.mubr.msk.bf16.gmra.mxu1 %vm787_vm3, %v2885_v15 }
  0x72   : > { %2624 = vmatprep.mubr.msk.bf16.mxu0 %vm2958_vm2, %v2956_v60  ;;  %2686 = vmatprep.mubr.msk.bf16.mxu1 %vm2958_vm2, %v2956_v60 }
  0x79   : > { %2625 = vmatmul.mubr.msk.bf16.gmra.mxu0 %vm787_vm3, %v2886_v16  ;;  %2687 = vmatmul.mubr.msk.bf16.gmra.mxu1 %vm787_vm3, %v2887_v17 }
  0x7a   : > { %2628 = vmatprep.mubr.msk.bf16.mxu0 %vm2958_vm2, %v2956_v60  ;;  %2690 = vmatprep.mubr.msk.bf16.mxu1 %vm2958_vm2, %v2956_v60 }
  0x81   : > { %2629 = vmatmul.mubr.msk.bf16.gmra.mxu0 %vm787_vm3, %v2888_v18  ;;  %2691 = vmatmul.mubr.msk.bf16.gmra.mxu1 %vm787_vm3, %v2889_v19 }
  0x82   : > { %2632 = vmatprep.mubr.msk.bf16.mxu0 %vm2958_vm2, %v2956_v60  ;;  %2694 = vmatprep.mubr.msk.bf16.mxu1 %vm2958_vm2, %v2956_v60 }
  0x89   : > { %2633 = vmatmul.mubr.msk.bf16.gmra.mxu0 %vm787_vm3, %v2890_v20  ;;  %2695 = vmatmul.mubr.msk.bf16.gmra.mxu1 %vm787_vm3, %v2891_v21  ;;  %v2926_v20 = vld [vmem:[%s3149_s4 + $0x148] sm:$0xff]   ;;  %v2927_v21 = vld [vmem:[%s3149_s4 + $0x1bc] sm:$0xff]  }
  0x8a   : > { %2636 = vmatprep.mubr.msk.bf16.mxu0 %vm2958_vm2, %v2956_v60  ;;  %2698 = vmatprep.mubr.msk.bf16.mxu1 %vm2958_vm2, %v2956_v60 }
  0x91   : > { %2637 = vmatmul.mubr.msk.bf16.gmra.mxu0 %vm787_vm3, %v2892_v22  ;;  %2699 = vmatmul.mubr.msk.bf16.gmra.mxu1 %vm787_vm3, %v2893_v23 }
  0x92   : > { %2640 = vmatprep.mubr.msk.bf16.mxu0 %vm2958_vm2, %v2956_v60  ;;  %2702 = vmatprep.mubr.msk.bf16.mxu1 %vm2958_vm2, %v2956_v60 }
  0x99   : > { %2641 = vmatmul.mubr.msk.bf16.gmra.mxu0 %vm787_vm3, %v2894_v24  ;;  %2703 = vmatmul.mubr.msk.bf16.gmra.mxu1 %vm787_vm3, %v2895_v25 }
  0x9a   : > { %2644 = vmatprep.mubr.msk.bf16.mxu0 %vm2958_vm2, %v2956_v60  ;;  %2706 = vmatprep.mubr.msk.bf16.mxu1 %vm2958_vm2, %v2956_v60 }
  0xa1   : > { %2645 = vmatmul.mubr.msk.bf16.gmra.mxu0 %vm787_vm3, %v2896_v26  ;;  %2707 = vmatmul.mubr.msk.bf16.gmra.mxu1 %vm787_vm3, %v2897_v27 }
  0xa2   : > { %2648 = vmatprep.mubr.msk.bf16.mxu0 %vm2958_vm2, %v2956_v60  ;;  %2710 = vmatprep.mubr.msk.bf16.mxu1 %vm2958_vm2, %v2956_v60 }
  0xa9   : > { %2649 = vmatmul.mubr.msk.bf16.gmra.mxu0 %vm787_vm3, %v2898_v28  ;;  %2711 = vmatmul.mubr.msk.bf16.gmra.mxu1 %vm787_vm3, %v2899_v29 }
  0xaa   : > { %2652 = vmatprep.mubr.msk.bf16.mxu0 %vm2958_vm2, %v2956_v60  ;;  %2714 = vmatprep.mubr.msk.bf16.mxu1 %vm2958_vm2, %v2956_v60 }
  0xb1   : > { %2653 = vmatmul.mubr.msk.bf16.gmra.mxu0 %vm787_vm3, %v2900_v30  ;;  %2715 = vmatmul.mubr.msk.bf16.gmra.mxu1 %vm787_vm3, %v2901_v31 }
  0xb2   : > { %2720 = vmatprep.mubr.msk.bf16.mxu0 %vm2958_vm2, %v2956_v60  ;;  %2782 = vmatprep.mubr.msk.bf16.mxu1 %vm2958_vm2, %v2956_v60 }
  0xb9   : > { %2721 = vmatmul.mubr.msk.bf16.vlgmr.msra.gmra.mxu0 %vm787_vm3, %v2902_v32  ;;  %2783 = vmatmul.mubr.msk.bf16.vlgmr.msra.gmra.mxu1 %vm787_vm3, %v2903_v33  ;;  %v2928_v32 = vld [vmem:[%s3149_s4 + $0x150] sm:$0xff]   ;;  %v2929_v33 = vld [vmem:[%s3149_s4 + $0x1c4] sm:$0xff]  }
  0xba   : > { %2724 = vmatprep.mubr.msk.bf16.mxu0 %vm2958_vm2, %v2956_v60  ;;  %2786 = vmatprep.mubr.msk.bf16.mxu1 %vm2958_vm2, %v2956_v60 }
  0xc1   : > { %2725 = vmatmul.mubr.msk.bf16.gmra.mxu0 %vm787_vm3, %v2904_v34  ;;  %2787 = vmatmul.mubr.msk.bf16.gmra.mxu1 %vm787_vm3, %v2905_v35 }
  0xc2   : > { %2728 = vmatprep.mubr.msk.bf16.mxu0 %vm2958_vm2, %v2956_v60  ;;  %2790 = vmatprep.mubr.msk.bf16.mxu1 %vm2958_vm2, %v2956_v60 }
  0xc9   : > { %2729 = vmatmul.mubr.msk.bf16.gmra.mxu0 %vm787_vm3, %v2906_v36  ;;  %2791 = vmatmul.mubr.msk.bf16.gmra.mxu1 %vm787_vm3, %v2907_v37 }
  0xca   : > { %2732 = vmatprep.mubr.msk.bf16.mxu0 %vm2958_vm2, %v2956_v60  ;;  %2794 = vmatprep.mubr.msk.bf16.mxu1 %vm2958_vm2, %v2956_v60 }
  0xd1   : > { %2733 = vmatmul.mubr.msk.bf16.gmra.mxu0 %vm787_vm3, %v2908_v38  ;;  %2795 = vmatmul.mubr.msk.bf16.gmra.mxu1 %vm787_vm3, %v2909_v39 }
  0xd2   : > { %2736 = vmatprep.mubr.msk.bf16.mxu0 %vm2958_vm2, %v2956_v60  ;;  %2798 = vmatprep.mubr.msk.bf16.mxu1 %vm2958_vm2, %v2956_v60 }
  0xd9   : > { %2737 = vmatmul.mubr.msk.bf16.gmra.mxu0 %vm787_vm3, %v2910_v40  ;;  %2799 = vmatmul.mubr.msk.bf16.gmra.mxu1 %vm787_vm3, %v2911_v41 }
  0xda   : > { %2740 = vmatprep.mubr.msk.bf16.mxu0 %vm2958_vm2, %v2956_v60  ;;  %2802 = vmatprep.mubr.msk.bf16.mxu1 %vm2958_vm2, %v2956_v60 }
  0xe1   : > { %2741 = vmatmul.mubr.msk.bf16.gmra.mxu0 %vm787_vm3, %v2912_v42  ;;  %2803 = vmatmul.mubr.msk.bf16.gmra.mxu1 %vm787_vm3, %v2913_v43 }
  0xe2   : > { %2744 = vmatprep.mubr.msk.bf16.mxu0 %vm2958_vm2, %v2956_v60  ;;  %2806 = vmatprep.mubr.msk.bf16.mxu1 %vm2958_vm2, %v2956_v60 }
  0xe9   : > { %2745 = vmatmul.mubr.msk.bf16.gmra.mxu0 %vm787_vm3, %v2914_v44  ;;  %2807 = vmatmul.mubr.msk.bf16.gmra.mxu1 %vm787_vm3, %v2915_v45  ;;  %v2930_v44 = vld [vmem:[%s3149_s4 + $0x158] ss:$0 sps:$4 sm:$0xff]   ;;  %v2931_v45 = vld [vmem:[%s3149_s4 + $0x1cc] ss:$0 sps:$4 sm:$0xff]  }
  0xea   : > { %2748 = vmatprep.mubr.msk.bf16.mxu0 %vm2958_vm2, %v2956_v60  ;;  %2810 = vmatprep.mubr.msk.bf16.mxu1 %vm2958_vm2, %v2956_v60 }
  0xf1   : > { %2749 = vmatmul.mubr.msk.bf16.gmra.mxu0 %vm787_vm3, %v2916_v46  ;;  %2811 = vmatmul.mubr.msk.bf16.gmra.mxu1 %vm787_vm3, %v2917_v47 }
  0xf2   : > { %2752 = vmatprep.mubr.msk.bf16.mxu0 %vm2958_vm2, %v2956_v60  ;;  %2814 = vmatprep.mubr.msk.bf16.mxu1 %vm2958_vm2, %v2956_v60 }
  0xf9   : > { %2753 = vmatmul.mubr.msk.bf16.gmra.mxu0 %vm787_vm3, %v2918_v48  ;;  %2815 = vmatmul.mubr.msk.bf16.gmra.mxu1 %vm787_vm3, %v2919_v49 }
  0xfa   : > { %2756 = vmatprep.mubr.msk.bf16.mxu0 %vm2958_vm2, %v2956_v60  ;;  %2818 = vmatprep.mubr.msk.bf16.mxu1 %vm2958_vm2, %v2956_v60 }
 0x101   : > { %v3347_v52 = vpop.f32.mrf.mxu0  ;;  %v3349_v53 = vpop.f32.mrf.mxu1  ;;  %2757 = vmatmul.mubr.msk.bf16.gmra.mxu0 %vm787_vm3, %v2920_v50  ;;  %2819 = vmatmul.mubr.msk.bf16.gmra.mxu1 %vm787_vm3, %v2921_v51 }
 0x102   : > { %2760 = vmatprep.mubr.msk.bf16.mxu0 %vm2958_vm2, %v2956_v60  ;;  %2822 = vmatprep.mubr.msk.bf16.mxu1 %vm2958_vm2, %v2956_v60 }
 0x103   : > { %v2598_v55 = vpop.f32.mrf.mxu0  ;;  %v2660_v56 = vpop.f32.mrf.mxu1 }
 0x105   : > { %v3359_v57 = vpop.f32.mrf.mxu0  ;;  %v3361_v58 = vpop.f32.mrf.mxu1 }
 0x107   : > { %v2599_v63 = vpop.f32.mrf.mxu0  ;;  %v2661_v0 = vpop.f32.mrf.mxu1 }
 0x109   : > { %v3367_v1 = vpop.f32.mrf.mxu0  ;;  %v3369_v2 = vpop.f32.mrf.mxu1  ;;  %2761 = vmatmul.mubr.msk.bf16.gmra.mxu0 %vm787_vm3, %v2922_v59  ;;  %2823 = vmatmul.mubr.msk.bf16.gmra.mxu1 %vm787_vm3, %v2923_v61 }
 0x10a   : > { %2764 = vmatprep.mubr.msk.bf16.mxu0 %vm2958_vm2, %v2956_v60  ;;  %2826 = vmatprep.mubr.msk.bf16.mxu1 %vm2958_vm2, %v2956_v60 }
 0x10b   : > { %v2602_v4 = vpop.f32.mrf.mxu0  ;;  %v2664_v5 = vpop.f32.mrf.mxu1 }
 0x10d   : > { %v3379_v6 = vpop.f32.mrf.mxu0  ;;  %v3381_v7 = vpop.f32.mrf.mxu1 }
 0x10f   : > { %v2603_v11 = vpop.f32.mrf.mxu0  ;;  %v2665_v12 = vpop.f32.mrf.mxu1 }
 0x111   : > { %v3387_v13 = vpop.f32.mrf.mxu0  ;;  %v3389_v14 = vpop.f32.mrf.mxu1  ;;  %2765 = vmatmul.mubr.msk.bf16.gmra.mxu0 %vm787_vm3, %v2924_v8  ;;  %2827 = vmatmul.mubr.msk.bf16.gmra.mxu1 %vm787_vm3, %v2925_v9 }
 0x112   : > { %2768 = vmatprep.mubr.msk.bf16.mxu0 %vm2958_vm2, %v2956_v60  ;;  %2830 = vmatprep.mubr.msk.bf16.mxu1 %vm2958_vm2, %v2956_v60 }
 0x113   : > { %v2606_v16 = vpop.f32.mrf.mxu0  ;;  %v2668_v17 = vpop.f32.mrf.mxu1 }
 0x115   : > { %v3399_v18 = vpop.f32.mrf.mxu0  ;;  %v3401_v19 = vpop.f32.mrf.mxu1 }
 0x117   : > { %v2607_v23 = vpop.f32.mrf.mxu0  ;;  %v2669_v24 = vpop.f32.mrf.mxu1 }
 0x119   : > { %v3407_v25 = vpop.f32.mrf.mxu0  ;;  %v3409_v26 = vpop.f32.mrf.mxu1  ;;  %2769 = vmatmul.mubr.msk.bf16.gmra.mxu0 %vm787_vm3, %v2926_v20  ;;  %2831 = vmatmul.mubr.msk.bf16.gmra.mxu1 %vm787_vm3, %v2927_v21 }
 0x11a   : > { %2772 = vmatprep.mubr.msk.bf16.mxu0 %vm2958_vm2, %v2956_v60  ;;  %2834 = vmatprep.mubr.msk.bf16.mxu1 %vm2958_vm2, %v2956_v60 }
 0x11b   : > { %v2610_v28 = vpop.f32.mrf.mxu0  ;;  %v2672_v29 = vpop.f32.mrf.mxu1 }
 0x11d   : > { %v3419_v30 = vpop.f32.mrf.mxu0  ;;  %v3421_v31 = vpop.f32.mrf.mxu1 }
 0x11f   : > { %v2611_v35 = vpop.f32.mrf.mxu0  ;;  %v2673_v36 = vpop.f32.mrf.mxu1 }
 0x121   : > { %v3427_v37 = vpop.f32.mrf.mxu0  ;;  %v3429_v38 = vpop.f32.mrf.mxu1  ;;  %2773 = vmatmul.mubr.msk.bf16.gmra.mxu0 %vm787_vm3, %v2928_v32  ;;  %2835 = vmatmul.mubr.msk.bf16.gmra.mxu1 %vm787_vm3, %v2929_v33 }
 0x122   : > { %2776 = vmatprep.mubr.msk.bf16.mxu0 %vm2958_vm2, %v2956_v60  ;;  %2838 = vmatprep.mubr.msk.bf16.mxu1 %vm2958_vm2, %v2956_v60 }
 0x123   : > { %v2614_v40 = vpop.f32.mrf.mxu0  ;;  %v2676_v41 = vpop.f32.mrf.mxu1 }
 0x125   : > { %v3439_v42 = vpop.f32.mrf.mxu0  ;;  %v3441_v43 = vpop.f32.mrf.mxu1 }
 0x127   : > { %v2615_v47 = vpop.f32.mrf.mxu0  ;;  %v2677_v48 = vpop.f32.mrf.mxu1 }
 0x129   : > { %v3447_v49 = vpop.f32.mrf.mxu0  ;;  %v3449_v50 = vpop.f32.mrf.mxu1  ;;  %2777 = vmatmul.mubr.msk.bf16.gmra.mxu0 %vm787_vm3, %v2930_v44  ;;  %2839 = vmatmul.mubr.msk.bf16.gmra.mxu1 %vm787_vm3, %v2931_v45 }
 0x12b   : > { %v2618_v51 = vpop.f32.mrf.mxu0  ;;  %v2680_v55 = vpop.f32.mrf.mxu1 }
 0x12d   : > { %v3455_v56 = vpop.f32.mrf.mxu0  ;;  %v3457_v59 = vpop.f32.mrf.mxu1 }
 0x12f   : > { %v2619_v63 = vpop.f32.mrf.mxu0  ;;  %v2681_v0 = vpop.f32.mrf.mxu1 }
 0x131   : > { %v3461_v4 = vpop.f32.mrf.mxu0  ;;  %v3463_v5 = vpop.f32.mrf.mxu1 }
 0x133   : > { %v2622_v9 = vpop.f32.mrf.mxu0  ;;  %v2684_v11 = vpop.f32.mrf.mxu1 }
 0x135   : > { %v3467_v12 = vpop.f32.mrf.mxu0  ;;  %v3469_v16 = vpop.f32.mrf.mxu1 }
 0x137   : > { %v2623_v20 = vpop.f32.mrf.mxu0  ;;  %v2685_v21 = vpop.f32.mrf.mxu1 }
 0x139   : > { %v3473_v23 = vpop.f32.mrf.mxu0  ;;  %v3475_v24 = vpop.f32.mrf.mxu1 }
 0x13b   : > { %v2626_v29 = vpop.f32.mrf.mxu0  ;;  %v2688_v32 = vpop.f32.mrf.mxu1 }
 0x13d   : > { %v3479_v33 = vpop.f32.mrf.mxu0  ;;  %v3481_v35 = vpop.f32.mrf.mxu1 }
 0x13f   : > { %v2627_v40 = vpop.f32.mrf.mxu0  ;;  %v2689_v41 = vpop.f32.mrf.mxu1 }
 0x141   : > { %v3485_v44 = vpop.f32.mrf.mxu0  ;;  %v3487_v45 = vpop.f32.mrf.mxu1 }
 0x143   : > { %v2630_v48 = vpop.f32.mrf.mxu0  ;;  %v2692_v51 = vpop.f32.mrf.mxu1 }
 0x145   : > { %v3491_v55 = vpop.f32.mrf.mxu0  ;;  %v3493_v63 = vpop.f32.mrf.mxu1 }
 0x147   : > { %v2631_v9 = vpop.f32.mrf.mxu0  ;;  %v2693_v11 = vpop.f32.mrf.mxu1 }
 0x149   : > { %v3497_v20 = vpop.f32.mrf.mxu0  ;;  %v3499_v21 = vpop.f32.mrf.mxu1 }
 0x14b   : > { %v2634_v32 = vpop.f32.mrf.mxu0  ;;  %v2696_v40 = vpop.f32.mrf.mxu1 }
 0x14d   : > { %v3503_v41 = vpop.f32.mrf.mxu0  ;;  %v3505_v48 = vpop.f32.mrf.mxu1 }
 0x14f   : > { %v2635_v47 = vpop.f32.mrf.mxu0  ;;  %v2697_v0 = vpop.f32.mrf.mxu1 }
 0x151   : > { %v3509_v9 = vpop.f32.mrf.mxu0  ;;  %v3511_v11 = vpop.f32.mrf.mxu1 }
 0x153   : > { %v2638_v28 = vpop.f32.mrf.mxu0  ;;  %v2700_v29 = vpop.f32.mrf.mxu1 }
 0x155   : > { %v3515_v32 = vpop.f32.mrf.mxu0  ;;  %v3517_v40 = vpop.f32.mrf.mxu1 }
 0x157   : > { %v2639_v8 = vpop.f32.mrf.mxu0  ;;  %v2701_v51 = vpop.f32.mrf.mxu1 }
 0x159   : > { %v3521_v47 = vpop.f32.mrf.mxu0  ;;  %v3523_v0 = vpop.f32.mrf.mxu1 }
 0x15b   : > { %v2642_v60 = vpop.f32.mrf.mxu0  ;;  %v2704_v36 = vpop.f32.mrf.mxu1 }
 0x15d   : > { %v3527_v28 = vpop.f32.mrf.mxu0  ;;  %v3529_v29 = vpop.f32.mrf.mxu1 }
 0x15f   : > { %v2643_v39 = vpop.f32.mrf.mxu0  ;;  %v2705_v17 = vpop.f32.mrf.mxu1 }
 0x161   : > { %v3533_v8 = vpop.f32.mrf.mxu0  ;;  %v3535_v51 = vpop.f32.mrf.mxu1 }
 0x162   : > { %3772 = vst [vmem:[#allocation3_spill] sm:$0xff] %v3535_v51 }
 0x163   : > { %v2646_v27 = vpop.f32.mrf.mxu0  ;;  %v2708_v61 = vpop.f32.mrf.mxu1 }
 0x165   : > { %v3539_v60 = vpop.f32.mrf.mxu0  ;;  %v3541_v36 = vpop.f32.mrf.mxu1 }
 0x166   : > { %3773 = vst [vmem:[#allocation4_spill] sm:$0xff] %v3539_v60  ;;  %3774 = vst [vmem:[#allocation5_spill] sm:$0xff] %v3541_v36  ;;  %v3571_v36 = vld [vmem:[%s3761_s2] ss:$0 sm:$0xff] }
 0x167   : > { %v2647_v46 = vpop.f32.mrf.mxu0  ;;  %v2709_v39 = vpop.f32.mrf.mxu1 }
 0x169   : > { %v3545_v17 = vpop.f32.mrf.mxu0  ;;  %v3547_v15 = vpop.f32.mrf.mxu1 }
 0x16a   : > { %3775 = vst [vmem:[#allocation6_spill] sm:$0xff] %v3545_v17  ;;  %3776 = vst [vmem:[#allocation7_spill] sm:$0xff] %v3547_v15 }
 0x16b   : > { %v2650_v34 = vpop.f32.mrf.mxu0  ;;  %v2712_v27 = vpop.f32.mrf.mxu1 }
 0x16d   : > { %v3551_v61 = vpop.f32.mrf.mxu0  ;;  %v3553_v3 = vpop.f32.mrf.mxu1 }
 0x16e   : > { %3777 = vst [vmem:[#allocation8_spill] sm:$0xff] %v3551_v61  ;;  %3778 = vst [vmem:[#allocation9_spill] sm:$0xff] %v3553_v3 }
 0x16f   : > { %v2651_v22 = vpop.f32.mrf.mxu0  ;;  %v2713_v54 = vpop.f32.mrf.mxu1 }
 0x170   : > { %v3781_v54 = vmax.f32 %v3347_v52, %v3349_v53 }
 0x171   : > { %v3557_v46 = vpop.f32.mrf.mxu0  ;;  %v3559_v39 = vpop.f32.mrf.mxu1 }
 0x172   : > { %3779 = vst [vmem:[#allocation10_spill] sm:$0xff] %v3557_v46  ;;  %3780 = vst [vmem:[#allocation11_spill] sm:$0xff] %v3559_v39 }
 0x173   : > { %v2654_v34 = vpop.f32.mrf.mxu0  ;;  %v2716_v27 = vpop.f32.mrf.mxu1 }
 0x175   : > { %v989_v10 = vpop.f32.mrf.mxu0  ;;  %v1289_v15 = vpop.f32.mrf.mxu1 }
 0x177   : > { %v2655_v17 = vpop.f32.mrf.mxu0  ;;  %v2717_v60 = vpop.f32.mrf.mxu1 }
 0x178   : > { %v3782_v17 = vmax.f32 %v3359_v57, %v3361_v58  ;;  %v3783_v57 = vmax.f32 %v3367_v1, %v3369_v2 }
 0x179   : > { %v1503_v51 = vpop.f32.mrf.mxu0  ;;  %v1832_v62 = vpop.f32.mrf.mxu1 }
 0x17a   : > { %v1621_v22 = vmax.f32 %v3781_v54, %v1503_v51 }
 0x17b   : > { %v2722_v39 = vpop.f32.mrf.mxu0  ;;  %v2784_v34 = vpop.f32.mrf.mxu1 }
 0x17c   : > { %v1950_v27 = vmax.f32 %v1621_v22, %v1832_v62 }
 0x17d   : > { %v1506_v10 = vpop.f32.mrf.mxu0  ;;  %v1835_v15 = vpop.f32.mrf.mxu1 }
 0x17e   : > { %v1986_v60 = vadd.f32 %v3571_v36, %v1950_v27  ;;  %v1622_v46 = vmax.f32 %v3782_v17, %v1506_v10 }
 0x17f   : > { %v2723_v52 = vpop.f32.mrf.mxu0  ;;  %v2785_v53 = vpop.f32.mrf.mxu1 }
 0x180   : > { %v2015_v51 = vmax.f32 %v1986_v60, 0.0  ;;  %v1951_v54 = vmax.f32 %v1622_v46, %v1835_v15 }
 0x181   : > { %v1511_v62 = vpop.f32.mrf.mxu0  ;;  %v1840_v39 = vpop.f32.mrf.mxu1 }
 0x182   : > { %v2501_v22 = vpack.c.bf16 %v2015_v51, %v2015_v51  ;;  %v1987_v34 = vadd.f32 %v3571_v36, %v1951_v54  ;;  %v1623_v58 = vmax.f32 %v3783_v57, %v1511_v62  ;;  %v3784_v51 = vmax.f32 %v3379_v6, %v3381_v7 }
 0x183   : > { %v2726_v27 = vpop.f32.mrf.mxu0  ;;  %v2788_v10 = vpop.f32.mrf.mxu1  ;;  %v3785_v57 = vmax.f32 %v3387_v13, %v3389_v14 }
 0x184   : > { %2162 = vst.msk [vmem:[%s3580_s11] sm:$0xf] %vm2161_vm4, %v2501_v22  ;;  %v2016_v46 = vmax.f32 %v1987_v34, 0.0  ;;  %v1952_v15 = vmax.f32 %v1623_v58, %v1840_v39 }
 0x185   : > { %v1514_v60 = vpop.f32.mrf.mxu0  ;;  %v1843_v17 = vpop.f32.mrf.mxu1 }
 0x186   : > { %v2502_v52 = vpack.c.bf16 %v2016_v46, %v2016_v46  ;;  %v1988_v53 = vadd.f32 %v3571_v36, %v1952_v15  ;;  %v1624_v54 = vmax.f32 %v3784_v51, %v1514_v60  ;;  %v3786_v60 = vmax.f32 %v3399_v18, %v3401_v19 }
 0x187   : > { %v2727_v3 = vpop.f32.mrf.mxu0  ;;  %v2789_v61 = vpop.f32.mrf.mxu1 }
 0x188   : > { %2163 = vst.msk [vmem:[%s3580_s11 + $0x4] sm:$0xf] %vm2161_vm4, %v2502_v52  ;;  %v2017_v1 = vmax.f32 %v1988_v53, 0.0  ;;  %v1953_v2 = vmax.f32 %v1624_v54, %v1843_v17 }
 0x189   : > { %v1519_v62 = vpop.f32.mrf.mxu0  ;;  %v1848_v22 = vpop.f32.mrf.mxu1 }
 0x18a   : > { %v2503_v39 = vpack.c.bf16 %v2017_v1, %v2017_v1  ;;  %v1989_v34 = vadd.f32 %v3571_v36, %v1953_v2  ;;  %v1625_v58 = vmax.f32 %v3785_v57, %v1519_v62  ;;  %v3787_v62 = vmax.f32 %v3407_v25, %v3409_v26 }
 0x18b   : > { %v2730_v27 = vpop.f32.mrf.mxu0  ;;  %v2792_v10 = vpop.f32.mrf.mxu1 }
 0x18c   : > { %2164 = vst.msk [vmem:[%s3580_s11 + $0x8] sm:$0xf] %vm2161_vm4, %v2503_v39  ;;  %v2018_v3 = vmax.f32 %v1989_v34, 0.0  ;;  %v1954_v6 = vmax.f32 %v1625_v58, %v1848_v22 }
 0x18d   : > { %v1522_v7 = vpop.f32.mrf.mxu0  ;;  %v1851_v61 = vpop.f32.mrf.mxu1 }
 0x18e   : > { %v2504_v46 = vpack.c.bf16 %v2018_v3, %v2018_v3  ;;  %v1990_v15 = vadd.f32 %v3571_v36, %v1954_v6  ;;  %v1626_v17 = vmax.f32 %v3786_v60, %v1522_v7  ;;  %v3788_v3 = vmax.f32 %v3419_v30, %v3421_v31 }
 0x18f   : > { %v2731_v52 = vpop.f32.mrf.mxu0  ;;  %v2793_v53 = vpop.f32.mrf.mxu1 }
 0x190   : > { %2165 = vst.msk [vmem:[%s3580_s11 + $0xc] sm:$0xf] %vm2161_vm4, %v2504_v46  ;;  %v2019_v13 = vmax.f32 %v1990_v15, 0.0  ;;  %v1955_v14 = vmax.f32 %v1626_v17, %v1851_v61  ;;  %v3789_v52 = vmax.f32 %v3427_v37, %v3429_v38 }
 0x191   : > { %v1527_v51 = vpop.f32.mrf.mxu0  ;;  %v1856_v54 = vpop.f32.mrf.mxu1 }
 0x192   : > { %v2505_v1 = vpack.c.bf16 %v2019_v13, %v2019_v13  ;;  %v1991_v2 = vadd.f32 %v3571_v36, %v1955_v14  ;;  %v1627_v22 = vmax.f32 %v3787_v62, %v1527_v51  ;;  %v3790_v62 = vmax.f32 %v3439_v42, %v3441_v43 }
 0x193   : > { %v2734_v39 = vpop.f32.mrf.mxu0  ;;  %v2796_v34 = vpop.f32.mrf.mxu1 }
 0x194   : > { %2166 = vst.msk [vmem:[%s3580_s11 + $0x10] sm:$0xf] %vm2161_vm4, %v2505_v1  ;;  %v2020_v18 = vmax.f32 %v1991_v2, 0.0  ;;  %v1956_v19 = vmax.f32 %v1627_v22, %v1856_v54 }
 0x195   : > { %v1530_v57 = vpop.f32.mrf.mxu0  ;;  %v1859_v58 = vpop.f32.mrf.mxu1 }
 0x196   : > { %v2506_v27 = vpack.c.bf16 %v2020_v18, %v2020_v18  ;;  %v1992_v10 = vadd.f32 %v3571_v36, %v1956_v19  ;;  %v1628_v6 = vmax.f32 %v3788_v3, %v1530_v57 }
 0x197   : > { %v2735_v7 = vpop.f32.mrf.mxu0  ;;  %v2797_v61 = vpop.f32.mrf.mxu1 }
 0x198   : > { %2167 = vst.msk [vmem:[%s3580_s11 + $0x14] sm:$0xf] %vm2161_vm4, %v2506_v27  ;;  %v2021_v25 = vmax.f32 %v1992_v10, 0.0  ;;  %v1957_v26 = vmax.f32 %v1628_v6, %v1859_v58  ;;  %v3791_v27 = vmax.f32 %v3447_v49, %v3449_v50 }
 0x199   : > { %v1535_v46 = vpop.f32.mrf.mxu0  ;;  %v1864_v15 = vpop.f32.mrf.mxu1 }
 0x19a   : > { %v2507_v60 = vpack.c.bf16 %v2021_v25, %v2021_v25  ;;  %v1993_v17 = vadd.f32 %v3571_v36, %v1957_v26  ;;  %v1629_v53 = vmax.f32 %v3789_v52, %v1535_v46  ;;  %v3792_v46 = vmax.f32 %v3455_v56, %v3457_v59 }
 0x19b   : > { %v2738_v13 = vpop.f32.mrf.mxu0  ;;  %v2800_v14 = vpop.f32.mrf.mxu1 }
 0x19c   : > { %2168 = vst.msk [vmem:[%s3580_s11 + $0x18] sm:$0xf] %vm2161_vm4, %v2507_v60  ;;  %v2022_v30 = vmax.f32 %v1993_v17, 0.0  ;;  %v1958_v31 = vmax.f32 %v1629_v53, %v1864_v15 }
 0x19d   : > { %v1538_v51 = vpop.f32.mrf.mxu0  ;;  %v1867_v54 = vpop.f32.mrf.mxu1 }
 0x19e   : > { %v2508_v1 = vpack.c.bf16 %v2022_v30, %v2022_v30  ;;  %v1994_v2 = vadd.f32 %v3571_v36, %v1958_v31  ;;  %v1630_v22 = vmax.f32 %v3790_v62, %v1538_v51  ;;  %v3793_v30 = vmax.f32 %v3461_v4, %v3463_v5 }
 0x19f   : > { %v2739_v39 = vpop.f32.mrf.mxu0  ;;  %v2801_v34 = vpop.f32.mrf.mxu1 }
 0x1a0   : > { %2169 = vst.msk [vmem:[%s3580_s11 + $0x1c] sm:$0xf] %vm2161_vm4, %v2508_v1  ;;  %v2023_v37 = vmax.f32 %v1994_v2, 0.0  ;;  %v1959_v38 = vmax.f32 %v1630_v22, %v1867_v54  ;;  %v3794_v39 = vmax.f32 %v3467_v12, %v3469_v16 }
 0x1a1   : > { %v1543_v18 = vpop.f32.mrf.mxu0  ;;  %v1872_v19 = vpop.f32.mrf.mxu1 }
 0x1a2   : > { %v2509_v57 = vpack.c.bf16 %v2023_v37, %v2023_v37  ;;  %v1995_v58 = vadd.f32 %v3571_v36, %v1959_v38  ;;  %v1631_v10 = vmax.f32 %v3791_v27, %v1543_v18  ;;  %v3795_v27 = vmax.f32 %v3473_v23, %v3475_v24 }
 0x1a3   : > { %v2742_v3 = vpop.f32.mrf.mxu0  ;;  %v2804_v6 = vpop.f32.mrf.mxu1 }
 0x1a4   : > { %2170 = vst.msk [vmem:[%s3580_s11 + $0x20] sm:$0xf] %vm2161_vm4, %v2509_v57  ;;  %v2024_v42 = vmax.f32 %v1995_v58, 0.0  ;;  %v1960_v43 = vmax.f32 %v1631_v10, %v1872_v19 }
 0x1a5   : > { %v1546_v7 = vpop.f32.mrf.mxu0  ;;  %v1875_v61 = vpop.f32.mrf.mxu1 }
 0x1a6   : > { %v2510_v25 = vpack.c.bf16 %v2024_v42, %v2024_v42  ;;  %v1996_v26 = vadd.f32 %v3571_v36, %v1960_v43  ;;  %v1632_v15 = vmax.f32 %v3792_v46, %v1546_v7 }
 0x1a7   : > { %v2743_v60 = vpop.f32.mrf.mxu0  ;;  %v2805_v17 = vpop.f32.mrf.mxu1 }
 0x1a8   : > { %2171 = vst.msk [vmem:[%s3580_s11 + $0x24] sm:$0xf] %vm2161_vm4, %v2510_v25  ;;  %v2025_v49 = vmax.f32 %v1996_v26, 0.0  ;;  %v1961_v50 = vmax.f32 %v1632_v15, %v1875_v61  ;;  %v3796_v25 = vmax.f32 %v3479_v33, %v3481_v35 }
 0x1a9   : > { %v1551_v52 = vpop.f32.mrf.mxu0  ;;  %v1880_v53 = vpop.f32.mrf.mxu1 }
 0x1aa   : > { %v2511_v13 = vpack.c.bf16 %v2025_v49, %v2025_v49  ;;  %v1997_v14 = vadd.f32 %v3571_v36, %v1961_v50  ;;  %v1633_v31 = vmax.f32 %v3793_v30, %v1551_v52  ;;  %v3797_v52 = vmax.f32 %v3485_v44, %v3487_v45 }
 0x1ab   : > { %v2746_v51 = vpop.f32.mrf.mxu0  ;;  %v2808_v54 = vpop.f32.mrf.mxu1 }
 0x1ac   : > { %2172 = vst.msk [vmem:[%s3580_s11 + $0x28] sm:$0xf] %vm2161_vm4, %v2511_v13  ;;  %v2026_v56 = vmax.f32 %v1997_v14, 0.0  ;;  %v1962_v59 = vmax.f32 %v1633_v31, %v1880_v53 }
 0x1ad   : > { %v1554_v1 = vpop.f32.mrf.mxu0  ;;  %v1883_v2 = vpop.f32.mrf.mxu1 }
 0x1ae   : > { %v2512_v62 = vpack.c.bf16 %v2026_v56, %v2026_v56  ;;  %v1998_v22 = vadd.f32 %v3571_v36, %v1962_v59  ;;  %v1634_v34 = vmax.f32 %v3794_v39, %v1554_v1  ;;  %v3798_v56 = vmax.f32 %v3491_v55, %v3493_v63 }
 0x1af   : > { %v2747_v37 = vpop.f32.mrf.mxu0  ;;  %v2809_v38 = vpop.f32.mrf.mxu1 }
 0x1b0   : > { %2173 = vst.msk [vmem:[%s3580_s11 + $0x2c] sm:$0xf] %vm2161_vm4, %v2512_v62  ;;  %v2027_v4 = vmax.f32 %v1998_v22, 0.0  ;;  %v1963_v5 = vmax.f32 %v1634_v34, %v1883_v2  ;;  %v3799_v37 = vmax.f32 %v3497_v20, %v3499_v21 }
 0x1b1   : > { %v1559_v18 = vpop.f32.mrf.mxu0  ;;  %v1888_v19 = vpop.f32.mrf.mxu1 }
 0x1b2   : > { %v2513_v57 = vpack.c.bf16 %v2027_v4, %v2027_v4  ;;  %v1999_v58 = vadd.f32 %v3571_v36, %v1963_v5  ;;  %v1635_v10 = vmax.f32 %v3795_v27, %v1559_v18  ;;  %v3800_v27 = vmax.f32 %v3503_v41, %v3505_v48 }
 0x1b3   : > { %v2750_v3 = vpop.f32.mrf.mxu0  ;;  %v2812_v6 = vpop.f32.mrf.mxu1 }
 0x1b4   : > { %2174 = vst.msk [vmem:[%s3580_s11 + $0x30] sm:$0xf] %vm2161_vm4, %v2513_v57  ;;  %v2028_v12 = vmax.f32 %v1999_v58, 0.0  ;;  %v1964_v16 = vmax.f32 %v1635_v10, %v1888_v19 }
 0x1b5   : > { %v1562_v42 = vpop.f32.mrf.mxu0  ;;  %v1891_v43 = vpop.f32.mrf.mxu1 }
 0x1b6   : > { %v2514_v7 = vpack.c.bf16 %v2028_v12, %v2028_v12  ;;  %v2000_v61 = vadd.f32 %v3571_v36, %v1964_v16  ;;  %v1636_v26 = vmax.f32 %v3796_v25, %v1562_v42 }
 0x1b7   : > { %v2751_v46 = vpop.f32.mrf.mxu0  ;;  %v2813_v15 = vpop.f32.mrf.mxu1 }
 0x1b8   : > { %2175 = vst.msk [vmem:[%s3580_s11 + $0x34] sm:$0xf] %vm2161_vm4, %v2514_v7  ;;  %v2029_v23 = vmax.f32 %v2000_v61, 0.0  ;;  %v1965_v24 = vmax.f32 %v1636_v26, %v1891_v43  ;;  %v3801_v7 = vmax.f32 %v3509_v9, %v3511_v11 }
 0x1b9   : > { %v1567_v60 = vpop.f32.mrf.mxu0  ;;  %v1896_v17 = vpop.f32.mrf.mxu1 }
 0x1ba   : > { %v2515_v49 = vpack.c.bf16 %v2029_v23, %v2029_v23  ;;  %v2001_v50 = vadd.f32 %v3571_v36, %v1965_v24  ;;  %v1637_v53 = vmax.f32 %v3797_v52, %v1567_v60  ;;  %v3802_v60 = vmax.f32 %v3515_v32, %v3517_v40 }
 0x1bb   : > { %v2754_v13 = vpop.f32.mrf.mxu0  ;;  %v2816_v14 = vpop.f32.mrf.mxu1 }
 0x1bc   : > { %2176 = vst.msk [vmem:[%s3580_s11 + $0x38] sm:$0xf] %vm2161_vm4, %v2515_v49  ;;  %v2030_v33 = vmax.f32 %v2001_v50, 0.0  ;;  %v1966_v35 = vmax.f32 %v1637_v53, %v1896_v17 }
 0x1bd   : > { %v1570_v30 = vpop.f32.mrf.mxu0  ;;  %v1899_v31 = vpop.f32.mrf.mxu1 }
 0x1be   : > { %v2516_v51 = vpack.c.bf16 %v2030_v33, %v2030_v33  ;;  %v2002_v54 = vadd.f32 %v3571_v36, %v1966_v35  ;;  %v1638_v59 = vmax.f32 %v3798_v56, %v1570_v30  ;;  %v3803_v33 = vmax.f32 %v3521_v47, %v3523_v0 }
 0x1bf   : > { %v2755_v1 = vpop.f32.mrf.mxu0  ;;  %v2817_v2 = vpop.f32.mrf.mxu1 }
 0x1c0   : > { %2177 = vst.msk [vmem:[%s3580_s11 + $0x3c] sm:$0xf] %vm2161_vm4, %v2516_v51  ;;  %v2031_v44 = vmax.f32 %v2002_v54, 0.0  ;;  %v1967_v45 = vmax.f32 %v1638_v59, %v1899_v31  ;;  %v3804_v1 = vmax.f32 %v3527_v28, %v3529_v29 }
 0x1c1   : > { %v1575_v62 = vpop.f32.mrf.mxu0  ;;  %v1904_v22 = vpop.f32.mrf.mxu1 }
 0x1c2   : > { %v2517_v39 = vpack.c.bf16 %v2031_v44, %v2031_v44  ;;  %v2003_v34 = vadd.f32 %v3571_v36, %v1967_v45  ;;  %v1639_v38 = vmax.f32 %v3799_v37, %v1575_v62  ;;  %v3805_v37 = vld [vmem:[#allocation3_spill] sm:$0xff] }
 0x1c3   : > { %v2758_v4 = vpop.f32.mrf.mxu0  ;;  %v2820_v5 = vpop.f32.mrf.mxu1 }
 0x1c4   : > { %2178 = vst.msk [vmem:[%s3580_s11 + $0x40] sm:$0xf] %vm2161_vm4, %v2517_v39  ;;  %v2032_v55 = vmax.f32 %v2003_v34, 0.0  ;;  %v1968_v63 = vmax.f32 %v1639_v38, %v1904_v22  ;;  %v3806_v38 = vmax.f32 %v3533_v8, %v3805_v37 }
 0x1c5   : > { %v1578_v18 = vpop.f32.mrf.mxu0  ;;  %v1907_v19 = vpop.f32.mrf.mxu1 }
 0x1c6   : > { %v2518_v57 = vpack.c.bf16 %v2032_v55, %v2032_v55  ;;  %v2004_v58 = vadd.f32 %v3571_v36, %v1968_v63  ;;  %v1640_v10 = vmax.f32 %v3800_v27, %v1578_v18  ;;  %v3808_v27 = vld [vmem:[#allocation5_spill] sm:$0xff] }
 0x1c7   : > { %v2759_v3 = vpop.f32.mrf.mxu0  ;;  %v2821_v6 = vpop.f32.mrf.mxu1 }
 0x1c8   : > { %2179 = vst.msk [vmem:[%s3580_s11 + $0x44] sm:$0xf] %vm2161_vm4, %v2518_v57  ;;  %v2033_v20 = vmax.f32 %v2004_v58, 0.0  ;;  %v1969_v21 = vmax.f32 %v1640_v10, %v1907_v19  ;;  %v3807_v58 = vld [vmem:[#allocation4_spill] sm:$0xff] }
 0x1c9   : > { %v1583_v12 = vpop.f32.mrf.mxu0  ;;  %v1912_v16 = vpop.f32.mrf.mxu1  ;;  %v3809_v10 = vmax.f32 %v3807_v58, %v3808_v27 }
 0x1ca   : > { %v2519_v42 = vpack.c.bf16 %v2033_v20, %v2033_v20  ;;  %v2005_v43 = vadd.f32 %v3571_v36, %v1969_v21  ;;  %v1641_v61 = vmax.f32 %v3801_v7, %v1583_v12  ;;  %v3810_v7 = vld [vmem:[#allocation6_spill] sm:$0xff] }
 0x1cb   : > { %v2762_v25 = vpop.f32.mrf.mxu0  ;;  %v2824_v26 = vpop.f32.mrf.mxu1 }
 0x1cc   : > { %2180 = vst.msk [vmem:[%s3580_s11 + $0x48] sm:$0xf] %vm2161_vm4, %v2519_v42  ;;  %v2034_v41 = vmax.f32 %v2005_v43, 0.0  ;;  %v1970_v48 = vmax.f32 %v1641_v61, %v1912_v16  ;;  %v3811_v61 = vld [vmem:[#allocation7_spill] sm:$0xff] }
 0x1cd   : > { %v1586_v46 = vpop.f32.mrf.mxu0  ;;  %v1915_v15 = vpop.f32.mrf.mxu1  ;;  %v3812_v25 = vmax.f32 %v3810_v7, %v3811_v61 }
 0x1ce   : > { %v2520_v23 = vpack.c.bf16 %v2034_v41, %v2034_v41  ;;  %v2006_v24 = vadd.f32 %v3571_v36, %v1970_v48  ;;  %v1642_v17 = vmax.f32 %v3802_v60, %v1586_v46 }
 0x1cf   : > { %v2763_v49 = vpop.f32.mrf.mxu0  ;;  %v2825_v50 = vpop.f32.mrf.mxu1 }
 0x1d0   : > { %2181 = vst.msk [vmem:[%s3580_s11 + $0x4c] sm:$0xf] %vm2161_vm4, %v2520_v23  ;;  %v2035_v9 = vmax.f32 %v2006_v24, 0.0  ;;  %v1971_v11 = vmax.f32 %v1642_v17, %v1915_v15  ;;  %v3813_v49 = vld [vmem:[#allocation8_spill] sm:$0xff]  ;;  %v3814_v50 = vld [vmem:[#allocation9_spill] sm:$0xff] }
 0x1d1   : > { %v1591_v52 = vpop.f32.mrf.mxu0  ;;  %v1920_v53 = vpop.f32.mrf.mxu1 }
 0x1d2   : > { %v2521_v13 = vpack.c.bf16 %v2035_v9, %v2035_v9  ;;  %v2007_v14 = vadd.f32 %v3571_v36, %v1971_v11  ;;  %v1643_v35 = vmax.f32 %v3803_v33, %v1591_v52  ;;  %v3815_v9 = vmax.f32 %v3813_v49, %v3814_v50 }
 0x1d3   : > { %v2766_v30 = vpop.f32.mrf.mxu0  ;;  %v2828_v31 = vpop.f32.mrf.mxu1 }
 0x1d4   : > { %2182 = vst.msk [vmem:[%s3580_s11 + $0x50] sm:$0xf] %vm2161_vm4, %v2521_v13  ;;  %v2036_v32 = vmax.f32 %v2007_v14, 0.0  ;;  %v1972_v40 = vmax.f32 %v1643_v35, %v1920_v53 }
 0x1d5   : > { %v1594_v51 = vpop.f32.mrf.mxu0  ;;  %v1923_v54 = vpop.f32.mrf.mxu1 }
 0x1d6   : > { %v2522_v56 = vpack.c.bf16 %v2036_v32, %v2036_v32  ;;  %v2008_v59 = vadd.f32 %v3571_v36, %v1972_v40  ;;  %v1644_v2 = vmax.f32 %v3804_v1, %v1594_v51  ;;  %v3816_v32 = vld [vmem:[#allocation10_spill] sm:$0xff]  ;;  %v3817_v40 = vld [vmem:[#allocation11_spill] sm:$0xff] }
 0x1d7   : > { %v2767_v44 = vpop.f32.mrf.mxu0  ;;  %v2829_v45 = vpop.f32.mrf.mxu1  ;;  %v3818_v51 = vmax.f32 %v3816_v32, %v3817_v40 }
 0x1d8   : > { %2183 = vst.msk [vmem:[%s3580_s11 + $0x54] sm:$0xf] %vm2161_vm4, %v2522_v56  ;;  %v2037_v47 = vmax.f32 %v2008_v59, 0.0  ;;  %v1973_v0 = vmax.f32 %v1644_v2, %v1923_v54 }
 0x1d9   : > { %v1599_v62 = vpop.f32.mrf.mxu0  ;;  %v1928_v22 = vpop.f32.mrf.mxu1 }
 0x1da   : > { %v2523_v39 = vpack.c.bf16 %v2037_v47, %v2037_v47  ;;  %v2009_v34 = vadd.f32 %v3571_v36, %v1973_v0  ;;  %v1645_v4 = vmax.f32 %v3806_v38, %v1599_v62 }
 0x1db   : > { %v2770_v5 = vpop.f32.mrf.mxu0  ;;  %v2832_v55 = vpop.f32.mrf.mxu1 }
 0x1dc   : > { %2184 = vst.msk [vmem:[%s3580_s11 + $0x58] sm:$0xf] %vm2161_vm4, %v2523_v39  ;;  %v2038_v28 = vmax.f32 %v2009_v34, 0.0  ;;  %v1974_v29 = vmax.f32 %v1645_v4, %v1928_v22 }
 0x1dd   : > { %v1602_v63 = vpop.f32.mrf.mxu0  ;;  %v1931_v18 = vpop.f32.mrf.mxu1 }
 0x1de   : > { %v2524_v19 = vpack.c.bf16 %v2038_v28, %v2038_v28  ;;  %v2010_v57 = vadd.f32 %v3571_v36, %v1974_v29  ;;  %v1646_v3 = vmax.f32 %v3809_v10, %v1602_v63 }
 0x1df   : > { %v2771_v6 = vpop.f32.mrf.mxu0  ;;  %v2833_v20 = vpop.f32.mrf.mxu1 }
 0x1e0   : > { %2185 = vst.msk [vmem:[%s3580_s11 + $0x5c] sm:$0xf] %vm2161_vm4, %v2524_v19  ;;  %v2039_v8 = vmax.f32 %v2010_v57, 0.0  ;;  %v1975_v21 = vmax.f32 %v1646_v3, %v1931_v18 }
 0x1e1   : > { %v1607_v12 = vpop.f32.mrf.mxu0  ;;  %v1936_v16 = vpop.f32.mrf.mxu1 }
 0x1e2   : > { %v2525_v42 = vpack.c.bf16 %v2039_v8, %v2039_v8  ;;  %v2011_v43 = vadd.f32 %v3571_v36, %v1975_v21  ;;  %v1647_v26 = vmax.f32 %v3812_v25, %v1607_v12 }
 0x1e3   : > { %v2774_v41 = vpop.f32.mrf.mxu0  ;;  %v2836_v48 = vpop.f32.mrf.mxu1 }
 0x1e4   : > { %2186 = vst.msk [vmem:[%s3580_s11 + $0x60] sm:$0xf] %vm2161_vm4, %v2525_v42  ;;  %v2040_v46 = vmax.f32 %v2011_v43, 0.0  ;;  %v1976_v15 = vmax.f32 %v1647_v26, %v1936_v16 }
 0x1e5   : > { %v1610_v23 = vpop.f32.mrf.mxu0  ;;  %v1939_v24 = vpop.f32.mrf.mxu1 }
 0x1e6   : > { %v2526_v60 = vpack.c.bf16 %v2040_v46, %v2040_v46  ;;  %v2012_v17 = vadd.f32 %v3571_v36, %v1976_v15  ;;  %v1648_v11 = vmax.f32 %v3815_v9, %v1610_v23 }
 0x1e7   : > { %v2775_v52 = vpop.f32.mrf.mxu0  ;;  %v2837_v53 = vpop.f32.mrf.mxu1 }
 0x1e8   : > { %2187 = vst.msk [vmem:[%s3580_s11 + $0x64] sm:$0xf] %vm2161_vm4, %v2526_v60  ;;  %v2041_v13 = vmax.f32 %v2012_v17, 0.0  ;;  %v1977_v14 = vmax.f32 %v1648_v11, %v1939_v24 }
 0x1e9   : > { %v1615_v33 = vpop.f32.mrf.mxu0  ;;  %v1944_v35 = vpop.f32.mrf.mxu1 }
 0x1ea   : > { %v2527_v30 = vpack.c.bf16 %v2041_v13, %v2041_v13  ;;  %v2013_v31 = vadd.f32 %v3571_v36, %v1977_v14  ;;  %v1649_v54 = vmax.f32 %v3818_v51, %v1615_v33 }
 0x1eb   : > { %v2778_v56 = vpop.f32.mrf.mxu0  ;;  %v2840_v59 = vpop.f32.mrf.mxu1 }
 0x1ec   : > { %2188 = vst.msk [vmem:[%s3580_s11 + $0x68] sm:$0xf] %vm2161_vm4, %v2527_v30  ;;  %v2042_v1 = vmax.f32 %v2013_v31, 0.0  ;;  %v1978_v2 = vmax.f32 %v1649_v54, %v1944_v35 }
 0x1ed   : > { %v1618_v44 = vpop.f32.mrf.mxu0  ;;  %v1947_v45 = vpop.f32.mrf.mxu1 }
 0x1ee   : > { %v2528_v47 = vpack.c.bf16 %v2042_v1, %v2042_v1  ;;  %v2014_v0 = vadd.f32 %v3571_v36, %v1978_v2 }
 0x1ef   : > { %v2779_v62 = vpop.f32.mrf.mxu0  ;;  %v2841_v22 = vpop.f32.mrf.mxu1 }
 0x1f0   : > { %2189 = vst.msk [vmem:[%s3580_s11 + $0x6c] sm:$0xf] %vm2161_vm4, %v2528_v47  ;;  %v2043_v39 = vmax.f32 %v2014_v0, 0.0 }
 0x1f2   : > { %v2529_v34 = vpack.c.bf16 %v2043_v39, %v2043_v39 }
 0x1f4   : > { %2190 = vst.msk [vmem:[%s3580_s11 + $0x70] sm:$0xf] %vm2161_vm4, %v2529_v34 }
 0x1f5 PF: > { %p10_p9 = scmp.ge.s32.totalorder %s2996_s16, 4   ;;  %s3819_s12 = smov %s2950_s13 }
 0x1f6   : > { %s3820_s13 = smov %s3005_s19  ;;  %s3821_s14 = smov %s2996_s16 }
 0x1f7   :  { %12 = sbr.rel (!%p10_p9) target bundleno = 2 (0x2), region = 111 }

// kernel: simple_cnn_forward.4
= control target key start
LH: loop header
LB: loop body
LE: loop exit
PB: predicated region body
PF: predicated region fallthrough
CT: control target
= control target key end

     0   :  { %s1754_s12 = smov 0   ;;  %s1756_s13 = smov 0   ;;  %s2197_s0 = inlined_call_operand.vmem [shape: bf16[4,80,288], index: 0, kind: input, shape index: {}]   ;;  %s2198_s1 = inlined_call_operand.vmem [shape: bf16[288,64], index: 1, kind: input, shape index: {}]   ;;  %s2199_s2 = inlined_call_operand.vmem [shape: f32[1,64], index: 2, kind: input, shape index: {}]   ;;  %s2200_s3 = inlined_call_operand.vmem [shape: bf16[80,64], index: 3, kind: output, shape index: {}]  }
   0x1   :  { %s1758_s14 = smov 0  }
   0x2 LB: > { %s1240_s15 = sadd.s32 4294967295, %s1730_s14   ;;  %s1771_s16 = sadd.s32 1, %s1730_s14   ;;  %s1730_s14 = sphi %s1758_s14, %s2203_s14   ;;  %s1726_s13 = sphi %s1756_s13, %s2202_s13   ;;  %s1722_s12 = sphi %s1754_s12, %s2201_s12  }
   0x3   : > { %s17_s17 = ssub.s32 %s1730_s14, %s1771_s16  ;;  %s20_s18 = sadd.s32 1, %s1726_s13 }
   0x4   : > { %p18_p0 = scmp.eq.s32.totalorder %s17_s17, 0  ;;  %p27_p1 = scmp.ne.s32.totalorder %s1726_s13, %s1722_s12 }
   0x5   : > { %p28_p2 = scmp.eq.s32.totalorder %s1730_s14, 0  ;;  %p1243_p4 = scmp.ge.s32.totalorder %s1730_s14, 2 }
   0x6   : > { %s1780_s19 = scalar_select %p18_p0, %s1726_s13, %s20_s18  }
   0x7   : > { %p29_p3 = por %p28_p2, %p27_p1  ;;  %127 = sbr.rel (%p1243_p4) target bundleno = 41 (0x29), region = 24 }
   0xc   : > { %130 = sbr.rel (!%p29_p3) target bundleno = 41 (0x29), region = 28  ;;  %s132_s20 = sand.u32 (%p29_p3), 1, %s1726_s13  }
   0xd   : > { %s1616_s21 = smul.u32 (%p29_p3), 240, %s132_s20 }
   0xe   : > { %s1619_s22 = smul.u32 (%p29_p3), 60, %s1730_s14 }
   0xf   : > { %s1793_s26 = scalar_lea.vmem (%p29_p3), [#allocation2], %s1616_s21 }
  0x10   : > { %s1788_s25 = scalar_lea.vmem (%p29_p3), %s2197_s0, %s1619_s22 }
  0x11   : > { %v153_v0 = vld [vmem:[%s1788_s25] sm:$0xff]  ;;  %v155_v1 = vld [vmem:[%s1788_s25 + $0xc] sm:$0xff]  ;;  %v157_v2 = vld [vmem:[%s1788_s25 + $0x18] sm:$0xff] }
  0x12   : > { %154 = vst [vmem:[%s1793_s26] sm:$0xff] %v153_v0  ;;  %156 = vst [vmem:[%s1793_s26 + $0xc] sm:$0xff] %v155_v1  ;;  %v159_v3 = vld [vmem:[%s1788_s25 + $0x24] sm:$0xff]  ;;  %v161_v4 = vld [vmem:[%s1788_s25 + $0x30] sm:$0xff] }
  0x13   : > { %158 = vst [vmem:[%s1793_s26 + $0x18] sm:$0xff] %v157_v2  ;;  %v163_v5 = vld [vmem:[%s1788_s25 + $0x78] sm:$0xff]  ;;  %160 = vst [vmem:[%s1793_s26 + $0x24] sm:$0xff] %v159_v3  ;;  %v165_v6 = vld [vmem:[%s1788_s25 + $0x84] sm:$0xff] }
  0x14   : > { %162 = vst [vmem:[%s1793_s26 + $0x30] sm:$0xff] %v161_v4  ;;  %164 = vst [vmem:[%s1793_s26 + $0x3c] sm:$0xff] %v163_v5  ;;  %v167_v7 = vld [vmem:[%s1788_s25 + $0x90] sm:$0xff]  ;;  %v169_v8 = vld [vmem:[%s1788_s25 + $0x9c] sm:$0xff] }
  0x15   : > { %166 = vst [vmem:[%s1793_s26 + $0x48] sm:$0xff] %v165_v6  ;;  %168 = vst [vmem:[%s1793_s26 + $0x54] sm:$0xff] %v167_v7  ;;  %v171_v9 = vld [vmem:[%s1788_s25 + $0xa8] sm:$0xff]  ;;  %v173_v10 = vld [vmem:[%s1788_s25 + $0xf0] sm:$0xff] }
  0x16   : > { %170 = vst [vmem:[%s1793_s26 + $0x60] sm:$0xff] %v169_v8  ;;  %v175_v11 = vld [vmem:[%s1788_s25 + $0xfc] sm:$0xff]  ;;  %172 = vst [vmem:[%s1793_s26 + $0x6c] sm:$0xff] %v171_v9  ;;  %v177_v12 = vld [vmem:[%s1788_s25 + $0x108] sm:$0xff] }
  0x17   : > { %174 = vst [vmem:[%s1793_s26 + $0x78] sm:$0xff] %v173_v10  ;;  %176 = vst [vmem:[%s1793_s26 + $0x84] sm:$0xff] %v175_v11  ;;  %v179_v13 = vld [vmem:[%s1788_s25 + $0x114] sm:$0xff]  ;;  %v181_v14 = vld [vmem:[%s1788_s25 + $0x120] sm:$0xff] }
  0x18   : > { %178 = vst [vmem:[%s1793_s26 + $0x90] sm:$0xff] %v177_v12  ;;  %180 = vst [vmem:[%s1793_s26 + $0x9c] sm:$0xff] %v179_v13  ;;  %v183_v15 = vld [vmem:[%s1788_s25 + $0x168] sm:$0xff]  ;;  %v185_v16 = vld [vmem:[%s1788_s25 + $0x174] sm:$0xff] }
  0x19   : > { %182 = vst [vmem:[%s1793_s26 + $0xa8] sm:$0xff] %v181_v14  ;;  %v187_v17 = vld [vmem:[%s1788_s25 + $0x180] sm:$0xff]  ;;  %184 = vst [vmem:[%s1793_s26 + $0xb4] sm:$0xff] %v183_v15  ;;  %v189_v18 = vld [vmem:[%s1788_s25 + $0x18c] sm:$0xff] }
  0x1a   : > { %186 = vst [vmem:[%s1793_s26 + $0xc0] sm:$0xff] %v185_v16  ;;  %188 = vst [vmem:[%s1793_s26 + $0xcc] sm:$0xff] %v187_v17  ;;  %v191_v19 = vld [vmem:[%s1788_s25 + $0x198] sm:$0xff]  ;;  %v1245_v20 = vld [vmem:[%s1788_s25 + $0x8] sm:$0xf] }
  0x1b   : > { %190 = vst [vmem:[%s1793_s26 + $0xd8] sm:$0xff] %v189_v18  ;;  %192 = vst [vmem:[%s1793_s26 + $0xe4] sm:$0xff] %v191_v19  ;;  %v1247_v21 = vld [vmem:[%s1788_s25 + $0x14] sm:$0xf]  ;;  %v1249_v22 = vld [vmem:[%s1788_s25 + $0x20] sm:$0xf] }
  0x1c   : > { %1246 = vst [vmem:[%s1793_s26 + $0x8] sm:$0xf] %v1245_v20  ;;  %v1251_v23 = vld [vmem:[%s1788_s25 + $0x2c] sm:$0xf]  ;;  %1248 = vst [vmem:[%s1793_s26 + $0x14] sm:$0xf] %v1247_v21 }
  0x1d   : > { %1250 = vst [vmem:[%s1793_s26 + $0x20] sm:$0xf] %v1249_v22  ;;  %1252 = vst [vmem:[%s1793_s26 + $0x2c] sm:$0xf] %v1251_v23  ;;  %v1253_v24 = vld [vmem:[%s1788_s25 + $0x38] sm:$0xf] }
  0x1e   : > { %v1255_v25 = vld [vmem:[%s1788_s25 + $0x80] sm:$0xf]  ;;  %v1257_v26 = vld [vmem:[%s1788_s25 + $0x8c] sm:$0xf]  ;;  %1254 = vst [vmem:[%s1793_s26 + $0x38] sm:$0xf] %v1253_v24 }
  0x1f   : > { %1256 = vst [vmem:[%s1793_s26 + $0x44] sm:$0xf] %v1255_v25  ;;  %1258 = vst [vmem:[%s1793_s26 + $0x50] sm:$0xf] %v1257_v26  ;;  %v1259_v27 = vld [vmem:[%s1788_s25 + $0x98] sm:$0xf] }
  0x20   : > { %v1261_v28 = vld [vmem:[%s1788_s25 + $0xa4] sm:$0xf]  ;;  %v1263_v29 = vld [vmem:[%s1788_s25 + $0xb0] sm:$0xf]  ;;  %1260 = vst [vmem:[%s1793_s26 + $0x5c] sm:$0xf] %v1259_v27 }
  0x21   : > { %1262 = vst [vmem:[%s1793_s26 + $0x68] sm:$0xf] %v1261_v28  ;;  %1264 = vst [vmem:[%s1793_s26 + $0x74] sm:$0xf] %v1263_v29  ;;  %v1265_v30 = vld [vmem:[%s1788_s25 + $0xf8] sm:$0xf] }
  0x22   : > { %v1267_v31 = vld [vmem:[%s1788_s25 + $0x104] sm:$0xf]  ;;  %v1269_v32 = vld [vmem:[%s1788_s25 + $0x110] sm:$0xf]  ;;  %1266 = vst [vmem:[%s1793_s26 + $0x80] sm:$0xf] %v1265_v30 }
  0x23   : > { %1268 = vst [vmem:[%s1793_s26 + $0x8c] sm:$0xf] %v1267_v31  ;;  %1270 = vst [vmem:[%s1793_s26 + $0x98] sm:$0xf] %v1269_v32  ;;  %v1271_v33 = vld [vmem:[%s1788_s25 + $0x11c] sm:$0xf] }
  0x24   : > { %v1273_v34 = vld [vmem:[%s1788_s25 + $0x128] sm:$0xf]  ;;  %v1275_v35 = vld [vmem:[%s1788_s25 + $0x170] sm:$0xf]  ;;  %1272 = vst [vmem:[%s1793_s26 + $0xa4] sm:$0xf] %v1271_v33 }
  0x25   : > { %1274 = vst [vmem:[%s1793_s26 + $0xb0] sm:$0xf] %v1273_v34  ;;  %1276 = vst [vmem:[%s1793_s26 + $0xbc] sm:$0xf] %v1275_v35  ;;  %v1277_v36 = vld [vmem:[%s1788_s25 + $0x17c] sm:$0xf] }
  0x26   : > { %v1279_v37 = vld [vmem:[%s1788_s25 + $0x188] sm:$0xf]  ;;  %v1281_v38 = vld [vmem:[%s1788_s25 + $0x194] sm:$0xf]  ;;  %1278 = vst [vmem:[%s1793_s26 + $0xc8] sm:$0xf] %v1277_v36 }
  0x27   : > { %1280 = vst [vmem:[%s1793_s26 + $0xd4] sm:$0xf] %v1279_v37  ;;  %1282 = vst [vmem:[%s1793_s26 + $0xe0] sm:$0xf] %v1281_v38  ;;  %v1283_v39 = vld [vmem:[%s1788_s25 + $0x1a0] sm:$0xf] }
  0x28   : > { %1284 = vst [vmem:[%s1793_s26 + $0xec] sm:$0xf] %v1283_v39 }
  0x29 PF: > { %p1285_p5 = scmp.ge.s32.totalorder %s1730_s14, 1  ;;  %p245_p6 = scmp.lt.s32.totalorder %s1730_s14, 3 }
  0x2b   : > { %p246_p7 = pnand %p1285_p5, %p245_p6 }
  0x2c   : > { %s252_s6 = sand.u32 (!%p246_p7), 1, %s1722_s12  }
  0x2d   : > { %249 = sbr.rel (%p246_p7) target bundleno = 379 (0x17b), region = 54 }
  0x2e   : > { %s1618_s9 = smul.u32 (!%p246_p7), 240, %s252_s6 }
  0x30   : > { %s1913_s18 = scalar_lea.vmem (!%p246_p7), [#allocation2], %s1618_s9 }
  0x32   : > { %v1877_v40 = vld [vmem:[%s2198_s1 + $0x78] sm:$0xff]   ;;  %v1732_v41 = vmov 0.0   ;;  %v1883_v42 = vld [vmem:[%s2198_s1 + $0x88] sm:$0xff]   ;;  %vm1733_vm0 = vmmov 0   ;;  %v1898_v44 = vld [vmem:[%s2198_s1 + $0x70] sm:$0xff]   ;;  %vm477_vm1 = vcmask 261120  }
  0x33   : > { %1552 = vmatprep.subr.bf16.mxu1 %v1732_v41  ;;  %1396 = vmatprep.subr.bf16.mxu0 %v1877_v40  ;;  %v1889_v43 = vld [vmem:[%s2198_s1 + $0x38] sm:$0xff]   ;;  %v1905_v45 = vld [vmem:[%s2198_s1 + $0x80] sm:$0xff]   ;;  %v1911_v46 = vld [vmem:[%s2198_s1 + $0x30] sm:$0xff]   ;;  %vm1168_vm2 = vcmask 519168  }
  0x34   : > { %1556 = vmatprep.mubr.msk.bf16.mxu1 %vm1733_vm0, %v1732_v41  ;;  %1553 = vmatpush3.bf16.msra.mxu1 %v1883_v42  ;;  %v1652_v47 = vld [vmem:[%s1913_s18 + $0x8] ss:$12 sps:$4 sm:$0xff]   ;;  %v1659_v53 = vld [vmem:[%s1913_s18 + $0x20] ss:$12 sps:$4 sm:$0xff]   ;;  %v1669_v58 = vld [vmem:[%s1913_s18 + $0x4] ss:$12 sps:$4 sm:$0xff]  }
  0x35   : > { %1397 = vmatpush3.bf16.msra.mxu0 %v1889_v43  ;;  %1554 = vmatprep.subr.bf16.mxu1 %v1732_v41  ;;  %v1920_v48 = vld [vmem:[%s2198_s1 + $0x68] sm:$0xff]   ;;  %v1933_v50 = vld [vmem:[%s2198_s1 + $0x60] sm:$0xff]   ;;  %v1950_v52 = vld [vmem:[%s2198_s1 + $0x58] sm:$0xff]  }
  0x36   : > { %1398 = vmatprep.subr.bf16.mxu0 %v1898_v44  ;;  %v1927_v49 = vld [vmem:[%s2198_s1 + $0x28] sm:$0xff]   ;;  %v1944_v51 = vld [vmem:[%s2198_s1 + $0x20] sm:$0xff]   ;;  %v1959_v54 = vld [vmem:[%s2198_s1 + $0x18] sm:$0xff]   ;;  %519 = vmatprep.mubr.bf16.mxu0 %v1669_v58 }
  0x37   : > { %v1965_v55 = vld [vmem:[%s2198_s1 + $0x50] sm:$0xff]   ;;  %v1982_v57 = vld [vmem:[%s2198_s1 + $0x48] sm:$0xff]   ;;  %v1999_v62 = vld [vmem:[%s2198_s1 + $0x40] sm:$0xff]  }
  0x38   : > { %1555 = vmatpush3.bf16.msra.mxu1 %v1905_v45  ;;  %v1976_v56 = vld [vmem:[%s2198_s1 + $0x10] sm:$0xff]   ;;  %v1664_v59 = vld [vmem:[%s1913_s18 + $0x38] ss:$0 sps:$4 sm:$0xff]   ;;  %v2008_v63 = vld [vmem:[%s2198_s1] sm:$0xff]  }
  0x39   : > { %1399 = vmatpush3.bf16.msra.mxu0 %v1911_v46  ;;  %1435 = vmatprep.subr.bf16.mxu1 %v1877_v40  ;;  %v1672_v60 = vld [vmem:[%s1913_s18 + $0x40] ss:$12 sps:$4 sm:$0xff]   ;;  %v1673_v1 = vld [vmem:[%s1913_s18 + $0x1c] ss:$12 sps:$4 sm:$0xff]   ;;  %v327_v2 = vld [vmem:[%s1913_s18 + $0x30] sm:$0xff] }
  0x3a   : > { %1400 = vmatprep.subr.bf16.mxu0 %v1920_v48  ;;  %v1993_v61 = vld [vmem:[%s2198_s1 + $0x8] sm:$0xff]   ;;  %v1294_v5 = vcombine.high %v327_v2, %v327_v2  ;;  %v1680_v7 = vld [vmem:[%s1913_s18 + $0x54] ss:$12 sps:$4 sm:$0xff]   ;;  %v1293_v9 = vcombine.low %v327_v2, %v327_v2  ;;  %v1681_v12 = vld [vmem:[%s1913_s18 + $0x44] ss:$12 sps:$4 sm:$0xff]  }
  0x3b   : > { %1557 = vmatmul.mubr.msk.bf16.vlgmr.msra.gmra.mxu1 %vm477_vm1, %v1652_v47  ;;  %v1667_v0 = vld [vmem:[%s1913_s18] ss:$12 sps:$4 sm:$0xff]   ;;  %v1670_v3 = vld [vmem:[%s1913_s18 + $0x3c] ss:$12 sps:$4 sm:$0xff]   ;;  %v1675_v4 = vld [vmem:[%s1913_s18 + $0x18] ss:$12 sps:$4 sm:$0xff]  }
  0x3c   : > { %1436 = vmatpush3.bf16.msra.mxu1 %v1889_v43  ;;  %1560 = vmatprep.mubr.msk.bf16.mxu1 %vm1733_vm0, %v1732_v41  ;;  %v1678_v6 = vld [vmem:[%s1913_s18 + $0x58] ss:$12 sps:$4 sm:$0xff]   ;;  %v1325_v8 = vld [vmem:[%s1913_s18 + $0x6c] sm:$0xff]  ;;  %v1687_v13 = vld [vmem:[%s1913_s18 + $0x7c] ss:$12 sps:$4 sm:$0xff]  }
  0x3d   : > { %1401 = vmatpush3.bf16.msra.mxu0 %v1927_v49  ;;  %1437 = vmatprep.subr.bf16.mxu1 %v1898_v44  ;;  %v1334_v10 = vcombine.high %v1325_v8, %v1325_v8  ;;  %v1333_v11 = vcombine.low %v1325_v8, %v1325_v8  ;;  %v1684_v14 = vld [vmem:[%s1913_s18 + $0x5c] ss:$12 sps:$4 sm:$0xff]   ;;  %v1685_v15 = vld [vmem:[%s1913_s18 + $0x78] ss:$12 sps:$4 sm:$0xff]   ;;  %v1688_v16 = vld [vmem:[%s1913_s18 + $0x74] ss:$0 sps:$4 sm:$0xff]  }
  0x3e   : > { %1402 = vmatprep.subr.bf16.mxu0 %v1933_v50  ;;  %v1689_v17 = vld [vmem:[%s1913_s18 + $0x94] ss:$12 sps:$4 sm:$0xff]   ;;  %v1692_v18 = vld [vmem:[%s1913_s18 + $0x90] ss:$12 sps:$4 sm:$0xff]   ;;  %v1347_v19 = vld [vmem:[%s1913_s18 + $0xa8] sm:$0xff] }
  0x3f   : > { %v1691_v20 = vld [vmem:[%s1913_s18 + $0x80] ss:$12 sps:$4 sm:$0xff]   ;;  %v1356_v21 = vcombine.high %v1347_v19, %v1347_v19  ;;  %v1355_v22 = vcombine.low %v1347_v19, %v1347_v19  ;;  %v1694_v23 = vld [vmem:[%s1913_s18 + $0x98] ss:$12 sps:$4 sm:$0xff]   ;;  %v1696_v25 = vld [vmem:[%s1913_s18 + $0xb0] ss:$0 sps:$4 sm:$0xff]  }
  0x40   : > { %1438 = vmatpush3.bf16.msra.mxu1 %v1911_v46  ;;  %v1699_v24 = vld [vmem:[%s1913_s18 + $0xb8] ss:$12 sps:$4 sm:$0xff]   ;;  %v1697_v26 = vld [vmem:[%s1913_s18 + $0xb4] ss:$12 sps:$4 sm:$0xff]   ;;  %v1700_v27 = vld [vmem:[%s1913_s18 + $0xbc] ss:$12 sps:$4 sm:$0xff]  }
  0x41   : > { %1403 = vmatpush3.bf16.msra.mxu0 %v1944_v51  ;;  %1439 = vmatprep.subr.bf16.mxu1 %v1920_v48  ;;  %v1701_v28 = vld [vmem:[%s1913_s18 + $0xd0] ss:$12 sps:$4 sm:$0xff]   ;;  %v1369_v29 = vld [vmem:[%s1913_s18 + $0xe4] sm:$0xff]  ;;  %v1703_v30 = vld [vmem:[%s1913_s18 + $0xcc] ss:$12 sps:$4 sm:$0xff]  }
  0x42   : > { %1404 = vmatprep.subr.bf16.mxu0 %v1950_v52  ;;  %v1704_v31 = vld [vmem:[%s1913_s18 + $0xd4] ss:$12 sps:$4 sm:$0xff]   ;;  %v1378_v32 = vcombine.high %v1369_v29, %v1369_v29  ;;  %v1377_v33 = vcombine.low %v1369_v29, %v1369_v29  ;;  %v1707_v34 = vld [vmem:[%s1913_s18 + $0xec] ss:$0 sps:$4 sm:$0xff]   ;;  %s276_s18 = smul.u32 5, %s1240_s15 }
  0x43   : > { %1561 = vmatmul.mubr.msk.bf16.gmra.mxu1 %vm477_vm1, %v1659_v53 }
  0x44   : > { %1440 = vmatpush3.bf16.msra.mxu1 %v1927_v49  ;;  %1564 = vmatprep.mubr.msk.bf16.mxu1 %vm1733_vm0, %v1732_v41  ;;  %p277_p8 = scmp.lt.s32.totalorder %s276_s18, 9 }
  0x45   : > { %1405 = vmatpush3.bf16.msra.mxu0 %v1959_v54  ;;  %1441 = vmatprep.subr.bf16.mxu1 %v1933_v50 }
  0x46   : > { %1406 = vmatprep.subr.bf16.mxu0 %v1965_v55  ;;  %s2205_s18 = smov (!%p277_p8, %s276_s18), 9 }
  0x47   : > { %s1286_s23 = sshll.u32 %s2205_s18, 2 }
  0x48   : > { %1442 = vmatpush3.bf16.msra.mxu1 %v1944_v51  ;;  %s2167_s26 = scalar_lea.vmem %s2200_s3, %s1286_s23 }
  0x49   : > { %1407 = vmatpush3.bf16.msra.mxu0 %v1976_v56  ;;  %1443 = vmatprep.subr.bf16.mxu1 %v1950_v52 }
  0x4a   : > { %1408 = vmatprep.subr.bf16.mxu0 %v1982_v57 }
  0x4b   : > { %1565 = vmatmul.mubr.msk.bf16.gmra.mxu1 %vm477_vm1, %v1664_v59 }
  0x4c   : > { %1444 = vmatpush3.bf16.msra.mxu1 %v1959_v54  ;;  %691 = vmatprep.mubr.bf16.mxu1 %v1672_v60 }
  0x4d   : > { %1409 = vmatpush3.bf16.msra.mxu0 %v1993_v61  ;;  %1445 = vmatprep.subr.bf16.mxu1 %v1965_v55 }
  0x4e   : > { %1410 = vmatprep.subr.bf16.mxu0 %v1999_v62 }
  0x50   : > { %1446 = vmatpush3.bf16.msra.mxu1 %v1976_v56 }
  0x51   : > { %1411 = vmatpush3.bf16.msra.mxu0 %v2008_v63  ;;  %1447 = vmatprep.subr.bf16.mxu1 %v1982_v57 }
  0x52   : > { %1568 = vmatprep.subr.bf16.mxu0 %v1732_v41 }
  0x54   : > { %520 = vmatmul.mubr.bf16.vlgmr.msra.gmra.mxu0 %v1667_v0  ;;  %1448 = vmatpush3.bf16.msra.mxu1 %v1993_v61 }
  0x55   : > { %1449 = vmatprep.subr.bf16.mxu1 %v1999_v62  ;;  %1569 = vmatpush3.bf16.msra.mxu0 %v1883_v42 }
  0x56   : > { %527 = vmatprep.mubr.bf16.mxu0 %v1673_v1  ;;  %1570 = vmatprep.subr.bf16.mxu0 %v1732_v41 }
  0x58   : > { %1450 = vmatpush3.bf16.msra.mxu1 %v2008_v63 }
  0x59   : > { %1474 = vmatprep.subr.bf16.mxu1 %v1877_v40  ;;  %1571 = vmatpush3.bf16.msra.mxu0 %v1905_v45 }
  0x5a   : > { %1584 = vmatprep.subr.bf16.mxu0 %v1732_v41 }
  0x5b   : > { %692 = vmatmul.mubr.bf16.vlgmr.msra.gmra.mxu1 %v1670_v3 }
  0x5c   : > { %528 = vmatmul.mubr.bf16.gmra.mxu0 %v1675_v4  ;;  %1475 = vmatpush3.bf16.msra.mxu1 %v1889_v43 }
  0x5d   : > { %1476 = vmatprep.subr.bf16.mxu1 %v1898_v44  ;;  %535 = vmatprep.mubr.bf16.mxu0 %v1294_v5 }
  0x5e   : > { %699 = vmatprep.mubr.bf16.mxu1 %v1678_v6 }
  0x60   : > { %1477 = vmatpush3.bf16.msra.mxu1 %v1911_v46 }
  0x61   : > { %1478 = vmatprep.subr.bf16.mxu1 %v1920_v48 }
  0x63   : > { %700 = vmatmul.mubr.bf16.gmra.mxu1 %v1680_v7 }
  0x64   : > { %536 = vmatmul.mubr.bf16.gmra.mxu0 %v1293_v9  ;;  %1479 = vmatpush3.bf16.msra.mxu1 %v1927_v49 }
  0x65   : > { %1480 = vmatprep.subr.bf16.mxu1 %v1933_v50  ;;  %1572 = vmatprep.mubr.msk.bf16.mxu0 %vm1733_vm0, %v1732_v41 }
  0x66   : > { %707 = vmatprep.mubr.bf16.mxu1 %v1334_v10 }
  0x68   : > { %1481 = vmatpush3.bf16.msra.mxu1 %v1944_v51 }
  0x69   : > { %1482 = vmatprep.subr.bf16.mxu1 %v1950_v52 }
  0x6b   : > { %708 = vmatmul.mubr.bf16.gmra.mxu1 %v1333_v11 }
  0x6c   : > { %1573 = vmatmul.mubr.msk.bf16.vlgmr.msra.gmra.mxu0 %vm477_vm1, %v1681_v12  ;;  %1483 = vmatpush3.bf16.msra.mxu1 %v1959_v54 }
  0x6d   : > { %1484 = vmatprep.subr.bf16.mxu1 %v1965_v55  ;;  %1585 = vmatpush3.bf16.msra.mxu0 %v1883_v42 }
  0x6e   : > { %1576 = vmatprep.mubr.msk.bf16.mxu0 %vm1733_vm0, %v1732_v41  ;;  %868 = vmatprep.mubr.bf16.mxu1 %v1687_v13 }
  0x6f   : > { %1586 = vmatprep.subr.bf16.mxu0 %v1732_v41 }
  0x70   : > { %1485 = vmatpush3.bf16.msra.mxu1 %v1976_v56 }
  0x71   : > { %1486 = vmatprep.subr.bf16.mxu1 %v1982_v57  ;;  %1587 = vmatpush3.bf16.msra.mxu0 %v1905_v45 }
  0x72   : > { %1600 = vmatprep.subr.bf16.mxu0 %v1732_v41 }
  0x74   : > { %1577 = vmatmul.mubr.msk.bf16.gmra.mxu0 %vm477_vm1, %v1684_v14  ;;  %1487 = vmatpush3.bf16.msra.mxu1 %v1993_v61 }
  0x75   : > { %1488 = vmatprep.subr.bf16.mxu1 %v1999_v62  ;;  %1580 = vmatprep.mubr.msk.bf16.mxu0 %vm1733_vm0, %v1732_v41 }
  0x78   : > { %1489 = vmatpush3.bf16.msra.mxu1 %v2008_v63 }
  0x79   : > { %1513 = vmatprep.subr.bf16.mxu1 %v1877_v40 }
  0x7b   : > { %869 = vmatmul.mubr.bf16.vlgmr.msra.gmra.mxu1 %v1685_v15 }
  0x7c   : > { %1581 = vmatmul.mubr.msk.bf16.gmra.mxu0 %vm477_vm1, %v1688_v16  ;;  %1514 = vmatpush3.bf16.msra.mxu1 %v1889_v43 }
  0x7d   : > { %1515 = vmatprep.subr.bf16.mxu1 %v1898_v44  ;;  %1588 = vmatprep.mubr.msk.bf16.mxu0 %vm1733_vm0, %v1732_v41 }
  0x7e   : > { %876 = vmatprep.mubr.bf16.mxu1 %v1689_v17 }
  0x80   : > { %1516 = vmatpush3.bf16.msra.mxu1 %v1911_v46 }
  0x81   : > { %1517 = vmatprep.subr.bf16.mxu1 %v1920_v48 }
  0x83   : > { %877 = vmatmul.mubr.bf16.gmra.mxu1 %v1692_v18 }
  0x84   : > { %1589 = vmatmul.mubr.msk.bf16.vlgmr.msra.gmra.mxu0 %vm477_vm1, %v1691_v20  ;;  %1518 = vmatpush3.bf16.msra.mxu1 %v1927_v49 }
  0x85   : > { %1519 = vmatprep.subr.bf16.mxu1 %v1933_v50  ;;  %1601 = vmatpush3.bf16.msra.mxu0 %v1883_v42 }
  0x86   : > { %1592 = vmatprep.mubr.msk.bf16.mxu0 %vm1733_vm0, %v1732_v41  ;;  %884 = vmatprep.mubr.bf16.mxu1 %v1356_v21 }
  0x87   : > { %1602 = vmatprep.subr.bf16.mxu0 %v1732_v41 }
  0x88   : > { %1520 = vmatpush3.bf16.msra.mxu1 %v1944_v51 }
  0x89   : > { %1521 = vmatprep.subr.bf16.mxu1 %v1950_v52  ;;  %1603 = vmatpush3.bf16.msra.mxu0 %v1905_v45 }
  0x8b   : > { %885 = vmatmul.mubr.bf16.gmra.mxu1 %v1355_v22 }
  0x8c   : > { %1593 = vmatmul.mubr.msk.bf16.gmra.mxu0 %vm477_vm1, %v1694_v23  ;;  %1522 = vmatpush3.bf16.msra.mxu1 %v1959_v54 }
  0x8d   : > { %1523 = vmatprep.subr.bf16.mxu1 %v1965_v55  ;;  %1596 = vmatprep.mubr.msk.bf16.mxu0 %vm1733_vm0, %v1732_v41 }
  0x8e   : > { %1045 = vmatprep.mubr.bf16.mxu1 %v1699_v24 }
  0x90   : > { %1524 = vmatpush3.bf16.msra.mxu1 %v1976_v56 }
  0x91   : > { %1525 = vmatprep.subr.bf16.mxu1 %v1982_v57 }
  0x94   : > { %1597 = vmatmul.mubr.msk.bf16.gmra.mxu0 %vm477_vm1, %v1696_v25  ;;  %1526 = vmatpush3.bf16.msra.mxu1 %v1993_v61 }
  0x95   : > { %1527 = vmatprep.subr.bf16.mxu1 %v1999_v62  ;;  %1604 = vmatprep.mubr.msk.bf16.mxu0 %vm1733_vm0, %v1732_v41 }
  0x98   : > { %1528 = vmatpush3.bf16.msra.mxu1 %v2008_v63 }
  0x9b   : > { %1046 = vmatmul.mubr.bf16.vlgmr.msra.gmra.mxu1 %v1697_v26 }
  0x9c   : > { %1605 = vmatmul.mubr.msk.bf16.vlgmr.msra.gmra.mxu0 %vm477_vm1, %v1700_v27  ;;  %1053 = vmatprep.mubr.bf16.mxu1 %v1701_v28 }
  0x9d   : > { %1608 = vmatprep.mubr.msk.bf16.mxu0 %vm1733_vm0, %v1732_v41 }
  0xa3   : > { %1054 = vmatmul.mubr.bf16.gmra.mxu1 %v1703_v30 }
  0xa4   : > { %1609 = vmatmul.mubr.msk.bf16.gmra.mxu0 %vm477_vm1, %v1704_v31  ;;  %1061 = vmatprep.mubr.bf16.mxu1 %v1378_v32 }
  0xa5   : > { %1612 = vmatprep.mubr.msk.bf16.mxu0 %vm1733_vm0, %v1732_v41 }
  0xab   : > { %1062 = vmatmul.mubr.bf16.gmra.mxu1 %v1377_v33 }
  0xac   : > { %1613 = vmatmul.mubr.msk.bf16.gmra.mxu0 %vm477_vm1, %v1707_v34 }
  0xfb   : > { %v577_v35 = vpop.f32.mrf.mxu1 }
  0xfd   : > { %v1558_v36 = vpop.f32.mrf.mxu1 }
  0xff   : > { %v580_v37 = vpop.f32.mrf.mxu1 }
 0x101   : > { %v1559_v38 = vpop.f32.mrf.mxu1 }
 0x103   : > { %v585_v39 = vpop.f32.mrf.mxu1 }
 0x105   : > { %v1562_v40 = vpop.f32.mrf.mxu1 }
 0x107   : > { %v588_v42 = vpop.f32.mrf.mxu1 }
 0x109   : > { %v1563_v43 = vpop.f32.mrf.mxu1 }
 0x10b   : > { %v593_v44 = vpop.f32.mrf.mxu1 }
 0x10d   : > { %v1566_v45 = vpop.f32.mrf.mxu1 }
 0x10f   : > { %v596_v46 = vpop.f32.mrf.mxu1 }
 0x111   : > { %v1567_v47 = vpop.f32.mrf.mxu1 }
 0x114   : > { %v1412_v48 = vpop.f32.mrf.mxu0 }
 0x116   : > { %v1413_v49 = vpop.f32.mrf.mxu0 }
 0x117   : > { %v1414_v41 = vadd.f32 %v1413_v49, %v1412_v48 }
 0x118   : > { %v1415_v50 = vpop.f32.mrf.mxu0 }
 0x119   : > { %v2115_v51 = vadd.f32 %v1414_v41, %v577_v35 }
 0x11a   : > { %v1416_v52 = vpop.f32.mrf.mxu0 }
 0x11b   : > { %v1417_v53 = vadd.f32 %v1416_v52, %v1415_v50  ;;  %v1451_v54 = vpop.f32.mrf.mxu1 }
 0x11c   : > { %v1418_v55 = vpop.f32.mrf.mxu0 }
 0x11d   : > { %v2117_v56 = vadd.f32 %v1417_v53, %v580_v37  ;;  %v1452_v57 = vpop.f32.mrf.mxu1 }
 0x11e   : > { %v1419_v58 = vpop.f32.mrf.mxu0  ;;  %v1453_v52 = vadd.f32 %v1452_v57, %v1451_v54 }
 0x11f   : > { %v1420_v59 = vadd.f32 %v1419_v58, %v1418_v55  ;;  %v1454_v60 = vpop.f32.mrf.mxu1 }
 0x120   : > { %v1421_v61 = vpop.f32.mrf.mxu0 }
 0x121   : > { %v2119_v62 = vadd.f32 %v1420_v59, %v585_v39  ;;  %v1455_v63 = vpop.f32.mrf.mxu1 }
 0x122   : > { %v1422_v0 = vpop.f32.mrf.mxu0 }
 0x123   : > { %v1423_v1 = vadd.f32 %v1422_v0, %v1421_v61  ;;  %v2121_v2 = vpop.f32.mrf.mxu1  ;;  %v1456_v0 = vadd.f32 %v1455_v63, %v1454_v60 }
 0x124   : > { %v1424_v3 = vpop.f32.mrf.mxu0 }
 0x125   : > { %v2123_v4 = vadd.f32 %v1423_v1, %v588_v42  ;;  %v2125_v5 = vpop.f32.mrf.mxu1 }
 0x126   : > { %v1425_v6 = vpop.f32.mrf.mxu0  ;;  %v1459_v54 = vadd.f32 %v2125_v5, %v2121_v2 }
 0x127   : > { %v1426_v7 = vadd.f32 %v1425_v6, %v1424_v3  ;;  %v2127_v8 = vpop.f32.mrf.mxu1 }
 0x128   : > { %v1427_v9 = vpop.f32.mrf.mxu0 }
 0x129   : > { %v2129_v10 = vadd.f32 %v1426_v7, %v593_v44  ;;  %v2131_v11 = vpop.f32.mrf.mxu1 }
 0x12a   : > { %v1428_v12 = vpop.f32.mrf.mxu0 }
 0x12b   : > { %v2133_v13 = vpop.f32.mrf.mxu1 }
 0x12c   : > { %v749_v14 = vpop.f32.mrf.mxu0 }
 0x12d   : > { %v2135_v15 = vpop.f32.mrf.mxu1  ;;  %v750_v55 = vadd.f32 %v1453_v52, %v749_v14 }
 0x12e   : > { %v1574_v16 = vpop.f32.mrf.mxu0 }
 0x12f   : > { %v1466_v17 = vpop.f32.mrf.mxu1  ;;  %v771_v7 = vmax.f32 %v2115_v51, %v750_v55  ;;  %v2153_v51 = vld [vmem:[%s2199_s2] ss:$0 sm:$0xff] }
 0x130   : > { %v752_v18 = vpop.f32.mrf.mxu0 }
 0x131   : > { %v1467_v19 = vpop.f32.mrf.mxu1  ;;  %v753_v9 = vadd.f32 %v1456_v0, %v752_v18 }
 0x132   : > { %v1575_v20 = vpop.f32.mrf.mxu0 }
 0x134   : > { %v757_v21 = vpop.f32.mrf.mxu0 }
 0x136   : > { %v1578_v22 = vpop.f32.mrf.mxu0 }
 0x137   : > { %v772_v22 = vmax.f32 %v2117_v56, %v753_v9 }
 0x138   : > { %v2137_v23 = vpop.f32.mrf.mxu0 }
 0x13a   : > { %v1579_v24 = vpop.f32.mrf.mxu0 }
 0x13b   : > { %v1490_v25 = vpop.f32.mrf.mxu1  ;;  %v758_v24 = vadd.f32 %v1459_v54, %v757_v21 }
 0x13c   : > { %v2139_v26 = vpop.f32.mrf.mxu0 }
 0x13d   : > { %v1491_v27 = vpop.f32.mrf.mxu1  ;;  %v773_v56 = vmax.f32 %v2119_v62, %v758_v24 }
 0x13e   : > { %v1582_v28 = vpop.f32.mrf.mxu0  ;;  %v1492_v58 = vadd.f32 %v1491_v27, %v1490_v25  ;;  %v1462_v27 = vadd.f32 %v2131_v11, %v2127_v8  ;;  %v1465_v8 = vadd.f32 %v2135_v15, %v2133_v13 }
 0x13f   : > { %v1493_v29 = vpop.f32.mrf.mxu1 }
 0x140   : > { %v768_v30 = vpop.f32.mrf.mxu0  ;;  %v766_v13 = vadd.f32 %v1465_v8, %v2139_v26 }
 0x141   : > { %v1494_v31 = vpop.f32.mrf.mxu1 }
 0x142   : > { %v1583_v32 = vpop.f32.mrf.mxu0  ;;  %v1495_v12 = vadd.f32 %v1494_v31, %v1493_v29 }
 0x143   : > { %v1496_v33 = vpop.f32.mrf.mxu1 }
 0x144   : > { %v926_v34 = vpop.f32.mrf.mxu0 }
 0x145   : > { %v1497_v35 = vpop.f32.mrf.mxu1  ;;  %v927_v1 = vadd.f32 %v1492_v58, %v926_v34  ;;  %v761_v34 = vadd.f32 %v1462_v27, %v2137_v23 }
 0x146   : > { %v1590_v36 = vpop.f32.mrf.mxu0  ;;  %v1498_v14 = vadd.f32 %v1497_v35, %v1496_v33 }
 0x147   : > { %v1499_v37 = vpop.f32.mrf.mxu1  ;;  %v948_v19 = vmax.f32 %v771_v7, %v927_v1  ;;  %v775_v1 = vmax.f32 %v2129_v10, %v766_v13 }
 0x148   : > { %v929_v38 = vpop.f32.mrf.mxu0 }
 0x149   : > { %v1500_v39 = vpop.f32.mrf.mxu1  ;;  %v930_v20 = vadd.f32 %v1495_v12, %v929_v38 }
 0x14a   : > { %v1591_v40 = vpop.f32.mrf.mxu0  ;;  %v1501_v35 = vadd.f32 %v1500_v39, %v1499_v37 }
 0x14b   : > { %v1502_v42 = vpop.f32.mrf.mxu1  ;;  %v949_v29 = vmax.f32 %v772_v22, %v930_v20 }
 0x14c   : > { %v934_v43 = vpop.f32.mrf.mxu0 }
 0x14d   : > { %v1503_v44 = vpop.f32.mrf.mxu1  ;;  %v935_v30 = vadd.f32 %v1498_v14, %v934_v43 }
 0x14e   : > { %v1594_v45 = vpop.f32.mrf.mxu0  ;;  %v1504_v11 = vadd.f32 %v1503_v44, %v1502_v42 }
 0x14f   : > { %v1505_v46 = vpop.f32.mrf.mxu1  ;;  %v950_v37 = vmax.f32 %v773_v56, %v935_v30 }
 0x150   : > { %v937_v47 = vpop.f32.mrf.mxu0 }
 0x151   : > { %v1506_v48 = vpop.f32.mrf.mxu1  ;;  %v938_v43 = vadd.f32 %v1501_v35, %v937_v47 }
 0x152   : > { %v1595_v49 = vpop.f32.mrf.mxu0 }
 0x153   : > { %v774_v49 = vmax.f32 %v2123_v4, %v761_v34 }
 0x154   : > { %v2141_v41 = vpop.f32.mrf.mxu0 }
 0x155   : > { %v951_v52 = vmax.f32 %v774_v49, %v938_v43  ;;  %v943_v55 = vadd.f32 %v1504_v11, %v2141_v41 }
 0x156   : > { %v1598_v50 = vpop.f32.mrf.mxu0 }
 0x157   : > { %v952_v12 = vmax.f32 %v775_v1, %v943_v55 }
 0x158   : > { %v945_v53 = vpop.f32.mrf.mxu0 }
 0x15a   : > { %v1599_v59 = vpop.f32.mrf.mxu0 }
 0x15b   : > { %v1529_v61 = vpop.f32.mrf.mxu1 }
 0x15c   : > { %v1103_v3 = vpop.f32.mrf.mxu0 }
 0x15d   : > { %v1530_v6 = vpop.f32.mrf.mxu1 }
 0x15e   : > { %v1531_v16 = vadd.f32 %v1530_v6, %v1529_v61  ;;  %v1606_v17 = vpop.f32.mrf.mxu0 }
 0x15f   : > { %v1532_v57 = vpop.f32.mrf.mxu1 }
 0x160   : > { %v1104_v60 = vadd.f32 %v1531_v16, %v1103_v3  ;;  %v1106_v63 = vpop.f32.mrf.mxu0 }
 0x161   : > { %v1533_v18 = vpop.f32.mrf.mxu1 }
 0x162   : > { %v1125_v25 = vmax.f32 %v948_v19, %v1104_v60  ;;  %v1534_v2 = vadd.f32 %v1533_v18, %v1532_v57  ;;  %v1607_v5 = vpop.f32.mrf.mxu0 }
 0x163   : > { %v1535_v28 = vpop.f32.mrf.mxu1 }
 0x164   : > { %v1137_v31 = vadd.f32 %v2153_v51, %v1125_v25  ;;  %v1107_v32 = vadd.f32 %v1534_v2, %v1106_v63  ;;  %v1111_v33 = vpop.f32.mrf.mxu0 }
 0x165   : > { %v1536_v36 = vpop.f32.mrf.mxu1 }
 0x166   : > { %v1142_v21 = vmax.f32 %v1137_v31, 0.0  ;;  %v1126_v38 = vmax.f32 %v949_v29, %v1107_v32  ;;  %v1537_v40 = vadd.f32 %v1536_v36, %v1535_v28  ;;  %v1610_v45 = vpop.f32.mrf.mxu0 }
 0x167   : > { %v1538_v23 = vpop.f32.mrf.mxu1 }
 0x168   : > { %v1391_v39 = vpack.c.bf16 %v1142_v21, %v1142_v21  ;;  %v1138_v62 = vadd.f32 %v2153_v51, %v1126_v38  ;;  %v1112_v46 = vadd.f32 %v1537_v40, %v1111_v33  ;;  %v1114_v48 = vpop.f32.mrf.mxu0 }
 0x169   : > { %v1539_v50 = vpop.f32.mrf.mxu1 }
 0x16a   : > { %1169 = vst.msk [vmem:[%s2167_s26] sm:$0xf] %vm1168_vm2, %v1391_v39  ;;  %v1143_v15 = vmax.f32 %v1138_v62, 0.0  ;;  %v1127_v42 = vmax.f32 %v950_v37, %v1112_v46  ;;  %v1540_v44 = vadd.f32 %v1539_v50, %v1538_v23  ;;  %v1611_v47 = vpop.f32.mrf.mxu0 }
 0x16b   : > { %v1541_v53 = vpop.f32.mrf.mxu1 }
 0x16c   : > { %v1392_v58 = vpack.c.bf16 %v1143_v15, %v1143_v15  ;;  %v1139_v59 = vadd.f32 %v2153_v51, %v1127_v42  ;;  %v1115_v61 = vadd.f32 %v1540_v44, %v1114_v48  ;;  %v1119_v4 = vpop.f32.mrf.mxu0 }
 0x16d   : > { %v1542_v0 = vpop.f32.mrf.mxu1 }
 0x16e   : > { %1170 = vst.msk [vmem:[%s2167_s26 + $0x4] sm:$0xf] %vm1168_vm2, %v1392_v58  ;;  %v1144_v26 = vmax.f32 %v1139_v59, 0.0  ;;  %v1128_v3 = vmax.f32 %v951_v52, %v1115_v61  ;;  %v1543_v6 = vadd.f32 %v1542_v0, %v1541_v53  ;;  %v1614_v7 = vpop.f32.mrf.mxu0 }
 0x16f   : > { %v1544_v9 = vpop.f32.mrf.mxu1 }
 0x170   : > { %v1393_v41 = vpack.c.bf16 %v1144_v26, %v1144_v26  ;;  %v1140_v16 = vadd.f32 %v2153_v51, %v1128_v3  ;;  %v1120_v17 = vadd.f32 %v1543_v6, %v1119_v4  ;;  %v1122_v54 = vpop.f32.mrf.mxu0 }
 0x171   : > { %v1545_v57 = vpop.f32.mrf.mxu1 }
 0x172   : > { %1171 = vst.msk [vmem:[%s2167_s26 + $0x8] sm:$0xf] %vm1168_vm2, %v1393_v41  ;;  %v1145_v19 = vmax.f32 %v1140_v16, 0.0  ;;  %v1129_v10 = vmax.f32 %v952_v12, %v1120_v17  ;;  %v1615_v14 = vpop.f32.mrf.mxu0 }
 0x174   : > { %v1394_v20 = vpack.c.bf16 %v1145_v19, %v1145_v19  ;;  %v1141_v60 = vadd.f32 %v2153_v51, %v1129_v10 }
 0x176   : > { %1172 = vst.msk [vmem:[%s2167_s26 + $0xc] sm:$0xf] %vm1168_vm2, %v1394_v20  ;;  %v1146_v63 = vmax.f32 %v1141_v60, 0.0 }
 0x178   : > { %v1395_v18 = vpack.c.bf16 %v1146_v63, %v1146_v63 }
 0x17a   : > { %1173 = vst.msk [vmem:[%s2167_s26 + $0x10] sm:$0xf] %vm1168_vm2, %v1395_v18 }
 0x17b PF: > { %p10_p9 = scmp.ge.s32.totalorder %s1771_s16, 4   ;;  %s2201_s12 = smov %s1726_s13 }
 0x17c   : > { %s2202_s13 = smov %s1780_s19  ;;  %s2203_s14 = smov %s1771_s16 }
 0x17d   :  { %12 = sbr.rel (!%p10_p9) target bundleno = 2 (0x2), region = 102 }

// kernel: simple_cnn_forward.5
= control target key start
LH: loop header
LB: loop body
LE: loop exit
PB: predicated region body
PF: predicated region fallthrough
CT: control target
= control target key end

     0   :  { %vm1677_vm0 = vcmask 1041408   ;;  %vm2310_vm1 = vmmov 0   ;;  %vm1673_vm2 = vcmask 818176   ;;  %vm1721_vm3 = vcmask 80896   ;;  %s2833_s1 = inlined_call_operand.vmem [shape: bf16[2304,100], index: 1, kind: input, shape index: {}]   ;;  %s2834_s0 = inlined_call_operand.vmem [shape: bf16[8,2304], index: 0, kind: input, shape index: {}]   ;;  %s2835_s3 = inlined_call_operand.vmem [shape: bf16[100,10], index: 3, kind: input, shape index: {}]   ;;  %s2836_s2 = inlined_call_operand.vmem [shape: f32[1,100], index: 2, kind: input, shape index: {}]   ;;  %s2837_s4 = inlined_call_operand.vmem [shape: f32[1,10], index: 4, kind: input, shape index: {}]   ;;  %s2838_s5 = inlined_call_operand.vmem [shape: f32[8,10], index: 5, kind: output, shape index: {}]  }
   0x1   :  { %v2136_v0 = vld [vmem:[%s2833_s1 + $0x78] sm:$0xff]   ;;  %v2140_v4 = vld [vmem:[%s2833_s1 + $0x70] sm:$0xff]   ;;  %v2144_v8 = vld [vmem:[%s2833_s1 + $0x68] sm:$0xff]  }
   0x2   :  { %v2137_v1 = vld [vmem:[%s2833_s1 + $0x38] sm:$0xff]   ;;  %1910 = vmatprep.subr.bf16.mxu0 %v2136_v0  ;;  %v2141_v5 = vld [vmem:[%s2833_s1 + $0x30] sm:$0xff]   ;;  %v2145_v9 = vld [vmem:[%s2833_s1 + $0x28] sm:$0xff]  }
   0x3   :  { %v2138_v2 = vld [vmem:[%s2833_s1 + $0xf8] sm:$0xff]   ;;  %1911 = vmatpush3.bf16.msra.mxu0 %v2137_v1  ;;  %v2142_v6 = vld [vmem:[%s2833_s1 + $0xf0] sm:$0xff]   ;;  %v2146_v10 = vld [vmem:[%s2833_s1 + $0xe8] sm:$0xff]  }
   0x4   :  { %v2139_v3 = vld [vmem:[%s2833_s1 + $0xb8] sm:$0xff]   ;;  %1932 = vmatprep.subr.bf16.mxu1 %v2138_v2  ;;  %1912 = vmatprep.subr.bf16.mxu0 %v2140_v4  ;;  %v2143_v7 = vld [vmem:[%s2833_s1 + $0xb0] sm:$0xff]   ;;  %v2147_v11 = vld [vmem:[%s2833_s1 + $0xa8] sm:$0xff]  }
   0x5   :  { %1933 = vmatpush3.bf16.msra.mxu1 %v2139_v3  ;;  %v2148_v12 = vld [vmem:[%s2833_s1 + $0x60] sm:$0xff]   ;;  %v2152_v16 = vld [vmem:[%s2833_s1 + $0x58] sm:$0xff]   ;;  %v2156_v20 = vld [vmem:[%s2833_s1 + $0x50] sm:$0xff]  }
   0x6   :  { %1934 = vmatprep.subr.bf16.mxu1 %v2142_v6  ;;  %v2149_v13 = vld [vmem:[%s2833_s1 + $0x20] sm:$0xff]   ;;  %v2153_v17 = vld [vmem:[%s2833_s1 + $0x18] sm:$0xff]   ;;  %v2157_v21 = vld [vmem:[%s2833_s1 + $0x10] sm:$0xff]  }
   0x7   :  { %1913 = vmatpush3.bf16.msra.mxu0 %v2141_v5  ;;  %v2150_v14 = vld [vmem:[%s2833_s1 + $0xe0] sm:$0xff]   ;;  %v2154_v18 = vld [vmem:[%s2833_s1 + $0xd8] sm:$0xff]   ;;  %v2158_v22 = vld [vmem:[%s2833_s1 + $0xd0] sm:$0xff]  }
   0x8   :  { %1914 = vmatprep.subr.bf16.mxu0 %v2144_v8  ;;  %v2151_v15 = vld [vmem:[%s2833_s1 + $0xa0] sm:$0xff]   ;;  %v2155_v19 = vld [vmem:[%s2833_s1 + $0x98] sm:$0xff]   ;;  %v2159_v23 = vld [vmem:[%s2833_s1 + $0x90] sm:$0xff]  }
   0x9   :  { %1935 = vmatpush3.bf16.msra.mxu1 %v2143_v7  ;;  %v2160_v24 = vld [vmem:[%s2833_s1 + $0x48] sm:$0xff]   ;;  %v2164_v28 = vld [vmem:[%s2833_s1 + $0x40] sm:$0xff]   ;;  %v2170_v35 = vld [vmem:[%s2833_s1 + $0x178] sm:$0xff]  }
   0xa   :  { %1936 = vmatprep.subr.bf16.mxu1 %v2146_v10  ;;  %v2161_v25 = vld [vmem:[%s2833_s1 + $0x8] sm:$0xff]   ;;  %v2165_v29 = vld [vmem:[%s2833_s1] sm:$0xff]   ;;  %v2173_v39 = vld [vmem:[%s2833_s1 + $0x138] sm:$0xff]  }
   0xb   :  { %1915 = vmatpush3.bf16.msra.mxu0 %v2145_v9  ;;  %v2162_v26 = vld [vmem:[%s2833_s1 + $0xc8] sm:$0xff]   ;;  %v2166_v30 = vld [vmem:[%s2833_s1 + $0xc0] sm:$0xff]   ;;  %v2174_v40 = vld [vmem:[%s2833_s1 + $0x1f8] sm:$0xff]  }
   0xc   :  { %1916 = vmatprep.subr.bf16.mxu0 %v2148_v12  ;;  %v2163_v27 = vld [vmem:[%s2833_s1 + $0x88] sm:$0xff]   ;;  %v21_v31 = vld [vmem:[%s2834_s0] sm:$0xff]  ;;  %v2175_v41 = vld [vmem:[%s2833_s1 + $0x1b8] sm:$0xff]  }
   0xd   :  { %1937 = vmatpush3.bf16.msra.mxu1 %v2147_v11  ;;  %v1739_v32 = vcombine.low %v21_v31, %v21_v31  ;;  %v1740_v33 = vcombine.high %v21_v31, %v21_v31  ;;  %v2169_v34 = vld [vmem:[%s2833_s1 + $0x80] sm:$0xff]   ;;  %v22_v36 = vld [vmem:[%s2834_s0 + $0x8] sm:$0xff]  ;;  %v2176_v42 = vld [vmem:[%s2833_s1 + $0x170] sm:$0xff]  }
   0xe   :  { %1938 = vmatprep.subr.bf16.mxu1 %v2150_v14  ;;  %v1741_v37 = vcombine.low %v22_v36, %v22_v36  ;;  %v1742_v38 = vcombine.high %v22_v36, %v22_v36  ;;  %v2177_v43 = vld [vmem:[%s2833_s1 + $0x130] sm:$0xff]   ;;  %v2180_v46 = vld [vmem:[%s2833_s1 + $0x168] sm:$0xff]   ;;  %v2184_v50 = vld [vmem:[%s2833_s1 + $0x160] sm:$0xff]  }
   0xf   :  { %1917 = vmatpush3.bf16.msra.mxu0 %v2149_v13  ;;  %1284 = vmatprep.mubr.bf16.mxu0 %v1740_v33  ;;  %v2178_v44 = vld [vmem:[%s2833_s1 + $0x1f0] sm:$0xff]   ;;  %v2181_v47 = vld [vmem:[%s2833_s1 + $0x128] sm:$0xff]   ;;  %v2185_v51 = vld [vmem:[%s2833_s1 + $0x120] sm:$0xff]  }
  0x10   :  { %1918 = vmatprep.subr.bf16.mxu0 %v2152_v16  ;;  %1324 = vmatprep.mubr.bf16.mxu1 %v1742_v38  ;;  %v2179_v45 = vld [vmem:[%s2833_s1 + $0x1b0] sm:$0xff]   ;;  %v2182_v48 = vld [vmem:[%s2833_s1 + $0x1e8] sm:$0xff]   ;;  %v2186_v52 = vld [vmem:[%s2833_s1 + $0x1e0] sm:$0xff]  }
  0x11   :  { %1939 = vmatpush3.bf16.msra.mxu1 %v2151_v15  ;;  %v2183_v49 = vld [vmem:[%s2833_s1 + $0x1a8] sm:$0xff]   ;;  %v2187_v53 = vld [vmem:[%s2833_s1 + $0x1a0] sm:$0xff]   ;;  %v2188_v54 = vld [vmem:[%s2833_s1 + $0x158] sm:$0xff]  }
  0x12   :  { %1940 = vmatprep.subr.bf16.mxu1 %v2154_v18  ;;  %v2189_v55 = vld [vmem:[%s2833_s1 + $0x118] sm:$0xff]   ;;  %v2192_v58 = vld [vmem:[%s2833_s1 + $0x150] sm:$0xff]   ;;  %v2196_v62 = vld [vmem:[%s2833_s1 + $0x148] sm:$0xff]  }
  0x13   :  { %1919 = vmatpush3.bf16.msra.mxu0 %v2153_v17  ;;  %v2190_v56 = vld [vmem:[%s2833_s1 + $0x1d8] sm:$0xff]   ;;  %v2193_v59 = vld [vmem:[%s2833_s1 + $0x110] sm:$0xff]   ;;  %v2197_v63 = vld [vmem:[%s2833_s1 + $0x108] sm:$0xff]  }
  0x14   :  { %1920 = vmatprep.subr.bf16.mxu0 %v2156_v20  ;;  %v2191_v57 = vld [vmem:[%s2833_s1 + $0x198] sm:$0xff]   ;;  %v2194_v60 = vld [vmem:[%s2833_s1 + $0x1d0] sm:$0xff]   ;;  %v2198_v0 = vld [vmem:[%s2833_s1 + $0x1c8] sm:$0xff]  }
  0x15   :  { %1941 = vmatpush3.bf16.msra.mxu1 %v2155_v19  ;;  %v2195_v61 = vld [vmem:[%s2833_s1 + $0x190] sm:$0xff]   ;;  %v2199_v1 = vld [vmem:[%s2833_s1 + $0x188] sm:$0xff]   ;;  %v2200_v2 = vld [vmem:[%s2833_s1 + $0x140] sm:$0xff]  }
  0x16   :  { %1942 = vmatprep.subr.bf16.mxu1 %v2158_v22  ;;  %v2201_v3 = vld [vmem:[%s2833_s1 + $0x100] sm:$0xff]   ;;  %v23_v5 = vld [vmem:[%s2834_s0 + $0x10] sm:$0xff]  ;;  %v2206_v9 = vld [vmem:[%s2833_s1 + $0x278] sm:$0xff]  }
  0x17   :  { %1921 = vmatpush3.bf16.msra.mxu0 %v2157_v21  ;;  %v2202_v4 = vld [vmem:[%s2833_s1 + $0x1c0] sm:$0xff]   ;;  %v1743_v6 = vcombine.low %v23_v5, %v23_v5  ;;  %v1744_v7 = vcombine.high %v23_v5, %v23_v5  ;;  %v24_v10 = vld [vmem:[%s2834_s0 + $0x18] sm:$0xff]  ;;  %v2212_v16 = vld [vmem:[%s2833_s1 + $0x270] sm:$0xff]  }
  0x18   :  { %1922 = vmatprep.subr.bf16.mxu0 %v2160_v24  ;;  %v2205_v8 = vld [vmem:[%s2833_s1 + $0x180] sm:$0xff]   ;;  %v1745_v11 = vcombine.low %v24_v10, %v24_v10  ;;  %v1746_v12 = vcombine.high %v24_v10, %v24_v10  ;;  %v2209_v13 = vld [vmem:[%s2833_s1 + $0x238] sm:$0xff]   ;;  %v2213_v17 = vld [vmem:[%s2833_s1 + $0x230] sm:$0xff]  }
  0x19   :  { %1943 = vmatpush3.bf16.msra.mxu1 %v2159_v23  ;;  %v2210_v14 = vld [vmem:[%s2833_s1 + $0x2f8] sm:$0xff]   ;;  %v2214_v18 = vld [vmem:[%s2833_s1 + $0x2f0] sm:$0xff]   ;;  %v2216_v20 = vld [vmem:[%s2833_s1 + $0x268] sm:$0xff]  }
  0x1a   :  { %1944 = vmatprep.subr.bf16.mxu1 %v2162_v26  ;;  %v2211_v15 = vld [vmem:[%s2833_s1 + $0x2b8] sm:$0xff]   ;;  %v2215_v19 = vld [vmem:[%s2833_s1 + $0x2b0] sm:$0xff]   ;;  %v2217_v21 = vld [vmem:[%s2833_s1 + $0x228] sm:$0xff]  }
  0x1b   :  { %1923 = vmatpush3.bf16.msra.mxu0 %v2161_v25  ;;  %v2218_v22 = vld [vmem:[%s2833_s1 + $0x2e8] sm:$0xff]   ;;  %v2220_v24 = vld [vmem:[%s2833_s1 + $0x260] sm:$0xff]   ;;  %v2227_v31 = vld [vmem:[%s2833_s1 + $0x298] sm:$0xff]  }
  0x1c   :  { %1924 = vmatprep.subr.bf16.mxu0 %v2164_v28  ;;  %v2219_v23 = vld [vmem:[%s2833_s1 + $0x2a8] sm:$0xff]   ;;  %v2221_v25 = vld [vmem:[%s2833_s1 + $0x220] sm:$0xff]   ;;  %v2224_v28 = vld [vmem:[%s2833_s1 + $0x258] sm:$0xff]  }
  0x1d   :  { %1945 = vmatpush3.bf16.msra.mxu1 %v2163_v27  ;;  %v2222_v26 = vld [vmem:[%s2833_s1 + $0x2e0] sm:$0xff]   ;;  %v2229_v33 = vld [vmem:[%s2833_s1 + $0x210] sm:$0xff]   ;;  %v2232_v36 = vld [vmem:[%s2833_s1 + $0x248] sm:$0xff]  }
  0x1e   :  { %1946 = vmatprep.subr.bf16.mxu1 %v2166_v30  ;;  %v2223_v27 = vld [vmem:[%s2833_s1 + $0x2a0] sm:$0xff]   ;;  %v2226_v30 = vld [vmem:[%s2833_s1 + $0x2d8] sm:$0xff]   ;;  %v2234_v38 = vld [vmem:[%s2833_s1 + $0x2c8] sm:$0xff]  }
  0x1f   :  { %1925 = vmatpush3.bf16.msra.mxu0 %v2165_v29  ;;  %v2225_v29 = vld [vmem:[%s2833_s1 + $0x218] sm:$0xff]   ;;  %v2268_v10 = vld [vmem:[%s2833_s1 + $0x348] sm:$0xff]  }
  0x20   :  { %1954 = vmatprep.subr.bf16.mxu0 %v2170_v35  ;;  %v2231_v35 = vld [vmem:[%s2833_s1 + $0x290] sm:$0xff]   ;;  %v2263_v5 = vld [vmem:[%s2833_s1 + $0x398] sm:$0xff]  }
  0x21   :  { %1947 = vmatpush3.bf16.msra.mxu1 %v2169_v34  ;;  %v2230_v34 = vld [vmem:[%s2833_s1 + $0x2d0] sm:$0xff]  }
  0x22   :  { %1285 = vmatmul.mubr.bf16.vlgmr.msra.gmra.mxu0 %v1739_v32  ;;  %1976 = vmatprep.subr.bf16.mxu1 %v2174_v40  ;;  %v2228_v32 = vld [vmem:[%s2833_s1 + $0x250] sm:$0xff]   ;;  %v2236_v40 = vld [vmem:[%s2833_s1 + $0x240] sm:$0xff]  }
  0x23   :  { %1955 = vmatpush3.bf16.msra.mxu0 %v2173_v39  ;;  %1364 = vmatprep.mubr.bf16.mxu0 %v1744_v7  ;;  %v2235_v39 = vld [vmem:[%s2833_s1 + $0x288] sm:$0xff]   ;;  %v2265_v7 = vld [vmem:[%s2833_s1 + $0x310] sm:$0xff]  }
  0x24   :  { %1325 = vmatmul.mubr.bf16.vlgmr.msra.gmra.mxu1 %v1741_v37  ;;  %1956 = vmatprep.subr.bf16.mxu0 %v2176_v42  ;;  %v2233_v37 = vld [vmem:[%s2833_s1 + $0x208] sm:$0xff]   ;;  %v2238_v42 = vld [vmem:[%s2833_s1 + $0x2c0] sm:$0xff]  }
  0x25   :  { %1977 = vmatpush3.bf16.msra.mxu1 %v2175_v41  ;;  %1404 = vmatprep.mubr.bf16.mxu1 %v1746_v12  ;;  %v2237_v41 = vld [vmem:[%s2833_s1 + $0x200] sm:$0xff]   ;;  %v2270_v12 = vld [vmem:[%s2833_s1 + $0x3c8] sm:$0xff]  }
  0x26   :  { %1978 = vmatprep.subr.bf16.mxu1 %v2178_v44 }
  0x27   :  { %1957 = vmatpush3.bf16.msra.mxu0 %v2177_v43  ;;  %v25_v43 = vld [vmem:[%s2834_s0 + $0x20] sm:$0xff] }
  0x28   :  { %1958 = vmatprep.subr.bf16.mxu0 %v2180_v46  ;;  %v1747_v44 = vcombine.low %v25_v43, %v25_v43  ;;  %v2241_v46 = vld [vmem:[%s2833_s1 + $0x280] sm:$0xff]  }
  0x29   :  { %1979 = vmatpush3.bf16.msra.mxu1 %v2179_v45  ;;  %v1748_v45 = vcombine.high %v25_v43, %v25_v43  ;;  %v2309_v43 = vmov 0.0  }
  0x2a   :  { %1980 = vmatprep.subr.bf16.mxu1 %v2182_v48  ;;  %v26_v48 = vld [vmem:[%s2834_s0 + $0x28] sm:$0xff] }
  0x2b   :  { %1959 = vmatpush3.bf16.msra.mxu0 %v2181_v47  ;;  %v2242_v47 = vld [vmem:[%s2833_s1 + $0x378] sm:$0xff]  }
  0x2c   :  { %1960 = vmatprep.subr.bf16.mxu0 %v2184_v50  ;;  %v1750_v50 = vcombine.high %v26_v48, %v26_v48 }
  0x2d   :  { %1981 = vmatpush3.bf16.msra.mxu1 %v2183_v49  ;;  %v1749_v49 = vcombine.low %v26_v48, %v26_v48  ;;  %v2301_v48 = vld [vmem:[%s2835_s3 + $0x18] sm:$0xff]  }
  0x2e   :  { %1982 = vmatprep.subr.bf16.mxu1 %v2186_v52  ;;  %v2246_v52 = vld [vmem:[%s2833_s1 + $0x3f8] sm:$0xff]  }
  0x2f   :  { %1961 = vmatpush3.bf16.msra.mxu0 %v2185_v51  ;;  %v2245_v51 = vld [vmem:[%s2833_s1 + $0x338] sm:$0xff]  }
  0x30   :  { %1962 = vmatprep.subr.bf16.mxu0 %v2188_v54  ;;  %v2248_v54 = vld [vmem:[%s2833_s1 + $0x370] sm:$0xff]  }
  0x31   :  { %1983 = vmatpush3.bf16.msra.mxu1 %v2187_v53  ;;  %v2247_v53 = vld [vmem:[%s2833_s1 + $0x3b8] sm:$0xff]  }
  0x32   :  { %1984 = vmatprep.subr.bf16.mxu1 %v2190_v56  ;;  %v2250_v56 = vld [vmem:[%s2833_s1 + $0x3f0] sm:$0xff]  }
  0x33   :  { %1963 = vmatpush3.bf16.msra.mxu0 %v2189_v55  ;;  %v2249_v55 = vld [vmem:[%s2833_s1 + $0x330] sm:$0xff]  }
  0x34   :  { %1964 = vmatprep.subr.bf16.mxu0 %v2192_v58  ;;  %v2252_v58 = vld [vmem:[%s2833_s1 + $0x368] sm:$0xff]  }
  0x35   :  { %1985 = vmatpush3.bf16.msra.mxu1 %v2191_v57  ;;  %v2251_v57 = vld [vmem:[%s2833_s1 + $0x3b0] sm:$0xff]  }
  0x36   :  { %1986 = vmatprep.subr.bf16.mxu1 %v2194_v60  ;;  %v2254_v60 = vld [vmem:[%s2833_s1 + $0x3e8] sm:$0xff]  }
  0x37   :  { %1965 = vmatpush3.bf16.msra.mxu0 %v2193_v59  ;;  %v2253_v59 = vld [vmem:[%s2833_s1 + $0x328] sm:$0xff]  }
  0x38   :  { %1966 = vmatprep.subr.bf16.mxu0 %v2196_v62  ;;  %v2256_v62 = vld [vmem:[%s2833_s1 + $0x360] sm:$0xff]  }
  0x39   :  { %1987 = vmatpush3.bf16.msra.mxu1 %v2195_v61  ;;  %v2255_v61 = vld [vmem:[%s2833_s1 + $0x3a8] sm:$0xff]  }
  0x3a   :  { %1988 = vmatprep.subr.bf16.mxu1 %v2198_v0  ;;  %v2258_v0 = vld [vmem:[%s2833_s1 + $0x3e0] sm:$0xff]  }
  0x3b   :  { %1967 = vmatpush3.bf16.msra.mxu0 %v2197_v63  ;;  %v2257_v63 = vld [vmem:[%s2833_s1 + $0x320] sm:$0xff]  }
  0x3c   :  { %1968 = vmatprep.subr.bf16.mxu0 %v2200_v2  ;;  %v2260_v2 = vld [vmem:[%s2833_s1 + $0x358] sm:$0xff]  }
  0x3d   :  { %1989 = vmatpush3.bf16.msra.mxu1 %v2199_v1  ;;  %v2259_v1 = vld [vmem:[%s2833_s1 + $0x3a0] sm:$0xff]  }
  0x3e   :  { %1990 = vmatprep.subr.bf16.mxu1 %v2202_v4  ;;  %v2262_v4 = vld [vmem:[%s2833_s1 + $0x3d8] sm:$0xff]  }
  0x3f   :  { %1969 = vmatpush3.bf16.msra.mxu0 %v2201_v3  ;;  %v2261_v3 = vld [vmem:[%s2833_s1 + $0x318] sm:$0xff]  }
  0x40   :  { %1998 = vmatprep.subr.bf16.mxu0 %v2206_v9  ;;  %v2267_v9 = vld [vmem:[%s2833_s1 + $0x390] sm:$0xff]  }
  0x41   :  { %1991 = vmatpush3.bf16.msra.mxu1 %v2205_v8  ;;  %v2266_v8 = vld [vmem:[%s2833_s1 + $0x3d0] sm:$0xff]  }
  0x42   :  { %1365 = vmatmul.mubr.bf16.vlgmr.msra.gmra.mxu0 %v1743_v6  ;;  %2020 = vmatprep.subr.bf16.mxu1 %v2210_v14  ;;  %v2264_v6 = vld [vmem:[%s2833_s1 + $0x350] sm:$0xff]   ;;  %v2272_v14 = vld [vmem:[%s2833_s1 + $0x340] sm:$0xff]  }
  0x43   :  { %1999 = vmatpush3.bf16.msra.mxu0 %v2209_v13  ;;  %1444 = vmatprep.mubr.bf16.mxu0 %v1748_v45  ;;  %v2271_v13 = vld [vmem:[%s2833_s1 + $0x388] sm:$0xff]  }
  0x44   :  { %1405 = vmatmul.mubr.bf16.vlgmr.msra.gmra.mxu1 %v1745_v11  ;;  %2000 = vmatprep.subr.bf16.mxu0 %v2212_v16  ;;  %v2269_v11 = vld [vmem:[%s2833_s1 + $0x308] sm:$0xff]   ;;  %v2274_v16 = vld [vmem:[%s2833_s1 + $0x3c0] sm:$0xff]  }
  0x45   :  { %2021 = vmatpush3.bf16.msra.mxu1 %v2211_v15  ;;  %1484 = vmatprep.mubr.bf16.mxu1 %v1750_v50  ;;  %v2273_v15 = vld [vmem:[%s2833_s1 + $0x300] sm:$0xff]   ;;  %v2302_v50 = vld [vmem:[%s2835_s3 + $0x10] sm:$0xff]  }
  0x46   :  { %2022 = vmatprep.subr.bf16.mxu1 %v2214_v18 }
  0x47   :  { %2001 = vmatpush3.bf16.msra.mxu0 %v2213_v17  ;;  %v27_v17 = vld [vmem:[%s2834_s0 + $0x30] sm:$0xff] }
  0x48   :  { %2002 = vmatprep.subr.bf16.mxu0 %v2216_v20  ;;  %v1751_v18 = vcombine.low %v27_v17, %v27_v17  ;;  %v2277_v20 = vld [vmem:[%s2833_s1 + $0x380] sm:$0xff]  }
  0x49   :  { %2023 = vmatpush3.bf16.msra.mxu1 %v2215_v19  ;;  %v1752_v19 = vcombine.high %v27_v17, %v27_v17 }
  0x4a   :  { %2024 = vmatprep.subr.bf16.mxu1 %v2218_v22  ;;  %v28_v22 = vld [vmem:[%s2834_s0 + $0x38] sm:$0xff] }
  0x4b   :  { %2003 = vmatpush3.bf16.msra.mxu0 %v2217_v21  ;;  %v2278_v21 = vld [vmem:[%s2833_s1 + $0x478] sm:$0xff]  }
  0x4c   :  { %2004 = vmatprep.subr.bf16.mxu0 %v2220_v24  ;;  %v1754_v24 = vcombine.high %v28_v22, %v28_v22 }
  0x4d   :  { %2025 = vmatpush3.bf16.msra.mxu1 %v2219_v23  ;;  %v1753_v23 = vcombine.low %v28_v22, %v28_v22 }
  0x4e   :  { %2026 = vmatprep.subr.bf16.mxu1 %v2222_v26  ;;  %v2282_v26 = vld [vmem:[%s2833_s1 + $0x470] sm:$0xff]  }
  0x4f   :  { %2005 = vmatpush3.bf16.msra.mxu0 %v2221_v25  ;;  %v2281_v25 = vld [vmem:[%s2833_s1 + $0x438] sm:$0xff]  }
  0x50   :  { %2006 = vmatprep.subr.bf16.mxu0 %v2224_v28  ;;  %v2284_v28 = vld [vmem:[%s2833_s1 + $0x468] sm:$0xff]  }
  0x51   :  { %2027 = vmatpush3.bf16.msra.mxu1 %v2223_v27  ;;  %v2283_v27 = vld [vmem:[%s2833_s1 + $0x430] sm:$0xff]  }
  0x52   :  { %2028 = vmatprep.subr.bf16.mxu1 %v2226_v30  ;;  %v2286_v30 = vld [vmem:[%s2833_s1 + $0x460] sm:$0xff]  }
  0x53   :  { %2007 = vmatpush3.bf16.msra.mxu0 %v2225_v29  ;;  %v2285_v29 = vld [vmem:[%s2833_s1 + $0x428] sm:$0xff]  }
  0x54   :  { %2008 = vmatprep.subr.bf16.mxu0 %v2228_v32  ;;  %v2288_v32 = vld [vmem:[%s2833_s1 + $0x458] sm:$0xff]  }
  0x55   :  { %2029 = vmatpush3.bf16.msra.mxu1 %v2227_v31  ;;  %v2287_v31 = vld [vmem:[%s2833_s1 + $0x420] sm:$0xff]  }
  0x56   :  { %2030 = vmatprep.subr.bf16.mxu1 %v2230_v34  ;;  %v29_v34 = vld [vmem:[%s2834_s0 + $0x40] sm:$0xff] }
  0x57   :  { %2009 = vmatpush3.bf16.msra.mxu0 %v2229_v33  ;;  %v2289_v33 = vld [vmem:[%s2833_s1 + $0x418] sm:$0xff]  }
  0x58   :  { %2010 = vmatprep.subr.bf16.mxu0 %v2232_v36  ;;  %v1756_v36 = vcombine.high %v29_v34, %v29_v34 }
  0x59   :  { %2031 = vmatpush3.bf16.msra.mxu1 %v2231_v35  ;;  %v2290_v35 = vld [vmem:[%s2833_s1 + $0x450] sm:$0xff]  }
  0x5a   :  { %2032 = vmatprep.subr.bf16.mxu1 %v2234_v38  ;;  %v2292_v38 = vld [vmem:[%s2833_s1 + $0x448] sm:$0xff]  }
  0x5b   :  { %2011 = vmatpush3.bf16.msra.mxu0 %v2233_v37  ;;  %v2291_v37 = vld [vmem:[%s2833_s1 + $0x410] sm:$0xff]  }
  0x5c   :  { %2012 = vmatprep.subr.bf16.mxu0 %v2236_v40  ;;  %v2294_v40 = vld [vmem:[%s2833_s1 + $0x440] sm:$0xff]  }
  0x5d   :  { %2033 = vmatpush3.bf16.msra.mxu1 %v2235_v39  ;;  %v2293_v39 = vld [vmem:[%s2833_s1 + $0x408] sm:$0xff]  }
  0x5e   :  { %2034 = vmatprep.subr.bf16.mxu1 %v2238_v42  ;;  %v1755_v42 = vcombine.low %v29_v34, %v29_v34 }
  0x5f   :  { %2013 = vmatpush3.bf16.msra.mxu0 %v2237_v41  ;;  %v2295_v41 = vld [vmem:[%s2833_s1 + $0x400] sm:$0xff]  }
  0x60   :  { %2042 = vmatprep.subr.bf16.mxu0 %v2242_v47  ;;  %v2300_v47 = vld [vmem:[%s2835_s3 + $0x20] sm:$0xff]  }
  0x61   :  { %2035 = vmatpush3.bf16.msra.mxu1 %v2241_v46  ;;  %v2299_v46 = vld [vmem:[%s2835_s3 + $0x28] sm:$0xff]  }
  0x62   :  { %1445 = vmatmul.mubr.bf16.vlgmr.msra.gmra.mxu0 %v1747_v44  ;;  %2064 = vmatprep.subr.bf16.mxu1 %v2246_v52  ;;  %v2298_v44 = vld [vmem:[%s2835_s3 + $0x30] ss:$0 sps:$4 sm:$0x33]  }
  0x63   :  { %2043 = vmatpush3.bf16.msra.mxu0 %v2245_v51  ;;  %1524 = vmatprep.mubr.bf16.mxu0 %v1752_v19  ;;  %v1679_v45 = vsel %vm1677_vm0, %v2298_v44, 0  ;;  %v1738_v51 = vld [vmem:[%s2836_s2] ss:$0 sm:$0xff] }
  0x64   :  { %1485 = vmatmul.mubr.bf16.vlgmr.msra.gmra.mxu1 %v1749_v49  ;;  %2044 = vmatprep.subr.bf16.mxu0 %v2248_v54 }
  0x65   :  { %2065 = vmatpush3.bf16.msra.mxu1 %v2247_v53  ;;  %1564 = vmatprep.mubr.bf16.mxu1 %v1754_v24 }
  0x66   :  { %2066 = vmatprep.subr.bf16.mxu1 %v2250_v56 }
  0x67   :  { %2045 = vmatpush3.bf16.msra.mxu0 %v2249_v55 }
  0x68   :  { %2046 = vmatprep.subr.bf16.mxu0 %v2252_v58 }
  0x69   :  { %2067 = vmatpush3.bf16.msra.mxu1 %v2251_v57  ;;  %v2303_v57 = vld [vmem:[%s2835_s3 + $0x8] sm:$0xff]  }
  0x6a   :  { %2068 = vmatprep.subr.bf16.mxu1 %v2254_v60 }
  0x6b   :  { %2047 = vmatpush3.bf16.msra.mxu0 %v2253_v59 }
  0x6c   :  { %2048 = vmatprep.subr.bf16.mxu0 %v2256_v62 }
  0x6d   :  { %2069 = vmatpush3.bf16.msra.mxu1 %v2255_v61 }
  0x6e   :  { %2070 = vmatprep.subr.bf16.mxu1 %v2258_v0  ;;  %v2304_v0 = vld [vmem:[%s2835_s3] sm:$0xff]  }
  0x6f   :  { %2049 = vmatpush3.bf16.msra.mxu0 %v2257_v63 }
  0x70   :  { %2050 = vmatprep.subr.bf16.mxu0 %v2260_v2 }
  0x71   :  { %2071 = vmatpush3.bf16.msra.mxu1 %v2259_v1 }
  0x72   :  { %2072 = vmatprep.subr.bf16.mxu1 %v2262_v4 }
  0x73   :  { %2051 = vmatpush3.bf16.msra.mxu0 %v2261_v3 }
  0x74   :  { %2052 = vmatprep.subr.bf16.mxu0 %v2264_v6 }
  0x75   :  { %2073 = vmatpush3.bf16.msra.mxu1 %v2263_v5 }
  0x76   :  { %2074 = vmatprep.subr.bf16.mxu1 %v2266_v8 }
  0x77   :  { %2053 = vmatpush3.bf16.msra.mxu0 %v2265_v7 }
  0x78   :  { %2054 = vmatprep.subr.bf16.mxu0 %v2268_v10 }
  0x79   :  { %2075 = vmatpush3.bf16.msra.mxu1 %v2267_v9 }
  0x7a   :  { %2076 = vmatprep.subr.bf16.mxu1 %v2270_v12 }
  0x7b   :  { %2055 = vmatpush3.bf16.msra.mxu0 %v2269_v11 }
  0x7c   :  { %2056 = vmatprep.subr.bf16.mxu0 %v2272_v14 }
  0x7d   :  { %2077 = vmatpush3.bf16.msra.mxu1 %v2271_v13 }
  0x7e   :  { %2078 = vmatprep.subr.bf16.mxu1 %v2274_v16 }
  0x7f   :  { %2057 = vmatpush3.bf16.msra.mxu0 %v2273_v15 }
  0x80   :  { %2086 = vmatprep.subr.bf16.mxu0 %v2278_v21 }
  0x81   :  { %2079 = vmatpush3.bf16.msra.mxu1 %v2277_v20 }
  0x82   :  { %1525 = vmatmul.mubr.bf16.vlgmr.msra.gmra.mxu0 %v1751_v18  ;;  %2116 = vmatprep.subr.bf16.mxu1 %v2309_v43 }
  0x83   :  { %2087 = vmatpush3.bf16.msra.mxu0 %v2281_v25  ;;  %1604 = vmatprep.mubr.bf16.mxu0 %v1756_v36 }
  0x84   :  { %1565 = vmatmul.mubr.bf16.vlgmr.msra.gmra.mxu1 %v1753_v23  ;;  %2088 = vmatprep.subr.bf16.mxu0 %v2282_v26 }
  0x85   :  { %2117 = vmatpush3.bf16.msra.mxu1 %v1679_v45  ;;  %2130 = vmatprep.mubr.msk.bf16.mxu1 %vm2310_vm1, %v2309_v43  ;;  %v1901_v45 = vld [vmem:[%s2837_s4] ss:$0 sm:$0xff] }
  0x86   :  { %2118 = vmatprep.subr.bf16.mxu1 %v2309_v43 }
  0x87   :  { %2089 = vmatpush3.bf16.msra.mxu0 %v2283_v27 }
  0x88   :  { %2090 = vmatprep.subr.bf16.mxu0 %v2284_v28 }
  0x89   :  { %2119 = vmatpush3.bf16.msra.mxu1 %v2299_v46 }
  0x8a   :  { %2120 = vmatprep.subr.bf16.mxu1 %v2309_v43 }
  0x8b   :  { %2091 = vmatpush3.bf16.msra.mxu0 %v2285_v29 }
  0x8c   :  { %2092 = vmatprep.subr.bf16.mxu0 %v2286_v30 }
  0x8d   :  { %2121 = vmatpush3.bf16.msra.mxu1 %v2300_v47 }
  0x8e   :  { %2122 = vmatprep.subr.bf16.mxu1 %v2309_v43 }
  0x8f   :  { %2093 = vmatpush3.bf16.msra.mxu0 %v2287_v31 }
  0x90   :  { %2094 = vmatprep.subr.bf16.mxu0 %v2288_v32 }
  0x91   :  { %2123 = vmatpush3.bf16.msra.mxu1 %v2301_v48 }
  0x92   :  { %2124 = vmatprep.subr.bf16.mxu1 %v2309_v43 }
  0x93   :  { %2095 = vmatpush3.bf16.msra.mxu0 %v2289_v33 }
  0x94   :  { %2096 = vmatprep.subr.bf16.mxu0 %v2290_v35 }
  0x95   :  { %2125 = vmatpush3.bf16.msra.mxu1 %v2302_v50 }
  0x96   :  { %2126 = vmatprep.subr.bf16.mxu1 %v2309_v43 }
  0x97   :  { %2097 = vmatpush3.bf16.msra.mxu0 %v2291_v37 }
  0x98   :  { %2098 = vmatprep.subr.bf16.mxu0 %v2292_v38 }
  0x99   :  { %2127 = vmatpush3.bf16.msra.mxu1 %v2303_v57 }
  0x9a   :  { %2128 = vmatprep.subr.bf16.mxu1 %v2309_v43 }
  0x9b   :  { %2099 = vmatpush3.bf16.msra.mxu0 %v2293_v39 }
  0x9c   :  { %2100 = vmatprep.subr.bf16.mxu0 %v2294_v40 }
  0x9d   :  { %2129 = vmatpush3.bf16.msra.mxu1 %v2304_v0 }
  0x9f   :  { %2101 = vmatpush3.bf16.msra.mxu0 %v2295_v41 }
  0xa2   :  { %1605 = vmatmul.mubr.bf16.vlgmr.msra.gmra.mxu0 %v1755_v42 }
  0xe2   :  { %v1926_v49 = vpop.f32.mrf.mxu0 }
  0xe4   :  { %v1927_v52 = vpop.f32.mrf.mxu0  ;;  %v1948_v53 = vpop.f32.mrf.mxu1 }
  0xe5   :  { %v1928_v54 = vadd.f32 %v1927_v52, %v1926_v49 }
  0xe6   :  { %v1929_v55 = vpop.f32.mrf.mxu0  ;;  %v1949_v56 = vpop.f32.mrf.mxu1 }
  0xe7   :  { %v1287_v58 = vadd.f32 %v1928_v54, %v1738_v51  ;;  %v1950_v59 = vadd.f32 %v1949_v56, %v1948_v53 }
  0xe8   :  { %v1930_v60 = vpop.f32.mrf.mxu0  ;;  %v1951_v61 = vpop.f32.mrf.mxu1 }
  0xe9   :  { %v1327_v62 = vadd.f32 %v1950_v59, %v1287_v58 }
  0xea   :  { %v1952_v63 = vpop.f32.mrf.mxu1 }
 0x102   :  { %v1970_v1 = vpop.f32.mrf.mxu0 }
 0x104   :  { %v1971_v2 = vpop.f32.mrf.mxu0  ;;  %v1992_v4 = vpop.f32.mrf.mxu1 }
 0x105   :  { %v1972_v3 = vadd.f32 %v1971_v2, %v1970_v1 }
 0x106   :  { %v1973_v5 = vpop.f32.mrf.mxu0  ;;  %v1993_v7 = vpop.f32.mrf.mxu1 }
 0x107   :  { %v1367_v6 = vadd.f32 %v1972_v3, %v1327_v62  ;;  %v1994_v8 = vadd.f32 %v1993_v7, %v1992_v4 }
 0x108   :  { %v1974_v9 = vpop.f32.mrf.mxu0  ;;  %v1995_v10 = vpop.f32.mrf.mxu1 }
 0x109   :  { %v1407_v11 = vadd.f32 %v1994_v8, %v1367_v6 }
 0x10a   :  { %v1996_v12 = vpop.f32.mrf.mxu1 }
 0x122   :  { %v2014_v13 = vpop.f32.mrf.mxu0 }
 0x124   :  { %v2015_v14 = vpop.f32.mrf.mxu0  ;;  %v2036_v15 = vpop.f32.mrf.mxu1 }
 0x125   :  { %v2016_v29 = vadd.f32 %v2015_v14, %v2014_v13 }
 0x126   :  { %v2017_v16 = vpop.f32.mrf.mxu0  ;;  %v2037_v17 = vpop.f32.mrf.mxu1 }
 0x127   :  { %v1447_v30 = vadd.f32 %v2016_v29, %v1407_v11  ;;  %v2038_v31 = vadd.f32 %v2037_v17, %v2036_v15 }
 0x128   :  { %v2018_v18 = vpop.f32.mrf.mxu0  ;;  %v2039_v19 = vpop.f32.mrf.mxu1 }
 0x129   :  { %v1487_v33 = vadd.f32 %v2038_v31, %v1447_v30 }
 0x12a   :  { %v2040_v20 = vpop.f32.mrf.mxu1 }
 0x142   :  { %v2058_v21 = vpop.f32.mrf.mxu0 }
 0x144   :  { %v2059_v22 = vpop.f32.mrf.mxu0  ;;  %v2080_v23 = vpop.f32.mrf.mxu1 }
 0x145   :  { %v2060_v32 = vadd.f32 %v2059_v22, %v2058_v21 }
 0x146   :  { %v2061_v24 = vpop.f32.mrf.mxu0  ;;  %v2081_v25 = vpop.f32.mrf.mxu1 }
 0x147   :  { %v1527_v34 = vadd.f32 %v2060_v32, %v1487_v33  ;;  %v2082_v35 = vadd.f32 %v2081_v25, %v2080_v23 }
 0x148   :  { %v2062_v26 = vpop.f32.mrf.mxu0  ;;  %v2083_v27 = vpop.f32.mrf.mxu1 }
 0x149   :  { %v1567_v38 = vadd.f32 %v2082_v35, %v1527_v34 }
 0x14a   :  { %v2084_v28 = vpop.f32.mrf.mxu1 }
 0x162   :  { %v2102_v36 = vpop.f32.mrf.mxu0 }
 0x164   :  { %v2103_v37 = vpop.f32.mrf.mxu0 }
 0x165   :  { %v2104_v39 = vadd.f32 %v2103_v37, %v2102_v36 }
 0x166   :  { %v2105_v40 = vpop.f32.mrf.mxu0 }
 0x167   :  { %v1607_v41 = vadd.f32 %v2104_v39, %v1567_v38 }
 0x168   :  { %v2106_v42 = vpop.f32.mrf.mxu0 }
 0x169   :  { %v1612_v43 = vmax.f32 %v1607_v41, 0.0 }
 0x16b   :  { %v1613_v44 = vpack.c.bf16 %v1612_v43, %v1612_v43 }
 0x16d   :  { %2131 = vmatmul.mubr.msk.bf16.vlgmr.msra.gmra.mxu1 %vm1673_vm2, %v1613_v44 }
 0x22d   :  { %v1715_v46 = vpop.f32.mrf.mxu1 }
 0x22e   :  { %v1716_v47 = vadd.f32 %v1901_v45, %v1715_v46 }
 0x22f   :  { %v2132_v48 = vpop.f32.mrf.mxu1 }
 0x230   :  { %v1722_v49 = vsel %vm1721_vm3, %v1716_v47, -inf }
 0x231   :  { %1723 = vmax.xlane.f32.xlu0 %v1722_v49  ;;  %v1718_v50 = vpop.f32.mrf.mxu1 }
 0x233   :  { %v2133_v51 = vpop.f32.mrf.mxu1 }
 0x2ba   :  { %v1724_v52 = vpop.xlane.xlu0 %1723 }
 0x2bb   :  { %v1725_v53 = vsub.f32 %v1716_v47, %v1724_v52 }
 0x2bd   :  { %v1726_v54 = vmul.f32 1.442695, %v1725_v53 }
 0x2bf   :  { %2305 = vpow2.f32 %v1726_v54 }
 0x2cc   :  { %v2306_v55 = vpop.eup %2305 }
 0x2cd   :  { %v1728_v56 = vsel %vm1721_vm3, %v2306_v55, 0.0 }
 0x2ce   :  { %1729 = vadd.xlane.f32.xlu0 %v1728_v56 }
 0x357   :  { %v1730_v57 = vpop.xlane.xlu0 %1729 }
 0x358   :  { %2307 = vrcp.f32 %v1730_v57 }
 0x365   :  { %v2308_v58 = vpop.eup %2307 }
 0x366   :  { %v1732_v59 = vmul.f32 %v2308_v58, %v2306_v55 }
 0x368   :  { %1733 = vst.msk [vmem:[%s2838_s5] sm:$0xff] %vm1721_vm3, %v1732_v59 }

</bundles_post_ra>
